<compile_context>
chip_gen: v7x
topology: tpu7x:2x2x1
jax: 0.10.0
libtpu: 0.0.40
codegen_flags: <defaults>
</compile_context>

<pallas_src>
import functools
import math

import numpy as np
import jax
import jax.numpy as jnp
from jax.experimental import pallas as pl
from jax.experimental.pallas import tpu as pltpu

# ------------------------- small ViT config -------------------------
IMG = 16
PATCH = 4
IN_CHANS = 3
EMBED_DIM = 32
DEPTH = 2
NUM_HEADS = 4
HEAD_DIM = EMBED_DIM // NUM_HEADS
MLP_RATIO = 4
NUM_CLASSES = 10
TEMPERATURE = 16.0
ALPHA = 1.0                       # AdditiveLinear alpha
NUM_PATCHES = (IMG // PATCH) ** 2
SEQ = NUM_PATCHES + 1             # + cls token
LN_EPS = 1e-6
PATCH_DIM = IN_CHANS * PATCH * PATCH

T_PAD = 24      # SEQ=17 padded to a sublane-friendly count; pad keys disabled via additive bias
C_PAD = 128     # classifier rows padded so the logits store is a full 128-lane (unmasked) store
PER_BLOCK = 12  # params per transformer block passed to the kernel
NEG_INF = -1e30


# ------------------------- fused forward kernel -------------------------
def _fused_vit_kernel(group, patches_ref, patch_w_ref, patch_b_ref, cls_ref, pos_ref,
                      delta_ref, attn_bias_ref, *rest):
    """Entire MYNET.forward_metric for `group` images; everything resident in VMEM."""
    out_ref = rest[-1]
    norm_g = rest[DEPTH * PER_BLOCK][...]
    norm_b = rest[DEPTH * PER_BLOCK + 1][...]
    cls_w = rest[DEPTH * PER_BLOCK + 2][...]

    def mm(x, w):
        # x: (M, K), w: (N, K) -> (M, N).  Contract last dims on both sides so the MXU
        # takes the transposed RHS natively (no materialized transpose / relayout).
        return jax.lax.dot_general(x, w, (((1,), (1,)), ((), ())),
                                   preferred_element_type=jnp.float32)

    def layer_norm(x, g, b):
        mu = jnp.mean(x, axis=-1, keepdims=True)
        var = jnp.mean(jnp.square(x - mu), axis=-1, keepdims=True)
        return (x - mu) * jax.lax.rsqrt(var + LN_EPS) * g + b

    def erf(x):
        # TODO(synk): lax.erf has no guaranteed Pallas/Mosaic lowering, so exact-erf GELU uses
        # the Abramowitz&Stegun 7.1.26 polynomial (|err| < 1.5e-7, i.e. f32-accurate); exp -> EUP.
        p, a1, a2, a3, a4, a5 = (0.3275911, 0.254829592, -0.284496736,
                                 1.421413741, -1.453152027, 1.061405429)
        sgn = jnp.where(x < 0.0, -1.0, 1.0)
        z = jnp.abs(x)
        t = 1.0 / (1.0 + p * z)
        poly = ((((a5 * t + a4) * t + a3) * t + a2) * t + a1) * t
        return sgn * (1.0 - poly * jnp.exp(-z * z))

    def gelu_exact(x):  # torch nn.GELU default (erf form)
        return 0.5 * x * (1.0 + erf(x * (1.0 / math.sqrt(2.0))))

    # ---- patch embed (Conv2d k=stride=P == flatten + linear) for the whole group at once ----
    pt = mm(patches_ref[...], patch_w_ref[...]) + patch_b_ref[...]            # (group*16, 32)
    cls = cls_ref[...]                                                        # (1, 32)
    pos = pos_ref[...]                                                        # (24, 32)
    pad_rows = jnp.zeros((T_PAD - SEQ, EMBED_DIM), jnp.float32)
    rows = []
    for g in range(group):                                                    # static unroll
        img_tokens = jnp.concatenate(
            [cls, pt[g * NUM_PATCHES:(g + 1) * NUM_PATCHES], pad_rows], axis=0) + pos
        rows.append(img_tokens)
    x = jnp.concatenate(rows, axis=0)                                         # (group*24, 32)

    attn_bias = attn_bias_ref[...]        # (group*24, group*24): 0 allowed / -1e30 masked
    delta = delta_ref[...]
    scale = HEAD_DIM ** -0.5

    for blk in range(DEPTH):
        (ln1_g, ln1_b, qkv_w, qkv_b, proj_w, proj_b,
         ln2_g, ln2_b, fc1_w, fc1_b, fc2_w, fc2_b) = (
            r[...] for r in rest[blk * PER_BLOCK:(blk + 1) * PER_BLOCK])

        # --- attention branch: LN1 -> qkv (AdditiveLinear: W + alpha*shared_delta) -> MHA -> proj ---
        h = layer_norm(x, ln1_g, ln1_b)
        qkv = mm(h, qkv_w + ALPHA * delta) + qkv_b                            # (group*24, 96)
        q = qkv[:, 0:EMBED_DIM]
        k = qkv[:, EMBED_DIM:2 * EMBED_DIM]
        v = qkv[:, 2 * EMBED_DIM:3 * EMBED_DIM]
        heads = []
        for hh in range(NUM_HEADS):                                           # static unroll
            c0, c1 = hh * HEAD_DIM, (hh + 1) * HEAD_DIM
            # one matmul per head for the whole group; cross-image + pad keys killed by attn_bias
            s = mm(q[:, c0:c1], k[:, c0:c1]) * scale + attn_bias              # (g*24, g*24)
            s = s - jnp.max(s, axis=-1, keepdims=True)
            e = jnp.exp(s)
            pr = e * pl.reciprocal(jnp.sum(e, axis=-1, keepdims=True), approx=True)
            heads.append(jnp.dot(pr, v[:, c0:c1],
                                 preferred_element_type=jnp.float32))         # (g*24, 8)
        attn = jnp.concatenate(heads, axis=1)                                 # (g*24, 32)
        x = x + mm(attn, proj_w) + proj_b

        # --- MLP branch: LN2 -> fc1 -> exact-erf GELU -> fc2, fused residual ---
        h = layer_norm(x, ln2_g, ln2_b)
        h = gelu_exact(mm(h, fc1_w) + fc1_b)                                  # (g*24, 128)
        x = x + mm(h, fc2_w) + fc2_b

    # ---- final LayerNorm, per-image cls-token feature, cosine classifier * temperature ----
    xn = layer_norm(x, norm_g, norm_b)
    feat = jnp.concatenate([xn[g * T_PAD:g * T_PAD + 1, :] for g in range(group)],
                           axis=0)                                            # (group, 32)
    fnorm = jnp.maximum(jnp.sqrt(jnp.sum(feat * feat, axis=-1, keepdims=True)), 1e-12)
    wnorm = jnp.maximum(jnp.sqrt(jnp.sum(cls_w * cls_w, axis=-1, keepdims=True)), 1e-12)
    logits = TEMPERATURE * mm(feat / fnorm, cls_w / wnorm)                    # (group, 128)
    out_ref[0] = logits.astype(out_ref.dtype)


# ------------------------- model forward (wrapper) -------------------------
def mynet_forward(params, x, group=None):
    """MYNET.forward with mode != 'encoder' (forward_metric). One fused pallas_call."""
    B = x.shape[0]
    if group is None:
        group = min(8, B)            # images per grid step (sublane-stacked inside the kernel)
    steps = -(-B // group)
    b_pad = steps * group

    # patch extraction: the only host-side layout op (Conv2d k=stride=P == patch-flatten + linear)
    xp = x.reshape(B, IN_CHANS, IMG // PATCH, PATCH, IMG // PATCH, PATCH)
    xp = xp.transpose(0, 2, 4, 1, 3, 5).reshape(B * NUM_PATCHES, PATCH_DIM)
    if b_pad != B:
        xp = jnp.pad(xp, ((0, (b_pad - B) * NUM_PATCHES), (0, 0)))

    pos = jnp.pad(params["pos_embed"][0], ((0, T_PAD - SEQ), (0, 0)))              # (24, 32)
    cls_w = jnp.pad(params["classifier_w"], ((0, C_PAD - NUM_CLASSES), (0, 0)))    # (128, 32)

    # additive attention mask (compile-time numpy constant): block-diagonal over the image group,
    # padded-key columns disabled.  Avoids any in-kernel int div/mod or `where`.
    tok = np.arange(group * T_PAD)
    same_img = (tok[:, None] // T_PAD) == (tok[None, :] // T_PAD)
    real_key = (tok[None, :] % T_PAD) < SEQ
    attn_bias = jnp.asarray(np.where(same_img & real_key, 0.0, NEG_INF),
                            dtype=jnp.float32)                                     # (g*24, g*24)

    def row(v):
        return v.reshape(1, -1)

    inputs = [xp,
              params["patch_w"], row(params["patch_b"]),
              params["cls_token"].reshape(1, EMBED_DIM), pos,
              params["shared_delta"], attn_bias]
    for blk in params["blocks"]:
        inputs += [row(blk["ln1_g"]), row(blk["ln1_b"]),
                   blk["qkv_w"], row(blk["qkv_b"]),
                   blk["proj_w"], row(blk["proj_b"]),
                   row(blk["ln2_g"]), row(blk["ln2_b"]),
                   blk["fc1_w"], row(blk["fc1_b"]),
                   blk["fc2_w"], row(blk["fc2_b"])]
    inputs += [row(params["norm_g"]), row(params["norm_b"]), cls_w]

    in_specs = [pl.BlockSpec((group * NUM_PATCHES, PATCH_DIM), lambda s: (s, 0))]
    # all params: full-array blocks with a constant index_map -> DMA'd once, resident across steps
    in_specs += [pl.BlockSpec(a.shape, lambda s: (0, 0)) for a in inputs[1:]]

    out = pl.pallas_call(
        functools.partial(_fused_vit_kernel, group),
        out_shape=jax.ShapeDtypeStruct((steps, group, C_PAD), jnp.float32),
        grid=(steps,),
        in_specs=in_specs,
        out_specs=pl.BlockSpec((1, group, C_PAD), lambda s: (s, 0, 0)),
        compiler_params=pltpu.CompilerParams(
            dimension_semantics=("parallel",)),      # v7x: the 2 TensorCores split the groups
    )(*inputs)
    return out.reshape(b_pad, C_PAD)[:B, :NUM_CLASSES]


# ------------------------- deterministic params -------------------------
def init_params(key):
    def nrm(k, shape, scale=0.02):
        return (scale * jax.random.normal(k, shape)).astype(jnp.float32)

    keys = iter(jax.random.split(key, 8 + DEPTH * 8))
    params = {
        "patch_w": nrm(next(keys), (EMBED_DIM, PATCH_DIM)),
        "patch_b": jnp.zeros((EMBED_DIM,), jnp.float32),
        "cls_token": nrm(next(keys), (1, 1, EMBED_DIM)),
        "pos_embed": nrm(next(keys), (1, SEQ, EMBED_DIM)),
        "shared_delta": jnp.zeros((3 * EMBED_DIM, EMBED_DIM), jnp.float32),  # zeros at init
        "norm_g": jnp.ones((EMBED_DIM,), jnp.float32),
        "norm_b": jnp.zeros((EMBED_DIM,), jnp.float32),
        "classifier_w": nrm(next(keys), (NUM_CLASSES, EMBED_DIM), scale=0.1),
        "blocks": [],
    }
    hidden = MLP_RATIO * EMBED_DIM
    for _ in range(DEPTH):
        blk = {
            "ln1_g": jnp.ones((EMBED_DIM,), jnp.float32),
            "ln1_b": jnp.zeros((EMBED_DIM,), jnp.float32),
            "qkv_w": nrm(next(keys), (3 * EMBED_DIM, EMBED_DIM)),
            "qkv_b": jnp.zeros((3 * EMBED_DIM,), jnp.float32),
            "proj_w": nrm(next(keys), (EMBED_DIM, EMBED_DIM)),
            "proj_b": jnp.zeros((EMBED_DIM,), jnp.float32),
            "ln2_g": jnp.ones((EMBED_DIM,), jnp.float32),
            "ln2_b": jnp.zeros((EMBED_DIM,), jnp.float32),
            "fc1_w": nrm(next(keys), (hidden, EMBED_DIM)),
            "fc1_b": jnp.zeros((hidden,), jnp.float32),
            "fc2_w": nrm(next(keys), (EMBED_DIM, hidden)),
            "fc2_b": jnp.zeros((EMBED_DIM,), jnp.float32),
        }
        params["blocks"].append(blk)
    return params


# ------------------------- main -------------------------
if __name__ == "__main__":
    key = jax.random.PRNGKey(0)
    pkey, xkey = jax.random.split(key)
    params = init_params(pkey)

    B = 2
    x = jax.random.normal(xkey, (B, IN_CHANS, IMG, IMG), dtype=jnp.float32)  # NCHW

    logits = jax.jit(mynet_forward)(params, x)
    jax.block_until_ready(logits)
    assert logits.shape == (B, NUM_CLASSES)
    # TODO(synk): pretrained timm weights / update_fc prototype averaging are runtime data,
    # not part of the forward compute graph, so they are not reproduced here.
    print("KERNEL_OK")
</pallas_src>

<mosaic_0001>
module attributes {stable_mosaic.version = 11 : i64} {
  func.func @_fused_vit_kernel(%arg0: i32, %arg1: memref<32x48xf32, #tpu.memory_space<vmem>>, %arg2: memref<32x48xf32, #tpu.memory_space<vmem>>, %arg3: memref<1x32xf32, #tpu.memory_space<vmem>>, %arg4: memref<1x32xf32, #tpu.memory_space<vmem>>, %arg5: memref<24x32xf32, #tpu.memory_space<vmem>>, %arg6: memref<96x32xf32, #tpu.memory_space<vmem>>, %arg7: memref<48x48xf32, #tpu.memory_space<vmem>>, %arg8: memref<1x32xf32, #tpu.memory_space<vmem>>, %arg9: memref<1x32xf32, #tpu.memory_space<vmem>>, %arg10: memref<96x32xf32, #tpu.memory_space<vmem>>, %arg11: memref<1x96xf32, #tpu.memory_space<vmem>>, %arg12: memref<32x32xf32, #tpu.memory_space<vmem>>, %arg13: memref<1x32xf32, #tpu.memory_space<vmem>>, %arg14: memref<1x32xf32, #tpu.memory_space<vmem>>, %arg15: memref<1x32xf32, #tpu.memory_space<vmem>>, %arg16: memref<128x32xf32, #tpu.memory_space<vmem>>, %arg17: memref<1x128xf32, #tpu.memory_space<vmem>>, %arg18: memref<32x128xf32, #tpu.memory_space<vmem>>, %arg19: memref<1x32xf32, #tpu.memory_space<vmem>>, %arg20: memref<1x32xf32, #tpu.memory_space<vmem>>, %arg21: memref<1x32xf32, #tpu.memory_space<vmem>>, %arg22: memref<96x32xf32, #tpu.memory_space<vmem>>, %arg23: memref<1x96xf32, #tpu.memory_space<vmem>>, %arg24: memref<32x32xf32, #tpu.memory_space<vmem>>, %arg25: memref<1x32xf32, #tpu.memory_space<vmem>>, %arg26: memref<1x32xf32, #tpu.memory_space<vmem>>, %arg27: memref<1x32xf32, #tpu.memory_space<vmem>>, %arg28: memref<128x32xf32, #tpu.memory_space<vmem>>, %arg29: memref<1x128xf32, #tpu.memory_space<vmem>>, %arg30: memref<32x128xf32, #tpu.memory_space<vmem>>, %arg31: memref<1x32xf32, #tpu.memory_space<vmem>>, %arg32: memref<1x32xf32, #tpu.memory_space<vmem>>, %arg33: memref<1x32xf32, #tpu.memory_space<vmem>>, %arg34: memref<128x32xf32, #tpu.memory_space<vmem>>, %arg35: memref<1x2x128xf32, #tpu.memory_space<vmem>>) attributes {dimension_semantics = [#tpu.dimension_semantics<parallel>], iteration_bounds = array<i64: 1>, scalar_prefetch = 0 : i64, scratch_operands = 0 : i64, tpu.core_type = #tpu.core_type<tc>, window_params = [{transform_indices = @transform_0, window_bounds = array<i64: 32, 48>}, {pipeline_mode = #tpu.pipeline_mode<synchronous>, transform_indices = @transform_1, window_bounds = array<i64: 32, 48>}, {pipeline_mode = #tpu.pipeline_mode<synchronous>, transform_indices = @transform_2, window_bounds = array<i64: 1, 32>}, {pipeline_mode = #tpu.pipeline_mode<synchronous>, transform_indices = @transform_3, window_bounds = array<i64: 1, 32>}, {pipeline_mode = #tpu.pipeline_mode<synchronous>, transform_indices = @transform_4, window_bounds = array<i64: 24, 32>}, {pipeline_mode = #tpu.pipeline_mode<synchronous>, transform_indices = @transform_5, window_bounds = array<i64: 96, 32>}, {pipeline_mode = #tpu.pipeline_mode<synchronous>, transform_indices = @transform_6, window_bounds = array<i64: 48, 48>}, {pipeline_mode = #tpu.pipeline_mode<synchronous>, transform_indices = @transform_7, window_bounds = array<i64: 1, 32>}, {pipeline_mode = #tpu.pipeline_mode<synchronous>, transform_indices = @transform_8, window_bounds = array<i64: 1, 32>}, {pipeline_mode = #tpu.pipeline_mode<synchronous>, transform_indices = @transform_9, window_bounds = array<i64: 96, 32>}, {pipeline_mode = #tpu.pipeline_mode<synchronous>, transform_indices = @transform_10, window_bounds = array<i64: 1, 96>}, {pipeline_mode = #tpu.pipeline_mode<synchronous>, transform_indices = @transform_11, window_bounds = array<i64: 32, 32>}, {pipeline_mode = #tpu.pipeline_mode<synchronous>, transform_indices = @transform_12, window_bounds = array<i64: 1, 32>}, {pipeline_mode = #tpu.pipeline_mode<synchronous>, transform_indices = @transform_13, window_bounds = array<i64: 1, 32>}, {pipeline_mode = #tpu.pipeline_mode<synchronous>, transform_indices = @transform_14, window_bounds = array<i64: 1, 32>}, {pipeline_mode = #tpu.pipeline_mode<synchronous>, transform_indices = @transform_15, window_bounds = array<i64: 128, 32>}, {pipeline_mode = #tpu.pipeline_mode<synchronous>, transform_indices = @transform_16, window_bounds = array<i64: 1, 128>}, {pipeline_mode = #tpu.pipeline_mode<synchronous>, transform_indices = @transform_17, window_bounds = array<i64: 32, 128>}, {pipeline_mode = #tpu.pipeline_mode<synchronous>, transform_indices = @transform_18, window_bounds = array<i64: 1, 32>}, {pipeline_mode = #tpu.pipeline_mode<synchronous>, transform_indices = @transform_19, window_bounds = array<i64: 1, 32>}, {pipeline_mode = #tpu.pipeline_mode<synchronous>, transform_indices = @transform_20, window_bounds = array<i64: 1, 32>}, {pipeline_mode = #tpu.pipeline_mode<synchronous>, transform_indices = @transform_21, window_bounds = array<i64: 96, 32>}, {pipeline_mode = #tpu.pipeline_mode<synchronous>, transform_indices = @transform_22, window_bounds = array<i64: 1, 96>}, {pipeline_mode = #tpu.pipeline_mode<synchronous>, transform_indices = @transform_23, window_bounds = array<i64: 32, 32>}, {pipeline_mode = #tpu.pipeline_mode<synchronous>, transform_indices = @transform_24, window_bounds = array<i64: 1, 32>}, {pipeline_mode = #tpu.pipeline_mode<synchronous>, transform_indices = @transform_25, window_bounds = array<i64: 1, 32>}, {pipeline_mode = #tpu.pipeline_mode<synchronous>, transform_indices = @transform_26, window_bounds = array<i64: 1, 32>}, {pipeline_mode = #tpu.pipeline_mode<synchronous>, transform_indices = @transform_27, window_bounds = array<i64: 128, 32>}, {pipeline_mode = #tpu.pipeline_mode<synchronous>, transform_indices = @transform_28, window_bounds = array<i64: 1, 128>}, {pipeline_mode = #tpu.pipeline_mode<synchronous>, transform_indices = @transform_29, window_bounds = array<i64: 32, 128>}, {pipeline_mode = #tpu.pipeline_mode<synchronous>, transform_indices = @transform_30, window_bounds = array<i64: 1, 32>}, {pipeline_mode = #tpu.pipeline_mode<synchronous>, transform_indices = @transform_31, window_bounds = array<i64: 1, 32>}, {pipeline_mode = #tpu.pipeline_mode<synchronous>, transform_indices = @transform_32, window_bounds = array<i64: 1, 32>}, {pipeline_mode = #tpu.pipeline_mode<synchronous>, transform_indices = @transform_33, window_bounds = array<i64: 128, 32>}, {transform_indices = @transform_34, window_bounds = array<i64: 1, 2, 128>}]} {
    %c0 = arith.constant 0 : index
    %c0_0 = arith.constant 0 : index
    %0 = vector.load %arg32[%c0, %c0_0] : memref<1x32xf32, #tpu.memory_space<vmem>>, vector<1x32xf32>
    %c0_1 = arith.constant 0 : index
    %c0_2 = arith.constant 0 : index
    %1 = vector.load %arg33[%c0_1, %c0_2] : memref<1x32xf32, #tpu.memory_space<vmem>>, vector<1x32xf32>
    %c0_3 = arith.constant 0 : index
    %c0_4 = arith.constant 0 : index
    %2 = vector.load %arg34[%c0_3, %c0_4] : memref<128x32xf32, #tpu.memory_space<vmem>>, vector<128x32xf32>
    %c0_5 = arith.constant 0 : index
    %c0_6 = arith.constant 0 : index
    %3 = vector.load %arg1[%c0_5, %c0_6] : memref<32x48xf32, #tpu.memory_space<vmem>>, vector<32x48xf32>
    %c0_7 = arith.constant 0 : index
    %c0_8 = arith.constant 0 : index
    %4 = vector.load %arg2[%c0_7, %c0_8] : memref<32x48xf32, #tpu.memory_space<vmem>>, vector<32x48xf32>
    %cst = arith.constant dense<0.000000e+00> : vector<32x32xf32>
    %5 = tpu.matmul %3, %4, %cst {dimension_numbers = #tpu.dot_dimension_numbers<[1], [1], [0], [0], [0, 0, 1, 0], [], []>} : vector<32x48xf32>, vector<32x48xf32>, vector<32x32xf32> -> vector<32x32xf32>
    %c0_9 = arith.constant 0 : index
    %c0_10 = arith.constant 0 : index
    %6 = vector.load %arg3[%c0_9, %c0_10] : memref<1x32xf32, #tpu.memory_space<vmem>>, vector<1x32xf32>
    %7 = vector.broadcast %6 : vector<1x32xf32> to vector<32x32xf32>
    %8 = arith.addf %5, %7 : vector<32x32xf32>
    %c0_11 = arith.constant 0 : index
    %c0_12 = arith.constant 0 : index
    %9 = vector.load %arg4[%c0_11, %c0_12] : memref<1x32xf32, #tpu.memory_space<vmem>>, vector<1x32xf32>
    %c0_13 = arith.constant 0 : index
    %c0_14 = arith.constant 0 : index
    %10 = vector.load %arg5[%c0_13, %c0_14] : memref<24x32xf32, #tpu.memory_space<vmem>>, vector<24x32xf32>
    %cst_15 = arith.constant 0.000000e+00 : f32
    %11 = vector.broadcast %cst_15 : f32 to vector<7x32xf32>
    %12 = vector.extract_strided_slice %8 {offsets = [0, 0], sizes = [16, 32], strides = [1, 1]} : vector<32x32xf32> to vector<16x32xf32>
    %13 = tpu.concatenate %9, %12, %11 in 0 : vector<1x32xf32>, vector<16x32xf32>, vector<7x32xf32> -> vector<24x32xf32>
    %14 = arith.addf %13, %10 : vector<24x32xf32>
    %15 = vector.extract_strided_slice %8 {offsets = [16, 0], sizes = [16, 32], strides = [1, 1]} : vector<32x32xf32> to vector<16x32xf32>
    %16 = tpu.concatenate %9, %15, %11 in 0 : vector<1x32xf32>, vector<16x32xf32>, vector<7x32xf32> -> vector<24x32xf32>
    %17 = arith.addf %16, %10 : vector<24x32xf32>
    %18 = tpu.concatenate %14, %17 in 0 : vector<24x32xf32>, vector<24x32xf32> -> vector<48x32xf32>
    %c0_16 = arith.constant 0 : index
    %c0_17 = arith.constant 0 : index
    %19 = vector.load %arg7[%c0_16, %c0_17] : memref<48x48xf32, #tpu.memory_space<vmem>>, vector<48x48xf32>
    %c0_18 = arith.constant 0 : index
    %c0_19 = arith.constant 0 : index
    %20 = vector.load %arg6[%c0_18, %c0_19] : memref<96x32xf32, #tpu.memory_space<vmem>>, vector<96x32xf32>
    %c0_20 = arith.constant 0 : index
    %c0_21 = arith.constant 0 : index
    %21 = vector.load %arg8[%c0_20, %c0_21] : memref<1x32xf32, #tpu.memory_space<vmem>>, vector<1x32xf32>
    %c0_22 = arith.constant 0 : index
    %c0_23 = arith.constant 0 : index
    %22 = vector.load %arg9[%c0_22, %c0_23] : memref<1x32xf32, #tpu.memory_space<vmem>>, vector<1x32xf32>
    %c0_24 = arith.constant 0 : index
    %c0_25 = arith.constant 0 : index
    %23 = vector.load %arg10[%c0_24, %c0_25] : memref<96x32xf32, #tpu.memory_space<vmem>>, vector<96x32xf32>
    %c0_26 = arith.constant 0 : index
    %c0_27 = arith.constant 0 : index
    %24 = vector.load %arg11[%c0_26, %c0_27] : memref<1x96xf32, #tpu.memory_space<vmem>>, vector<1x96xf32>
    %c0_28 = arith.constant 0 : index
    %c0_29 = arith.constant 0 : index
    %25 = vector.load %arg12[%c0_28, %c0_29] : memref<32x32xf32, #tpu.memory_space<vmem>>, vector<32x32xf32>
    %c0_30 = arith.constant 0 : index
    %c0_31 = arith.constant 0 : index
    %26 = vector.load %arg13[%c0_30, %c0_31] : memref<1x32xf32, #tpu.memory_space<vmem>>, vector<1x32xf32>
    %c0_32 = arith.constant 0 : index
    %c0_33 = arith.constant 0 : index
    %27 = vector.load %arg14[%c0_32, %c0_33] : memref<1x32xf32, #tpu.memory_space<vmem>>, vector<1x32xf32>
    %c0_34 = arith.constant 0 : index
    %c0_35 = arith.constant 0 : index
    %28 = vector.load %arg15[%c0_34, %c0_35] : memref<1x32xf32, #tpu.memory_space<vmem>>, vector<1x32xf32>
    %c0_36 = arith.constant 0 : index
    %c0_37 = arith.constant 0 : index
    %29 = vector.load %arg16[%c0_36, %c0_37] : memref<128x32xf32, #tpu.memory_space<vmem>>, vector<128x32xf32>
    %c0_38 = arith.constant 0 : index
    %c0_39 = arith.constant 0 : index
    %30 = vector.load %arg17[%c0_38, %c0_39] : memref<1x128xf32, #tpu.memory_space<vmem>>, vector<1x128xf32>
    %c0_40 = arith.constant 0 : index
    %c0_41 = arith.constant 0 : index
    %31 = vector.load %arg18[%c0_40, %c0_41] : memref<32x128xf32, #tpu.memory_space<vmem>>, vector<32x128xf32>
    %c0_42 = arith.constant 0 : index
    %c0_43 = arith.constant 0 : index
    %32 = vector.load %arg19[%c0_42, %c0_43] : memref<1x32xf32, #tpu.memory_space<vmem>>, vector<1x32xf32>
    %cst_44 = arith.constant dense<0.000000e+00> : vector<48xf32>
    %33 = vector.multi_reduction <add>, %18, %cst_44 [1] : vector<48x32xf32> to vector<48xf32>
    %34 = vector.shape_cast %33 : vector<48xf32> to vector<48x1xf32>
    %cst_45 = arith.constant 3.200000e+01 : f32
    %35 = vector.broadcast %cst_45 : f32 to vector<48x1xf32>
    %36 = arith.divf %34, %35 : vector<48x1xf32>
    %37 = vector.broadcast %36 : vector<48x1xf32> to vector<48x32xf32>
    %38 = arith.subf %18, %37 : vector<48x32xf32>
    %39 = arith.mulf %38, %38 : vector<48x32xf32>
    %cst_46 = arith.constant dense<0.000000e+00> : vector<48xf32>
    %40 = vector.multi_reduction <add>, %39, %cst_46 [1] : vector<48x32xf32> to vector<48xf32>
    %41 = vector.shape_cast %40 : vector<48xf32> to vector<48x1xf32>
    %cst_47 = arith.constant 3.200000e+01 : f32
    %42 = vector.broadcast %cst_47 : f32 to vector<48x1xf32>
    %43 = arith.divf %41, %42 : vector<48x1xf32>
    %44 = vector.broadcast %36 : vector<48x1xf32> to vector<48x32xf32>
    %45 = arith.subf %18, %44 : vector<48x32xf32>
    %cst_48 = arith.constant 9.99999997E-7 : f32
    %46 = vector.broadcast %cst_48 : f32 to vector<48x1xf32>
    %47 = arith.addf %43, %46 : vector<48x1xf32>
    %48 = math.rsqrt %47 : vector<48x1xf32>
    %49 = vector.broadcast %48 : vector<48x1xf32> to vector<48x32xf32>
    %50 = arith.mulf %45, %49 : vector<48x32xf32>
    %51 = vector.broadcast %21 : vector<1x32xf32> to vector<48x32xf32>
    %52 = arith.mulf %50, %51 : vector<48x32xf32>
    %53 = vector.broadcast %22 : vector<1x32xf32> to vector<48x32xf32>
    %54 = arith.addf %52, %53 : vector<48x32xf32>
    %cst_49 = arith.constant 1.000000e+00 : f32
    %55 = vector.broadcast %cst_49 : f32 to vector<96x32xf32>
    %56 = arith.mulf %55, %20 : vector<96x32xf32>
    %57 = arith.addf %23, %56 : vector<96x32xf32>
    %cst_50 = arith.constant dense<0.000000e+00> : vector<48x96xf32>
    %58 = tpu.matmul %54, %57, %cst_50 {dimension_numbers = #tpu.dot_dimension_numbers<[1], [1], [0], [0], [0, 0, 1, 0], [], []>} : vector<48x32xf32>, vector<96x32xf32>, vector<48x96xf32> -> vector<48x96xf32>
    %59 = vector.broadcast %24 : vector<1x96xf32> to vector<48x96xf32>
    %60 = arith.addf %58, %59 : vector<48x96xf32>
    %61 = vector.extract_strided_slice %60 {offsets = [0, 0], sizes = [48, 32], strides = [1, 1]} : vector<48x96xf32> to vector<48x32xf32>
    %62 = vector.extract_strided_slice %60 {offsets = [0, 32], sizes = [48, 32], strides = [1, 1]} : vector<48x96xf32> to vector<48x32xf32>
    %63 = vector.extract_strided_slice %60 {offsets = [0, 64], sizes = [48, 32], strides = [1, 1]} : vector<48x96xf32> to vector<48x32xf32>
    %64 = vector.extract_strided_slice %61 {offsets = [0, 0], sizes = [48, 8], strides = [1, 1]} : vector<48x32xf32> to vector<48x8xf32>
    %65 = vector.extract_strided_slice %62 {offsets = [0, 0], sizes = [48, 8], strides = [1, 1]} : vector<48x32xf32> to vector<48x8xf32>
    %cst_51 = arith.constant dense<0.000000e+00> : vector<48x48xf32>
    %66 = tpu.matmul %64, %65, %cst_51 {dimension_numbers = #tpu.dot_dimension_numbers<[1], [1], [0], [0], [0, 0, 1, 0], [], []>} : vector<48x8xf32>, vector<48x8xf32>, vector<48x48xf32> -> vector<48x48xf32>
    %cst_52 = arith.constant 0.353553385 : f32
    %67 = vector.broadcast %cst_52 : f32 to vector<48x48xf32>
    %68 = arith.mulf %66, %67 : vector<48x48xf32>
    %69 = arith.addf %68, %19 : vector<48x48xf32>
    %cst_53 = arith.constant dense<0xFF800000> : vector<48xf32>
    %70 = vector.multi_reduction <maximumf>, %69, %cst_53 [1] : vector<48x48xf32> to vector<48xf32>
    %71 = vector.shape_cast %70 : vector<48xf32> to vector<48x1xf32>
    %72 = vector.broadcast %71 : vector<48x1xf32> to vector<48x48xf32>
    %73 = arith.subf %69, %72 : vector<48x48xf32>
    %74 = math.exp %73 : vector<48x48xf32>
    %cst_54 = arith.constant dense<0.000000e+00> : vector<48xf32>
    %75 = vector.multi_reduction <add>, %74, %cst_54 [1] : vector<48x48xf32> to vector<48xf32>
    %76 = vector.shape_cast %75 : vector<48xf32> to vector<48x1xf32>
    %77 = tpu.reciprocal %76 {approx = true} : vector<48x1xf32> -> vector<48x1xf32>
    %78 = vector.broadcast %77 : vector<48x1xf32> to vector<48x48xf32>
    %79 = arith.mulf %74, %78 : vector<48x48xf32>
    %80 = vector.extract_strided_slice %63 {offsets = [0, 0], sizes = [48, 8], strides = [1, 1]} : vector<48x32xf32> to vector<48x8xf32>
    %cst_55 = arith.constant dense<0.000000e+00> : vector<48x8xf32>
    %81 = tpu.matmul %79, %80, %cst_55 {dimension_numbers = #tpu.dot_dimension_numbers<[1], [0], [0], [1], [0, 0, 1, 1], [], []>} : vector<48x48xf32>, vector<48x8xf32>, vector<48x8xf32> -> vector<48x8xf32>
    %82 = vector.extract_strided_slice %61 {offsets = [0, 8], sizes = [48, 8], strides = [1, 1]} : vector<48x32xf32> to vector<48x8xf32>
    %83 = vector.extract_strided_slice %62 {offsets = [0, 8], sizes = [48, 8], strides = [1, 1]} : vector<48x32xf32> to vector<48x8xf32>
    %cst_56 = arith.constant dense<0.000000e+00> : vector<48x48xf32>
    %84 = tpu.matmul %82, %83, %cst_56 {dimension_numbers = #tpu.dot_dimension_numbers<[1], [1], [0], [0], [0, 0, 1, 0], [], []>} : vector<48x8xf32>, vector<48x8xf32>, vector<48x48xf32> -> vector<48x48xf32>
    %cst_57 = arith.constant 0.353553385 : f32
    %85 = vector.broadcast %cst_57 : f32 to vector<48x48xf32>
    %86 = arith.mulf %84, %85 : vector<48x48xf32>
    %87 = arith.addf %86, %19 : vector<48x48xf32>
    %cst_58 = arith.constant dense<0xFF800000> : vector<48xf32>
    %88 = vector.multi_reduction <maximumf>, %87, %cst_58 [1] : vector<48x48xf32> to vector<48xf32>
    %89 = vector.shape_cast %88 : vector<48xf32> to vector<48x1xf32>
    %90 = vector.broadcast %89 : vector<48x1xf32> to vector<48x48xf32>
    %91 = arith.subf %87, %90 : vector<48x48xf32>
    %92 = math.exp %91 : vector<48x48xf32>
    %cst_59 = arith.constant dense<0.000000e+00> : vector<48xf32>
    %93 = vector.multi_reduction <add>, %92, %cst_59 [1] : vector<48x48xf32> to vector<48xf32>
    %94 = vector.shape_cast %93 : vector<48xf32> to vector<48x1xf32>
    %95 = tpu.reciprocal %94 {approx = true} : vector<48x1xf32> -> vector<48x1xf32>
    %96 = vector.broadcast %95 : vector<48x1xf32> to vector<48x48xf32>
    %97 = arith.mulf %92, %96 : vector<48x48xf32>
    %98 = vector.extract_strided_slice %63 {offsets = [0, 8], sizes = [48, 8], strides = [1, 1]} : vector<48x32xf32> to vector<48x8xf32>
    %cst_60 = arith.constant dense<0.000000e+00> : vector<48x8xf32>
    %99 = tpu.matmul %97, %98, %cst_60 {dimension_numbers = #tpu.dot_dimension_numbers<[1], [0], [0], [1], [0, 0, 1, 1], [], []>} : vector<48x48xf32>, vector<48x8xf32>, vector<48x8xf32> -> vector<48x8xf32>
    %100 = vector.extract_strided_slice %61 {offsets = [0, 16], sizes = [48, 8], strides = [1, 1]} : vector<48x32xf32> to vector<48x8xf32>
    %101 = vector.extract_strided_slice %62 {offsets = [0, 16], sizes = [48, 8], strides = [1, 1]} : vector<48x32xf32> to vector<48x8xf32>
    %cst_61 = arith.constant dense<0.000000e+00> : vector<48x48xf32>
    %102 = tpu.matmul %100, %101, %cst_61 {dimension_numbers = #tpu.dot_dimension_numbers<[1], [1], [0], [0], [0, 0, 1, 0], [], []>} : vector<48x8xf32>, vector<48x8xf32>, vector<48x48xf32> -> vector<48x48xf32>
    %cst_62 = arith.constant 0.353553385 : f32
    %103 = vector.broadcast %cst_62 : f32 to vector<48x48xf32>
    %104 = arith.mulf %102, %103 : vector<48x48xf32>
    %105 = arith.addf %104, %19 : vector<48x48xf32>
    %cst_63 = arith.constant dense<0xFF800000> : vector<48xf32>
    %106 = vector.multi_reduction <maximumf>, %105, %cst_63 [1] : vector<48x48xf32> to vector<48xf32>
    %107 = vector.shape_cast %106 : vector<48xf32> to vector<48x1xf32>
    %108 = vector.broadcast %107 : vector<48x1xf32> to vector<48x48xf32>
    %109 = arith.subf %105, %108 : vector<48x48xf32>
    %110 = math.exp %109 : vector<48x48xf32>
    %cst_64 = arith.constant dense<0.000000e+00> : vector<48xf32>
    %111 = vector.multi_reduction <add>, %110, %cst_64 [1] : vector<48x48xf32> to vector<48xf32>
    %112 = vector.shape_cast %111 : vector<48xf32> to vector<48x1xf32>
    %113 = tpu.reciprocal %112 {approx = true} : vector<48x1xf32> -> vector<48x1xf32>
    %114 = vector.broadcast %113 : vector<48x1xf32> to vector<48x48xf32>
    %115 = arith.mulf %110, %114 : vector<48x48xf32>
    %116 = vector.extract_strided_slice %63 {offsets = [0, 16], sizes = [48, 8], strides = [1, 1]} : vector<48x32xf32> to vector<48x8xf32>
    %cst_65 = arith.constant dense<0.000000e+00> : vector<48x8xf32>
    %117 = tpu.matmul %115, %116, %cst_65 {dimension_numbers = #tpu.dot_dimension_numbers<[1], [0], [0], [1], [0, 0, 1, 1], [], []>} : vector<48x48xf32>, vector<48x8xf32>, vector<48x8xf32> -> vector<48x8xf32>
    %118 = vector.extract_strided_slice %61 {offsets = [0, 24], sizes = [48, 8], strides = [1, 1]} : vector<48x32xf32> to vector<48x8xf32>
    %119 = vector.extract_strided_slice %62 {offsets = [0, 24], sizes = [48, 8], strides = [1, 1]} : vector<48x32xf32> to vector<48x8xf32>
    %cst_66 = arith.constant dense<0.000000e+00> : vector<48x48xf32>
    %120 = tpu.matmul %118, %119, %cst_66 {dimension_numbers = #tpu.dot_dimension_numbers<[1], [1], [0], [0], [0, 0, 1, 0], [], []>} : vector<48x8xf32>, vector<48x8xf32>, vector<48x48xf32> -> vector<48x48xf32>
    %cst_67 = arith.constant 0.353553385 : f32
    %121 = vector.broadcast %cst_67 : f32 to vector<48x48xf32>
    %122 = arith.mulf %120, %121 : vector<48x48xf32>
    %123 = arith.addf %122, %19 : vector<48x48xf32>
    %cst_68 = arith.constant dense<0xFF800000> : vector<48xf32>
    %124 = vector.multi_reduction <maximumf>, %123, %cst_68 [1] : vector<48x48xf32> to vector<48xf32>
    %125 = vector.shape_cast %124 : vector<48xf32> to vector<48x1xf32>
    %126 = vector.broadcast %125 : vector<48x1xf32> to vector<48x48xf32>
    %127 = arith.subf %123, %126 : vector<48x48xf32>
    %128 = math.exp %127 : vector<48x48xf32>
    %cst_69 = arith.constant dense<0.000000e+00> : vector<48xf32>
    %129 = vector.multi_reduction <add>, %128, %cst_69 [1] : vector<48x48xf32> to vector<48xf32>
    %130 = vector.shape_cast %129 : vector<48xf32> to vector<48x1xf32>
    %131 = tpu.reciprocal %130 {approx = true} : vector<48x1xf32> -> vector<48x1xf32>
    %132 = vector.broadcast %131 : vector<48x1xf32> to vector<48x48xf32>
    %133 = arith.mulf %128, %132 : vector<48x48xf32>
    %134 = vector.extract_strided_slice %63 {offsets = [0, 24], sizes = [48, 8], strides = [1, 1]} : vector<48x32xf32> to vector<48x8xf32>
    %cst_70 = arith.constant dense<0.000000e+00> : vector<48x8xf32>
    %135 = tpu.matmul %133, %134, %cst_70 {dimension_numbers = #tpu.dot_dimension_numbers<[1], [0], [0], [1], [0, 0, 1, 1], [], []>} : vector<48x48xf32>, vector<48x8xf32>, vector<48x8xf32> -> vector<48x8xf32>
    %136 = tpu.concatenate %81, %99, %117, %135 in 1 : vector<48x8xf32>, vector<48x8xf32>, vector<48x8xf32>, vector<48x8xf32> -> vector<48x32xf32>
    %cst_71 = arith.constant dense<0.000000e+00> : vector<48x32xf32>
    %137 = tpu.matmul %136, %25, %cst_71 {dimension_numbers = #tpu.dot_dimension_numbers<[1], [1], [0], [0], [0, 0, 1, 0], [], []>} : vector<48x32xf32>, vector<32x32xf32>, vector<48x32xf32> -> vector<48x32xf32>
    %138 = arith.addf %18, %137 : vector<48x32xf32>
    %139 = vector.broadcast %26 : vector<1x32xf32> to vector<48x32xf32>
    %140 = arith.addf %138, %139 : vector<48x32xf32>
    %cst_72 = arith.constant dense<0.000000e+00> : vector<48xf32>
    %141 = vector.multi_reduction <add>, %140, %cst_72 [1] : vector<48x32xf32> to vector<48xf32>
    %142 = vector.shape_cast %141 : vector<48xf32> to vector<48x1xf32>
    %cst_73 = arith.constant 3.200000e+01 : f32
    %143 = vector.broadcast %cst_73 : f32 to vector<48x1xf32>
    %144 = arith.divf %142, %143 : vector<48x1xf32>
    %145 = vector.broadcast %144 : vector<48x1xf32> to vector<48x32xf32>
    %146 = arith.subf %140, %145 : vector<48x32xf32>
    %147 = arith.mulf %146, %146 : vector<48x32xf32>
    %cst_74 = arith.constant dense<0.000000e+00> : vector<48xf32>
    %148 = vector.multi_reduction <add>, %147, %cst_74 [1] : vector<48x32xf32> to vector<48xf32>
    %149 = vector.shape_cast %148 : vector<48xf32> to vector<48x1xf32>
    %cst_75 = arith.constant 3.200000e+01 : f32
    %150 = vector.broadcast %cst_75 : f32 to vector<48x1xf32>
    %151 = arith.divf %149, %150 : vector<48x1xf32>
    %152 = vector.broadcast %144 : vector<48x1xf32> to vector<48x32xf32>
    %153 = arith.subf %140, %152 : vector<48x32xf32>
    %cst_76 = arith.constant 9.99999997E-7 : f32
    %154 = vector.broadcast %cst_76 : f32 to vector<48x1xf32>
    %155 = arith.addf %151, %154 : vector<48x1xf32>
    %156 = math.rsqrt %155 : vector<48x1xf32>
    %157 = vector.broadcast %156 : vector<48x1xf32> to vector<48x32xf32>
    %158 = arith.mulf %153, %157 : vector<48x32xf32>
    %159 = vector.broadcast %27 : vector<1x32xf32> to vector<48x32xf32>
    %160 = arith.mulf %158, %159 : vector<48x32xf32>
    %161 = vector.broadcast %28 : vector<1x32xf32> to vector<48x32xf32>
    %162 = arith.addf %160, %161 : vector<48x32xf32>
    %cst_77 = arith.constant dense<0.000000e+00> : vector<48x128xf32>
    %163 = tpu.matmul %162, %29, %cst_77 {dimension_numbers = #tpu.dot_dimension_numbers<[1], [1], [0], [0], [0, 0, 1, 0], [], []>} : vector<48x32xf32>, vector<128x32xf32>, vector<48x128xf32> -> vector<48x128xf32>
    %164 = vector.broadcast %30 : vector<1x128xf32> to vector<48x128xf32>
    %165 = arith.addf %163, %164 : vector<48x128xf32>
    %cst_78 = arith.constant 5.000000e-01 : f32
    %166 = vector.broadcast %cst_78 : f32 to vector<48x128xf32>
    %167 = arith.mulf %166, %165 : vector<48x128xf32>
    %cst_79 = arith.constant 0.707106769 : f32
    %168 = vector.broadcast %cst_79 : f32 to vector<48x128xf32>
    %169 = arith.mulf %165, %168 : vector<48x128xf32>
    %cst_80 = arith.constant 0.000000e+00 : f32
    %170 = vector.broadcast %cst_80 : f32 to vector<48x128xf32>
    %171 = arith.cmpf olt, %169, %170 : vector<48x128xf32>
    %cst_81 = arith.constant -1.000000e+00 : f32
    %cst_82 = arith.constant 1.000000e+00 : f32
    %172 = vector.broadcast %cst_81 : f32 to vector<48x128xf32>
    %173 = vector.broadcast %cst_82 : f32 to vector<48x128xf32>
    %174 = arith.select %171, %172, %173 : vector<48x128xi1>, vector<48x128xf32>
    %175 = math.absf %169 : vector<48x128xf32>
    %cst_83 = arith.constant 0.327591091 : f32
    %176 = vector.broadcast %cst_83 : f32 to vector<48x128xf32>
    %177 = arith.mulf %176, %175 : vector<48x128xf32>
    %cst_84 = arith.constant 1.000000e+00 : f32
    %178 = vector.broadcast %cst_84 : f32 to vector<48x128xf32>
    %179 = arith.addf %178, %177 : vector<48x128xf32>
    %cst_85 = arith.constant 1.000000e+00 : f32
    %180 = vector.broadcast %cst_85 : f32 to vector<48x128xf32>
    %181 = arith.divf %180, %179 : vector<48x128xf32>
    %cst_86 = arith.constant 1.06140542 : f32
    %182 = vector.broadcast %cst_86 : f32 to vector<48x128xf32>
    %183 = arith.mulf %182, %181 : vector<48x128xf32>
    %cst_87 = arith.constant -1.45315206 : f32
    %184 = vector.broadcast %cst_87 : f32 to vector<48x128xf32>
    %185 = arith.addf %183, %184 : vector<48x128xf32>
    %186 = arith.mulf %185, %181 : vector<48x128xf32>
    %cst_88 = arith.constant 1.42141378 : f32
    %187 = vector.broadcast %cst_88 : f32 to vector<48x128xf32>
    %188 = arith.addf %186, %187 : vector<48x128xf32>
    %189 = arith.mulf %188, %181 : vector<48x128xf32>
    %cst_89 = arith.constant -0.284496725 : f32
    %190 = vector.broadcast %cst_89 : f32 to vector<48x128xf32>
    %191 = arith.addf %189, %190 : vector<48x128xf32>
    %192 = arith.mulf %191, %181 : vector<48x128xf32>
    %cst_90 = arith.constant 0.254829586 : f32
    %193 = vector.broadcast %cst_90 : f32 to vector<48x128xf32>
    %194 = arith.addf %192, %193 : vector<48x128xf32>
    %195 = arith.mulf %194, %181 : vector<48x128xf32>
    %cst_91 = arith.constant 0.000000e+00 : f32
    %196 = vector.broadcast %cst_91 : f32 to vector<48x128xf32>
    %197 = arith.subf %196, %175 : vector<48x128xf32>
    %198 = arith.mulf %197, %175 : vector<48x128xf32>
    %199 = math.exp %198 : vector<48x128xf32>
    %200 = arith.mulf %195, %199 : vector<48x128xf32>
    %cst_92 = arith.constant 1.000000e+00 : f32
    %201 = vector.broadcast %cst_92 : f32 to vector<48x128xf32>
    %202 = arith.subf %201, %200 : vector<48x128xf32>
    %203 = arith.mulf %174, %202 : vector<48x128xf32>
    %cst_93 = arith.constant 1.000000e+00 : f32
    %204 = vector.broadcast %cst_93 : f32 to vector<48x128xf32>
    %205 = arith.addf %204, %203 : vector<48x128xf32>
    %206 = arith.mulf %167, %205 : vector<48x128xf32>
    %cst_94 = arith.constant dense<0.000000e+00> : vector<48x32xf32>
    %207 = tpu.matmul %206, %31, %cst_94 {dimension_numbers = #tpu.dot_dimension_numbers<[1], [1], [0], [0], [0, 0, 1, 0], [], []>} : vector<48x128xf32>, vector<32x128xf32>, vector<48x32xf32> -> vector<48x32xf32>
    %208 = arith.addf %140, %207 : vector<48x32xf32>
    %209 = vector.broadcast %32 : vector<1x32xf32> to vector<48x32xf32>
    %210 = arith.addf %208, %209 : vector<48x32xf32>
    %c0_95 = arith.constant 0 : index
    %c0_96 = arith.constant 0 : index
    %211 = vector.load %arg20[%c0_95, %c0_96] : memref<1x32xf32, #tpu.memory_space<vmem>>, vector<1x32xf32>
    %c0_97 = arith.constant 0 : index
    %c0_98 = arith.constant 0 : index
    %212 = vector.load %arg21[%c0_97, %c0_98] : memref<1x32xf32, #tpu.memory_space<vmem>>, vector<1x32xf32>
    %c0_99 = arith.constant 0 : index
    %c0_100 = arith.constant 0 : index
    %213 = vector.load %arg22[%c0_99, %c0_100] : memref<96x32xf32, #tpu.memory_space<vmem>>, vector<96x32xf32>
    %c0_101 = arith.constant 0 : index
    %c0_102 = arith.constant 0 : index
    %214 = vector.load %arg23[%c0_101, %c0_102] : memref<1x96xf32, #tpu.memory_space<vmem>>, vector<1x96xf32>
    %c0_103 = arith.constant 0 : index
    %c0_104 = arith.constant 0 : index
    %215 = vector.load %arg24[%c0_103, %c0_104] : memref<32x32xf32, #tpu.memory_space<vmem>>, vector<32x32xf32>
    %c0_105 = arith.constant 0 : index
    %c0_106 = arith.constant 0 : index
    %216 = vector.load %arg25[%c0_105, %c0_106] : memref<1x32xf32, #tpu.memory_space<vmem>>, vector<1x32xf32>
    %c0_107 = arith.constant 0 : index
    %c0_108 = arith.constant 0 : index
    %217 = vector.load %arg26[%c0_107, %c0_108] : memref<1x32xf32, #tpu.memory_space<vmem>>, vector<1x32xf32>
    %c0_109 = arith.constant 0 : index
    %c0_110 = arith.constant 0 : index
    %218 = vector.load %arg27[%c0_109, %c0_110] : memref<1x32xf32, #tpu.memory_space<vmem>>, vector<1x32xf32>
    %c0_111 = arith.constant 0 : index
    %c0_112 = arith.constant 0 : index
    %219 = vector.load %arg28[%c0_111, %c0_112] : memref<128x32xf32, #tpu.memory_space<vmem>>, vector<128x32xf32>
    %c0_113 = arith.constant 0 : index
    %c0_114 = arith.constant 0 : index
    %220 = vector.load %arg29[%c0_113, %c0_114] : memref<1x128xf32, #tpu.memory_space<vmem>>, vector<1x128xf32>
    %c0_115 = arith.constant 0 : index
    %c0_116 = arith.constant 0 : index
    %221 = vector.load %arg30[%c0_115, %c0_116] : memref<32x128xf32, #tpu.memory_space<vmem>>, vector<32x128xf32>
    %c0_117 = arith.constant 0 : index
    %c0_118 = arith.constant 0 : index
    %222 = vector.load %arg31[%c0_117, %c0_118] : memref<1x32xf32, #tpu.memory_space<vmem>>, vector<1x32xf32>
    %cst_119 = arith.constant dense<0.000000e+00> : vector<48xf32>
    %223 = vector.multi_reduction <add>, %210, %cst_119 [1] : vector<48x32xf32> to vector<48xf32>
    %224 = vector.shape_cast %223 : vector<48xf32> to vector<48x1xf32>
    %cst_120 = arith.constant 3.200000e+01 : f32
    %225 = vector.broadcast %cst_120 : f32 to vector<48x1xf32>
    %226 = arith.divf %224, %225 : vector<48x1xf32>
    %227 = vector.broadcast %226 : vector<48x1xf32> to vector<48x32xf32>
    %228 = arith.subf %210, %227 : vector<48x32xf32>
    %229 = arith.mulf %228, %228 : vector<48x32xf32>
    %cst_121 = arith.constant dense<0.000000e+00> : vector<48xf32>
    %230 = vector.multi_reduction <add>, %229, %cst_121 [1] : vector<48x32xf32> to vector<48xf32>
    %231 = vector.shape_cast %230 : vector<48xf32> to vector<48x1xf32>
    %cst_122 = arith.constant 3.200000e+01 : f32
    %232 = vector.broadcast %cst_122 : f32 to vector<48x1xf32>
    %233 = arith.divf %231, %232 : vector<48x1xf32>
    %234 = vector.broadcast %226 : vector<48x1xf32> to vector<48x32xf32>
    %235 = arith.subf %210, %234 : vector<48x32xf32>
    %cst_123 = arith.constant 9.99999997E-7 : f32
    %236 = vector.broadcast %cst_123 : f32 to vector<48x1xf32>
    %237 = arith.addf %233, %236 : vector<48x1xf32>
    %238 = math.rsqrt %237 : vector<48x1xf32>
    %239 = vector.broadcast %238 : vector<48x1xf32> to vector<48x32xf32>
    %240 = arith.mulf %235, %239 : vector<48x32xf32>
    %241 = vector.broadcast %211 : vector<1x32xf32> to vector<48x32xf32>
    %242 = arith.mulf %240, %241 : vector<48x32xf32>
    %243 = vector.broadcast %212 : vector<1x32xf32> to vector<48x32xf32>
    %244 = arith.addf %242, %243 : vector<48x32xf32>
    %cst_124 = arith.constant 1.000000e+00 : f32
    %245 = vector.broadcast %cst_124 : f32 to vector<96x32xf32>
    %246 = arith.mulf %245, %20 : vector<96x32xf32>
    %247 = arith.addf %213, %246 : vector<96x32xf32>
    %cst_125 = arith.constant dense<0.000000e+00> : vector<48x96xf32>
    %248 = tpu.matmul %244, %247, %cst_125 {dimension_numbers = #tpu.dot_dimension_numbers<[1], [1], [0], [0], [0, 0, 1, 0], [], []>} : vector<48x32xf32>, vector<96x32xf32>, vector<48x96xf32> -> vector<48x96xf32>
    %249 = vector.broadcast %214 : vector<1x96xf32> to vector<48x96xf32>
    %250 = arith.addf %248, %249 : vector<48x96xf32>
    %251 = vector.extract_strided_slice %250 {offsets = [0, 0], sizes = [48, 32], strides = [1, 1]} : vector<48x96xf32> to vector<48x32xf32>
    %252 = vector.extract_strided_slice %250 {offsets = [0, 32], sizes = [48, 32], strides = [1, 1]} : vector<48x96xf32> to vector<48x32xf32>
    %253 = vector.extract_strided_slice %250 {offsets = [0, 64], sizes = [48, 32], strides = [1, 1]} : vector<48x96xf32> to vector<48x32xf32>
    %254 = vector.extract_strided_slice %251 {offsets = [0, 0], sizes = [48, 8], strides = [1, 1]} : vector<48x32xf32> to vector<48x8xf32>
    %255 = vector.extract_strided_slice %252 {offsets = [0, 0], sizes = [48, 8], strides = [1, 1]} : vector<48x32xf32> to vector<48x8xf32>
    %cst_126 = arith.constant dense<0.000000e+00> : vector<48x48xf32>
    %256 = tpu.matmul %254, %255, %cst_126 {dimension_numbers = #tpu.dot_dimension_numbers<[1], [1], [0], [0], [0, 0, 1, 0], [], []>} : vector<48x8xf32>, vector<48x8xf32>, vector<48x48xf32> -> vector<48x48xf32>
    %cst_127 = arith.constant 0.353553385 : f32
    %257 = vector.broadcast %cst_127 : f32 to vector<48x48xf32>
    %258 = arith.mulf %256, %257 : vector<48x48xf32>
    %259 = arith.addf %258, %19 : vector<48x48xf32>
    %cst_128 = arith.constant dense<0xFF800000> : vector<48xf32>
    %260 = vector.multi_reduction <maximumf>, %259, %cst_128 [1] : vector<48x48xf32> to vector<48xf32>
    %261 = vector.shape_cast %260 : vector<48xf32> to vector<48x1xf32>
    %262 = vector.broadcast %261 : vector<48x1xf32> to vector<48x48xf32>
    %263 = arith.subf %259, %262 : vector<48x48xf32>
    %264 = math.exp %263 : vector<48x48xf32>
    %cst_129 = arith.constant dense<0.000000e+00> : vector<48xf32>
    %265 = vector.multi_reduction <add>, %264, %cst_129 [1] : vector<48x48xf32> to vector<48xf32>
    %266 = vector.shape_cast %265 : vector<48xf32> to vector<48x1xf32>
    %267 = tpu.reciprocal %266 {approx = true} : vector<48x1xf32> -> vector<48x1xf32>
    %268 = vector.broadcast %267 : vector<48x1xf32> to vector<48x48xf32>
    %269 = arith.mulf %264, %268 : vector<48x48xf32>
    %270 = vector.extract_strided_slice %253 {offsets = [0, 0], sizes = [48, 8], strides = [1, 1]} : vector<48x32xf32> to vector<48x8xf32>
    %cst_130 = arith.constant dense<0.000000e+00> : vector<48x8xf32>
    %271 = tpu.matmul %269, %270, %cst_130 {dimension_numbers = #tpu.dot_dimension_numbers<[1], [0], [0], [1], [0, 0, 1, 1], [], []>} : vector<48x48xf32>, vector<48x8xf32>, vector<48x8xf32> -> vector<48x8xf32>
    %272 = vector.extract_strided_slice %251 {offsets = [0, 8], sizes = [48, 8], strides = [1, 1]} : vector<48x32xf32> to vector<48x8xf32>
    %273 = vector.extract_strided_slice %252 {offsets = [0, 8], sizes = [48, 8], strides = [1, 1]} : vector<48x32xf32> to vector<48x8xf32>
    %cst_131 = arith.constant dense<0.000000e+00> : vector<48x48xf32>
    %274 = tpu.matmul %272, %273, %cst_131 {dimension_numbers = #tpu.dot_dimension_numbers<[1], [1], [0], [0], [0, 0, 1, 0], [], []>} : vector<48x8xf32>, vector<48x8xf32>, vector<48x48xf32> -> vector<48x48xf32>
    %cst_132 = arith.constant 0.353553385 : f32
    %275 = vector.broadcast %cst_132 : f32 to vector<48x48xf32>
    %276 = arith.mulf %274, %275 : vector<48x48xf32>
    %277 = arith.addf %276, %19 : vector<48x48xf32>
    %cst_133 = arith.constant dense<0xFF800000> : vector<48xf32>
    %278 = vector.multi_reduction <maximumf>, %277, %cst_133 [1] : vector<48x48xf32> to vector<48xf32>
    %279 = vector.shape_cast %278 : vector<48xf32> to vector<48x1xf32>
    %280 = vector.broadcast %279 : vector<48x1xf32> to vector<48x48xf32>
    %281 = arith.subf %277, %280 : vector<48x48xf32>
    %282 = math.exp %281 : vector<48x48xf32>
    %cst_134 = arith.constant dense<0.000000e+00> : vector<48xf32>
    %283 = vector.multi_reduction <add>, %282, %cst_134 [1] : vector<48x48xf32> to vector<48xf32>
    %284 = vector.shape_cast %283 : vector<48xf32> to vector<48x1xf32>
    %285 = tpu.reciprocal %284 {approx = true} : vector<48x1xf32> -> vector<48x1xf32>
    %286 = vector.broadcast %285 : vector<48x1xf32> to vector<48x48xf32>
    %287 = arith.mulf %282, %286 : vector<48x48xf32>
    %288 = vector.extract_strided_slice %253 {offsets = [0, 8], sizes = [48, 8], strides = [1, 1]} : vector<48x32xf32> to vector<48x8xf32>
    %cst_135 = arith.constant dense<0.000000e+00> : vector<48x8xf32>
    %289 = tpu.matmul %287, %288, %cst_135 {dimension_numbers = #tpu.dot_dimension_numbers<[1], [0], [0], [1], [0, 0, 1, 1], [], []>} : vector<48x48xf32>, vector<48x8xf32>, vector<48x8xf32> -> vector<48x8xf32>
    %290 = vector.extract_strided_slice %251 {offsets = [0, 16], sizes = [48, 8], strides = [1, 1]} : vector<48x32xf32> to vector<48x8xf32>
    %291 = vector.extract_strided_slice %252 {offsets = [0, 16], sizes = [48, 8], strides = [1, 1]} : vector<48x32xf32> to vector<48x8xf32>
    %cst_136 = arith.constant dense<0.000000e+00> : vector<48x48xf32>
    %292 = tpu.matmul %290, %291, %cst_136 {dimension_numbers = #tpu.dot_dimension_numbers<[1], [1], [0], [0], [0, 0, 1, 0], [], []>} : vector<48x8xf32>, vector<48x8xf32>, vector<48x48xf32> -> vector<48x48xf32>
    %cst_137 = arith.constant 0.353553385 : f32
    %293 = vector.broadcast %cst_137 : f32 to vector<48x48xf32>
    %294 = arith.mulf %292, %293 : vector<48x48xf32>
    %295 = arith.addf %294, %19 : vector<48x48xf32>
    %cst_138 = arith.constant dense<0xFF800000> : vector<48xf32>
    %296 = vector.multi_reduction <maximumf>, %295, %cst_138 [1] : vector<48x48xf32> to vector<48xf32>
    %297 = vector.shape_cast %296 : vector<48xf32> to vector<48x1xf32>
    %298 = vector.broadcast %297 : vector<48x1xf32> to vector<48x48xf32>
    %299 = arith.subf %295, %298 : vector<48x48xf32>
    %300 = math.exp %299 : vector<48x48xf32>
    %cst_139 = arith.constant dense<0.000000e+00> : vector<48xf32>
    %301 = vector.multi_reduction <add>, %300, %cst_139 [1] : vector<48x48xf32> to vector<48xf32>
    %302 = vector.shape_cast %301 : vector<48xf32> to vector<48x1xf32>
    %303 = tpu.reciprocal %302 {approx = true} : vector<48x1xf32> -> vector<48x1xf32>
    %304 = vector.broadcast %303 : vector<48x1xf32> to vector<48x48xf32>
    %305 = arith.mulf %300, %304 : vector<48x48xf32>
    %306 = vector.extract_strided_slice %253 {offsets = [0, 16], sizes = [48, 8], strides = [1, 1]} : vector<48x32xf32> to vector<48x8xf32>
    %cst_140 = arith.constant dense<0.000000e+00> : vector<48x8xf32>
    %307 = tpu.matmul %305, %306, %cst_140 {dimension_numbers = #tpu.dot_dimension_numbers<[1], [0], [0], [1], [0, 0, 1, 1], [], []>} : vector<48x48xf32>, vector<48x8xf32>, vector<48x8xf32> -> vector<48x8xf32>
    %308 = vector.extract_strided_slice %251 {offsets = [0, 24], sizes = [48, 8], strides = [1, 1]} : vector<48x32xf32> to vector<48x8xf32>
    %309 = vector.extract_strided_slice %252 {offsets = [0, 24], sizes = [48, 8], strides = [1, 1]} : vector<48x32xf32> to vector<48x8xf32>
    %cst_141 = arith.constant dense<0.000000e+00> : vector<48x48xf32>
    %310 = tpu.matmul %308, %309, %cst_141 {dimension_numbers = #tpu.dot_dimension_numbers<[1], [1], [0], [0], [0, 0, 1, 0], [], []>} : vector<48x8xf32>, vector<48x8xf32>, vector<48x48xf32> -> vector<48x48xf32>
    %cst_142 = arith.constant 0.353553385 : f32
    %311 = vector.broadcast %cst_142 : f32 to vector<48x48xf32>
    %312 = arith.mulf %310, %311 : vector<48x48xf32>
    %313 = arith.addf %312, %19 : vector<48x48xf32>
    %cst_143 = arith.constant dense<0xFF800000> : vector<48xf32>
    %314 = vector.multi_reduction <maximumf>, %313, %cst_143 [1] : vector<48x48xf32> to vector<48xf32>
    %315 = vector.shape_cast %314 : vector<48xf32> to vector<48x1xf32>
    %316 = vector.broadcast %315 : vector<48x1xf32> to vector<48x48xf32>
    %317 = arith.subf %313, %316 : vector<48x48xf32>
    %318 = math.exp %317 : vector<48x48xf32>
    %cst_144 = arith.constant dense<0.000000e+00> : vector<48xf32>
    %319 = vector.multi_reduction <add>, %318, %cst_144 [1] : vector<48x48xf32> to vector<48xf32>
    %320 = vector.shape_cast %319 : vector<48xf32> to vector<48x1xf32>
    %321 = tpu.reciprocal %320 {approx = true} : vector<48x1xf32> -> vector<48x1xf32>
    %322 = vector.broadcast %321 : vector<48x1xf32> to vector<48x48xf32>
    %323 = arith.mulf %318, %322 : vector<48x48xf32>
    %324 = vector.extract_strided_slice %253 {offsets = [0, 24], sizes = [48, 8], strides = [1, 1]} : vector<48x32xf32> to vector<48x8xf32>
    %cst_145 = arith.constant dense<0.000000e+00> : vector<48x8xf32>
    %325 = tpu.matmul %323, %324, %cst_145 {dimension_numbers = #tpu.dot_dimension_numbers<[1], [0], [0], [1], [0, 0, 1, 1], [], []>} : vector<48x48xf32>, vector<48x8xf32>, vector<48x8xf32> -> vector<48x8xf32>
    %326 = tpu.concatenate %271, %289, %307, %325 in 1 : vector<48x8xf32>, vector<48x8xf32>, vector<48x8xf32>, vector<48x8xf32> -> vector<48x32xf32>
    %cst_146 = arith.constant dense<0.000000e+00> : vector<48x32xf32>
    %327 = tpu.matmul %326, %215, %cst_146 {dimension_numbers = #tpu.dot_dimension_numbers<[1], [1], [0], [0], [0, 0, 1, 0], [], []>} : vector<48x32xf32>, vector<32x32xf32>, vector<48x32xf32> -> vector<48x32xf32>
    %328 = arith.addf %210, %327 : vector<48x32xf32>
    %329 = vector.broadcast %216 : vector<1x32xf32> to vector<48x32xf32>
    %330 = arith.addf %328, %329 : vector<48x32xf32>
    %cst_147 = arith.constant dense<0.000000e+00> : vector<48xf32>
    %331 = vector.multi_reduction <add>, %330, %cst_147 [1] : vector<48x32xf32> to vector<48xf32>
    %332 = vector.shape_cast %331 : vector<48xf32> to vector<48x1xf32>
    %cst_148 = arith.constant 3.200000e+01 : f32
    %333 = vector.broadcast %cst_148 : f32 to vector<48x1xf32>
    %334 = arith.divf %332, %333 : vector<48x1xf32>
    %335 = vector.broadcast %334 : vector<48x1xf32> to vector<48x32xf32>
    %336 = arith.subf %330, %335 : vector<48x32xf32>
    %337 = arith.mulf %336, %336 : vector<48x32xf32>
    %cst_149 = arith.constant dense<0.000000e+00> : vector<48xf32>
    %338 = vector.multi_reduction <add>, %337, %cst_149 [1] : vector<48x32xf32> to vector<48xf32>
    %339 = vector.shape_cast %338 : vector<48xf32> to vector<48x1xf32>
    %cst_150 = arith.constant 3.200000e+01 : f32
    %340 = vector.broadcast %cst_150 : f32 to vector<48x1xf32>
    %341 = arith.divf %339, %340 : vector<48x1xf32>
    %342 = vector.broadcast %334 : vector<48x1xf32> to vector<48x32xf32>
    %343 = arith.subf %330, %342 : vector<48x32xf32>
    %cst_151 = arith.constant 9.99999997E-7 : f32
    %344 = vector.broadcast %cst_151 : f32 to vector<48x1xf32>
    %345 = arith.addf %341, %344 : vector<48x1xf32>
    %346 = math.rsqrt %345 : vector<48x1xf32>
    %347 = vector.broadcast %346 : vector<48x1xf32> to vector<48x32xf32>
    %348 = arith.mulf %343, %347 : vector<48x32xf32>
    %349 = vector.broadcast %217 : vector<1x32xf32> to vector<48x32xf32>
    %350 = arith.mulf %348, %349 : vector<48x32xf32>
    %351 = vector.broadcast %218 : vector<1x32xf32> to vector<48x32xf32>
    %352 = arith.addf %350, %351 : vector<48x32xf32>
    %cst_152 = arith.constant dense<0.000000e+00> : vector<48x128xf32>
    %353 = tpu.matmul %352, %219, %cst_152 {dimension_numbers = #tpu.dot_dimension_numbers<[1], [1], [0], [0], [0, 0, 1, 0], [], []>} : vector<48x32xf32>, vector<128x32xf32>, vector<48x128xf32> -> vector<48x128xf32>
    %354 = vector.broadcast %220 : vector<1x128xf32> to vector<48x128xf32>
    %355 = arith.addf %353, %354 : vector<48x128xf32>
    %cst_153 = arith.constant 5.000000e-01 : f32
    %356 = vector.broadcast %cst_153 : f32 to vector<48x128xf32>
    %357 = arith.mulf %356, %355 : vector<48x128xf32>
    %cst_154 = arith.constant 0.707106769 : f32
    %358 = vector.broadcast %cst_154 : f32 to vector<48x128xf32>
    %359 = arith.mulf %355, %358 : vector<48x128xf32>
    %cst_155 = arith.constant 0.000000e+00 : f32
    %360 = vector.broadcast %cst_155 : f32 to vector<48x128xf32>
    %361 = arith.cmpf olt, %359, %360 : vector<48x128xf32>
    %cst_156 = arith.constant -1.000000e+00 : f32
    %cst_157 = arith.constant 1.000000e+00 : f32
    %362 = vector.broadcast %cst_156 : f32 to vector<48x128xf32>
    %363 = vector.broadcast %cst_157 : f32 to vector<48x128xf32>
    %364 = arith.select %361, %362, %363 : vector<48x128xi1>, vector<48x128xf32>
    %365 = math.absf %359 : vector<48x128xf32>
    %cst_158 = arith.constant 0.327591091 : f32
    %366 = vector.broadcast %cst_158 : f32 to vector<48x128xf32>
    %367 = arith.mulf %366, %365 : vector<48x128xf32>
    %cst_159 = arith.constant 1.000000e+00 : f32
    %368 = vector.broadcast %cst_159 : f32 to vector<48x128xf32>
    %369 = arith.addf %368, %367 : vector<48x128xf32>
    %cst_160 = arith.constant 1.000000e+00 : f32
    %370 = vector.broadcast %cst_160 : f32 to vector<48x128xf32>
    %371 = arith.divf %370, %369 : vector<48x128xf32>
    %cst_161 = arith.constant 1.06140542 : f32
    %372 = vector.broadcast %cst_161 : f32 to vector<48x128xf32>
    %373 = arith.mulf %372, %371 : vector<48x128xf32>
    %cst_162 = arith.constant -1.45315206 : f32
    %374 = vector.broadcast %cst_162 : f32 to vector<48x128xf32>
    %375 = arith.addf %373, %374 : vector<48x128xf32>
    %376 = arith.mulf %375, %371 : vector<48x128xf32>
    %cst_163 = arith.constant 1.42141378 : f32
    %377 = vector.broadcast %cst_163 : f32 to vector<48x128xf32>
    %378 = arith.addf %376, %377 : vector<48x128xf32>
    %379 = arith.mulf %378, %371 : vector<48x128xf32>
    %cst_164 = arith.constant -0.284496725 : f32
    %380 = vector.broadcast %cst_164 : f32 to vector<48x128xf32>
    %381 = arith.addf %379, %380 : vector<48x128xf32>
    %382 = arith.mulf %381, %371 : vector<48x128xf32>
    %cst_165 = arith.constant 0.254829586 : f32
    %383 = vector.broadcast %cst_165 : f32 to vector<48x128xf32>
    %384 = arith.addf %382, %383 : vector<48x128xf32>
    %385 = arith.mulf %384, %371 : vector<48x128xf32>
    %cst_166 = arith.constant 0.000000e+00 : f32
    %386 = vector.broadcast %cst_166 : f32 to vector<48x128xf32>
    %387 = arith.subf %386, %365 : vector<48x128xf32>
    %388 = arith.mulf %387, %365 : vector<48x128xf32>
    %389 = math.exp %388 : vector<48x128xf32>
    %390 = arith.mulf %385, %389 : vector<48x128xf32>
    %cst_167 = arith.constant 1.000000e+00 : f32
    %391 = vector.broadcast %cst_167 : f32 to vector<48x128xf32>
    %392 = arith.subf %391, %390 : vector<48x128xf32>
    %393 = arith.mulf %364, %392 : vector<48x128xf32>
    %cst_168 = arith.constant 1.000000e+00 : f32
    %394 = vector.broadcast %cst_168 : f32 to vector<48x128xf32>
    %395 = arith.addf %394, %393 : vector<48x128xf32>
    %396 = arith.mulf %357, %395 : vector<48x128xf32>
    %cst_169 = arith.constant dense<0.000000e+00> : vector<48x32xf32>
    %397 = tpu.matmul %396, %221, %cst_169 {dimension_numbers = #tpu.dot_dimension_numbers<[1], [1], [0], [0], [0, 0, 1, 0], [], []>} : vector<48x128xf32>, vector<32x128xf32>, vector<48x32xf32> -> vector<48x32xf32>
    %398 = arith.addf %330, %397 : vector<48x32xf32>
    %399 = vector.broadcast %222 : vector<1x32xf32> to vector<48x32xf32>
    %400 = arith.addf %398, %399 : vector<48x32xf32>
    %cst_170 = arith.constant dense<0.000000e+00> : vector<48xf32>
    %401 = vector.multi_reduction <add>, %400, %cst_170 [1] : vector<48x32xf32> to vector<48xf32>
    %402 = vector.shape_cast %401 : vector<48xf32> to vector<48x1xf32>
    %cst_171 = arith.constant 3.200000e+01 : f32
    %403 = vector.broadcast %cst_171 : f32 to vector<48x1xf32>
    %404 = arith.divf %402, %403 : vector<48x1xf32>
    %405 = vector.broadcast %404 : vector<48x1xf32> to vector<48x32xf32>
    %406 = arith.subf %400, %405 : vector<48x32xf32>
    %407 = arith.mulf %406, %406 : vector<48x32xf32>
    %cst_172 = arith.constant dense<0.000000e+00> : vector<48xf32>
    %408 = vector.multi_reduction <add>, %407, %cst_172 [1] : vector<48x32xf32> to vector<48xf32>
    %409 = vector.shape_cast %408 : vector<48xf32> to vector<48x1xf32>
    %cst_173 = arith.constant 3.200000e+01 : f32
    %410 = vector.broadcast %cst_173 : f32 to vector<48x1xf32>
    %411 = arith.divf %409, %410 : vector<48x1xf32>
    %412 = vector.broadcast %404 : vector<48x1xf32> to vector<48x32xf32>
    %413 = arith.subf %400, %412 : vector<48x32xf32>
    %cst_174 = arith.constant 9.99999997E-7 : f32
    %414 = vector.broadcast %cst_174 : f32 to vector<48x1xf32>
    %415 = arith.addf %411, %414 : vector<48x1xf32>
    %416 = math.rsqrt %415 : vector<48x1xf32>
    %417 = vector.broadcast %416 : vector<48x1xf32> to vector<48x32xf32>
    %418 = arith.mulf %413, %417 : vector<48x32xf32>
    %419 = vector.broadcast %0 : vector<1x32xf32> to vector<48x32xf32>
    %420 = arith.mulf %418, %419 : vector<48x32xf32>
    %421 = vector.broadcast %1 : vector<1x32xf32> to vector<48x32xf32>
    %422 = arith.addf %420, %421 : vector<48x32xf32>
    %423 = vector.extract_strided_slice %422 {offsets = [0, 0], sizes = [1, 32], strides = [1, 1]} : vector<48x32xf32> to vector<1x32xf32>
    %424 = vector.extract_strided_slice %422 {offsets = [24, 0], sizes = [1, 32], strides = [1, 1]} : vector<48x32xf32> to vector<1x32xf32>
    %425 = tpu.concatenate %423, %424 in 0 : vector<1x32xf32>, vector<1x32xf32> -> vector<2x32xf32>
    %426 = arith.mulf %425, %425 : vector<2x32xf32>
    %cst_175 = arith.constant dense<0.000000e+00> : vector<2xf32>
    %427 = vector.multi_reduction <add>, %426, %cst_175 [1] : vector<2x32xf32> to vector<2xf32>
    %428 = vector.shape_cast %427 : vector<2xf32> to vector<2x1xf32>
    %429 = math.sqrt %428 : vector<2x1xf32>
    %cst_176 = arith.constant 9.99999996E-13 : f32
    %430 = vector.broadcast %cst_176 : f32 to vector<2x1xf32>
    %431 = arith.maximumf %429, %430 : vector<2x1xf32>
    %432 = arith.mulf %2, %2 : vector<128x32xf32>
    %cst_177 = arith.constant dense<0.000000e+00> : vector<128xf32>
    %433 = vector.multi_reduction <add>, %432, %cst_177 [1] : vector<128x32xf32> to vector<128xf32>
    %434 = vector.shape_cast %433 : vector<128xf32> to vector<128x1xf32>
    %435 = math.sqrt %434 : vector<128x1xf32>
    %cst_178 = arith.constant 9.99999996E-13 : f32
    %436 = vector.broadcast %cst_178 : f32 to vector<128x1xf32>
    %437 = arith.maximumf %435, %436 : vector<128x1xf32>
    %438 = vector.broadcast %431 : vector<2x1xf32> to vector<2x32xf32>
    %439 = arith.divf %425, %438 : vector<2x32xf32>
    %440 = vector.broadcast %437 : vector<128x1xf32> to vector<128x32xf32>
    %441 = arith.divf %2, %440 : vector<128x32xf32>
    %cst_179 = arith.constant dense<0.000000e+00> : vector<2x128xf32>
    %442 = tpu.matmul %439, %441, %cst_179 {dimension_numbers = #tpu.dot_dimension_numbers<[1], [1], [0], [0], [0, 0, 1, 0], [], []>} : vector<2x32xf32>, vector<128x32xf32>, vector<2x128xf32> -> vector<2x128xf32>
    %cst_180 = arith.constant 1.600000e+01 : f32
    %443 = vector.broadcast %cst_180 : f32 to vector<2x128xf32>
    %444 = arith.mulf %443, %442 : vector<2x128xf32>
    %c0_181 = arith.constant 0 : index
    %c0_182 = arith.constant 0 : index
    %c0_183 = arith.constant 0 : index
    %445 = vector.load %arg35[%c0_181, %c0_182, %c0_183] : memref<1x2x128xf32, #tpu.memory_space<vmem>>, vector<1x2x128xf32>
    %446 = vector.shape_cast %445 : vector<1x2x128xf32> to vector<2x128xf32>
    %447 = vector.shape_cast %444 : vector<2x128xf32> to vector<1x2x128xf32>
    tpu.vector_store %arg35[%c0_181, %c0_182, %c0_183], %447 {strides = array<i32>} : memref<1x2x128xf32, #tpu.memory_space<vmem>>, vector<1x2x128xf32>,
    return
  }
  func.func @transform_0(%arg0: i32) -> (i32, i32) {
    %c0_i32 = arith.constant 0 : i32
    %c0_i32_0 = arith.constant 0 : i32
    return %arg0, %c0_i32 : i32, i32
  }
  func.func @transform_1(%arg0: i32) -> (i32, i32) {
    %c0_i32 = arith.constant 0 : i32
    %c0_i32_0 = arith.constant 0 : i32
    %c0_i32_1 = arith.constant 0 : i32
    return %c0_i32, %c0_i32_0 : i32, i32
  }
  func.func @transform_2(%arg0: i32) -> (i32, i32) {
    %c0_i32 = arith.constant 0 : i32
    %c0_i32_0 = arith.constant 0 : i32
    %c0_i32_1 = arith.constant 0 : i32
    return %c0_i32, %c0_i32_0 : i32, i32
  }
  func.func @transform_3(%arg0: i32) -> (i32, i32) {
    %c0_i32 = arith.constant 0 : i32
    %c0_i32_0 = arith.constant 0 : i32
    %c0_i32_1 = arith.constant 0 : i32
    return %c0_i32, %c0_i32_0 : i32, i32
  }
  func.func @transform_4(%arg0: i32) -> (i32, i32) {
    %c0_i32 = arith.constant 0 : i32
    %c0_i32_0 = arith.constant 0 : i32
    %c0_i32_1 = arith.constant 0 : i32
    return %c0_i32, %c0_i32_0 : i32, i32
  }
  func.func @transform_5(%arg0: i32) -> (i32, i32) {
    %c0_i32 = arith.constant 0 : i32
    %c0_i32_0 = arith.constant 0 : i32
    %c0_i32_1 = arith.constant 0 : i32
    return %c0_i32, %c0_i32_0 : i32, i32
  }
  func.func @transform_6(%arg0: i32) -> (i32, i32) {
    %c0_i32 = arith.constant 0 : i32
    %c0_i32_0 = arith.constant 0 : i32
    %c0_i32_1 = arith.constant 0 : i32
    return %c0_i32, %c0_i32_0 : i32, i32
  }
  func.func @transform_7(%arg0: i32) -> (i32, i32) {
    %c0_i32 = arith.constant 0 : i32
    %c0_i32_0 = arith.constant 0 : i32
    %c0_i32_1 = arith.constant 0 : i32
    return %c0_i32, %c0_i32_0 : i32, i32
  }
  func.func @transform_8(%arg0: i32) -> (i32, i32) {
    %c0_i32 = arith.constant 0 : i32
    %c0_i32_0 = arith.constant 0 : i32
    %c0_i32_1 = arith.constant 0 : i32
    return %c0_i32, %c0_i32_0 : i32, i32
  }
  func.func @transform_9(%arg0: i32) -> (i32, i32) {
    %c0_i32 = arith.constant 0 : i32
    %c0_i32_0 = arith.constant 0 : i32
    %c0_i32_1 = arith.constant 0 : i32
    return %c0_i32, %c0_i32_0 : i32, i32
  }
  func.func @transform_10(%arg0: i32) -> (i32, i32) {
    %c0_i32 = arith.constant 0 : i32
    %c0_i32_0 = arith.constant 0 : i32
    %c0_i32_1 = arith.constant 0 : i32
    return %c0_i32, %c0_i32_0 : i32, i32
  }
  func.func @transform_11(%arg0: i32) -> (i32, i32) {
    %c0_i32 = arith.constant 0 : i32
    %c0_i32_0 = arith.constant 0 : i32
    %c0_i32_1 = arith.constant 0 : i32
    return %c0_i32, %c0_i32_0 : i32, i32
  }
  func.func @transform_12(%arg0: i32) -> (i32, i32) {
    %c0_i32 = arith.constant 0 : i32
    %c0_i32_0 = arith.constant 0 : i32
    %c0_i32_1 = arith.constant 0 : i32
    return %c0_i32, %c0_i32_0 : i32, i32
  }
  func.func @transform_13(%arg0: i32) -> (i32, i32) {
    %c0_i32 = arith.constant 0 : i32
    %c0_i32_0 = arith.constant 0 : i32
    %c0_i32_1 = arith.constant 0 : i32
    return %c0_i32, %c0_i32_0 : i32, i32
  }
  func.func @transform_14(%arg0: i32) -> (i32, i32) {
    %c0_i32 = arith.constant 0 : i32
    %c0_i32_0 = arith.constant 0 : i32
    %c0_i32_1 = arith.constant 0 : i32
    return %c0_i32, %c0_i32_0 : i32, i32
  }
  func.func @transform_15(%arg0: i32) -> (i32, i32) {
    %c0_i32 = arith.constant 0 : i32
    %c0_i32_0 = arith.constant 0 : i32
    %c0_i32_1 = arith.constant 0 : i32
    return %c0_i32, %c0_i32_0 : i32, i32
  }
  func.func @transform_16(%arg0: i32) -> (i32, i32) {
    %c0_i32 = arith.constant 0 : i32
    %c0_i32_0 = arith.constant 0 : i32
    %c0_i32_1 = arith.constant 0 : i32
    return %c0_i32, %c0_i32_0 : i32, i32
  }
  func.func @transform_17(%arg0: i32) -> (i32, i32) {
    %c0_i32 = arith.constant 0 : i32
    %c0_i32_0 = arith.constant 0 : i32
    %c0_i32_1 = arith.constant 0 : i32
    return %c0_i32, %c0_i32_0 : i32, i32
  }
  func.func @transform_18(%arg0: i32) -> (i32, i32) {
    %c0_i32 = arith.constant 0 : i32
    %c0_i32_0 = arith.constant 0 : i32
    %c0_i32_1 = arith.constant 0 : i32
    return %c0_i32, %c0_i32_0 : i32, i32
  }
  func.func @transform_19(%arg0: i32) -> (i32, i32) {
    %c0_i32 = arith.constant 0 : i32
    %c0_i32_0 = arith.constant 0 : i32
    %c0_i32_1 = arith.constant 0 : i32
    return %c0_i32, %c0_i32_0 : i32, i32
  }
  func.func @transform_20(%arg0: i32) -> (i32, i32) {
    %c0_i32 = arith.constant 0 : i32
    %c0_i32_0 = arith.constant 0 : i32
    %c0_i32_1 = arith.constant 0 : i32
    return %c0_i32, %c0_i32_0 : i32, i32
  }
  func.func @transform_21(%arg0: i32) -> (i32, i32) {
    %c0_i32 = arith.constant 0 : i32
    %c0_i32_0 = arith.constant 0 : i32
    %c0_i32_1 = arith.constant 0 : i32
    return %c0_i32, %c0_i32_0 : i32, i32
  }
  func.func @transform_22(%arg0: i32) -> (i32, i32) {
    %c0_i32 = arith.constant 0 : i32
    %c0_i32_0 = arith.constant 0 : i32
    %c0_i32_1 = arith.constant 0 : i32
    return %c0_i32, %c0_i32_0 : i32, i32
  }
  func.func @transform_23(%arg0: i32) -> (i32, i32) {
    %c0_i32 = arith.constant 0 : i32
    %c0_i32_0 = arith.constant 0 : i32
    %c0_i32_1 = arith.constant 0 : i32
    return %c0_i32, %c0_i32_0 : i32, i32
  }
  func.func @transform_24(%arg0: i32) -> (i32, i32) {
    %c0_i32 = arith.constant 0 : i32
    %c0_i32_0 = arith.constant 0 : i32
    %c0_i32_1 = arith.constant 0 : i32
    return %c0_i32, %c0_i32_0 : i32, i32
  }
  func.func @transform_25(%arg0: i32) -> (i32, i32) {
    %c0_i32 = arith.constant 0 : i32
    %c0_i32_0 = arith.constant 0 : i32
    %c0_i32_1 = arith.constant 0 : i32
    return %c0_i32, %c0_i32_0 : i32, i32
  }
  func.func @transform_26(%arg0: i32) -> (i32, i32) {
    %c0_i32 = arith.constant 0 : i32
    %c0_i32_0 = arith.constant 0 : i32
    %c0_i32_1 = arith.constant 0 : i32
    return %c0_i32, %c0_i32_0 : i32, i32
  }
  func.func @transform_27(%arg0: i32) -> (i32, i32) {
    %c0_i32 = arith.constant 0 : i32
    %c0_i32_0 = arith.constant 0 : i32
    %c0_i32_1 = arith.constant 0 : i32
    return %c0_i32, %c0_i32_0 : i32, i32
  }
  func.func @transform_28(%arg0: i32) -> (i32, i32) {
    %c0_i32 = arith.constant 0 : i32
    %c0_i32_0 = arith.constant 0 : i32
    %c0_i32_1 = arith.constant 0 : i32
    return %c0_i32, %c0_i32_0 : i32, i32
  }
  func.func @transform_29(%arg0: i32) -> (i32, i32) {
    %c0_i32 = arith.constant 0 : i32
    %c0_i32_0 = arith.constant 0 : i32
    %c0_i32_1 = arith.constant 0 : i32
    return %c0_i32, %c0_i32_0 : i32, i32
  }
  func.func @transform_30(%arg0: i32) -> (i32, i32) {
    %c0_i32 = arith.constant 0 : i32
    %c0_i32_0 = arith.constant 0 : i32
    %c0_i32_1 = arith.constant 0 : i32
    return %c0_i32, %c0_i32_0 : i32, i32
  }
  func.func @transform_31(%arg0: i32) -> (i32, i32) {
    %c0_i32 = arith.constant 0 : i32
    %c0_i32_0 = arith.constant 0 : i32
    %c0_i32_1 = arith.constant 0 : i32
    return %c0_i32, %c0_i32_0 : i32, i32
  }
  func.func @transform_32(%arg0: i32) -> (i32, i32) {
    %c0_i32 = arith.constant 0 : i32
    %c0_i32_0 = arith.constant 0 : i32
    %c0_i32_1 = arith.constant 0 : i32
    return %c0_i32, %c0_i32_0 : i32, i32
  }
  func.func @transform_33(%arg0: i32) -> (i32, i32) {
    %c0_i32 = arith.constant 0 : i32
    %c0_i32_0 = arith.constant 0 : i32
    %c0_i32_1 = arith.constant 0 : i32
    return %c0_i32, %c0_i32_0 : i32, i32
  }
  func.func @transform_34(%arg0: i32) -> (i32, i32, i32) {
    %c0_i32 = arith.constant 0 : i32
    %c0_i32_0 = arith.constant 0 : i32
    %c0_i32_1 = arith.constant 0 : i32
    return %arg0, %c0_i32, %c0_i32_0 : i32, i32, i32
  }
}

</mosaic_0001>

<bundles_post_ra>
// kernel: mynet_forward.1
= control target key start
LH: loop header
LB: loop body
LE: loop exit
PB: predicated region body
PF: predicated region fallthrough
CT: control target
= control target key end

     0   :  { %s8187_s6 = smov 1   ;;  %s8188_s10 = smov 2   ;;  %s10409_s0 = inlined_call_operand.smem [shape: u32[35], index: -1, kind: input, shape index: {}] }
   0x1   :  { %s8248_s5 = sld [smem:[%s10409_s0]]   ;;  %s8189_s14 = smov 3  }
   0x2   :  { %s8253_s9 = sld [smem:[%s10409_s0 + %s8187_s6]]   ;;  %s8190_s18 = smov 4  }
   0x3   :  { %s8258_s13 = sld [smem:[%s10409_s0 + %s8188_s10]]   ;;  %s8191_s22 = smov 5  }
   0x4   :  { %s8263_s17 = sld [smem:[%s10409_s0 + %s8189_s14]]   ;;  %s8192_s26 = smov 6  }
   0x5   :  { %s8268_s21 = sld [smem:[%s10409_s0 + %s8190_s18]]   ;;  %s8193_s30 = smov 7  }
   0x6   :  { %s8273_s25 = sld [smem:[%s10409_s0 + %s8191_s22]]   ;;  %s8194_s4 = smov 8  }
   0x7   :  { %s8278_s29 = sld [smem:[%s10409_s0 + %s8192_s26]]   ;;  %s8195_s10 = smov 9  }
   0x8   :  { %s8283_s3 = sld [smem:[%s10409_s0 + %s8193_s30]]   ;;  %s8196_s15 = smov 10  }
   0x9   :  { %s8288_s8 = sld [smem:[%s10409_s0 + %s8194_s4]]   ;;  %s8197_s20 = smov 11  }
   0xa   :  { %s8293_s14 = sld [smem:[%s10409_s0 + %s8195_s10]]   ;;  %s8198_s26 = smov 12  }
   0xb   :  { %s8298_s19 = sld [smem:[%s10409_s0 + %s8196_s15]]   ;;  %s8199_s1 = smov 13  }
   0xc   :  { %s8303_s24 = sld [smem:[%s10409_s0 + %s8197_s20]]   ;;  %s8200_s7 = smov 14  }
   0xd   :  { %s8308_s30 = sld [smem:[%s10409_s0 + %s8198_s26]]   ;;  %s8201_s15 = smov 15  }
   0xe   :  { %s8313_s6 = sld [smem:[%s10409_s0 + %s8199_s1]]   ;;  %s8202_s22 = smov 16  }
   0xf   :  { %s8318_s12 = sld [smem:[%s10409_s0 + %s8200_s7]]   ;;  %s8203_s28 = smov 17  }
  0x10   :  { %s8323_s20 = sld [smem:[%s10409_s0 + %s8201_s15]]   ;;  %s8204_s7 = smov 18  }
  0x11   :  { %s8328_s27 = sld [smem:[%s10409_s0 + %s8202_s22]]   ;;  %s8205_s15 = smov 19  }
  0x12   :  { %s8333_s4 = sld [smem:[%s10409_s0 + %s8203_s28]]   ;;  %s8206_s22 = smov 20  }
  0x13   :  { %s8207_s28 = smov 21  }
  0x14   :  { %10415 = sst [smem:[#allocation5_spill]] %s8313_s6 }
  0x15   :  { %10416 = sst [smem:[#allocation6_spill]] %s8318_s12 }
  0x16   :  { %s8338_s12 = sld [smem:[%s10409_s0 + %s8204_s7]]   ;;  %s8208_s7 = smov 22  }
  0x17   :  { %10417 = sst [smem:[#allocation7_spill]] %s8328_s27 }
  0x18   :  { %10418 = sst [smem:[#allocation8_spill]] %s8333_s4 }
  0x19   :  { %s8343_s6 = sld [smem:[%s10409_s0 + %s8205_s15]]   ;;  %s8209_s15 = smov 23  }
  0x1a   :  { %s8348_s27 = sld [smem:[%s10409_s0 + %s8206_s22]]   ;;  %s8210_s22 = smov 24  }
  0x1b   :  { %s8353_s4 = sld [smem:[%s10409_s0 + %s8207_s28]]   ;;  %s8211_s28 = smov 25  }
  0x1c   :  { %10419 = sst [smem:[#allocation9_spill]] %s8338_s12 }
  0x1d   :  { %s8358_s12 = sld [smem:[%s10409_s0 + %s8208_s7]]   ;;  %s8212_s7 = smov 26  }
  0x1f   :  { %10420 = sst [smem:[#allocation10_spill]] %s8343_s6 }
  0x20   :  { %10421 = sst [smem:[#allocation11_spill]] %s8348_s27 }
  0x21   :  { %10422 = sst [smem:[#allocation12_spill]] %s8353_s4 }
  0x22   :  { %s8363_s6 = sld [smem:[%s10409_s0 + %s8209_s15]]   ;;  %s8213_s15 = smov 27  }
  0x23   :  { %10423 = sst [smem:[#allocation13_spill]] %s8358_s12 }
  0x24   :  { %s8368_s27 = sld [smem:[%s10409_s0 + %s8210_s22]]   ;;  %s8214_s22 = smov 28  }
  0x25   :  { %s8373_s4 = sld [smem:[%s10409_s0 + %s8211_s28]]   ;;  %s8215_s28 = smov 29  }
  0x26   :  { %s8378_s12 = sld [smem:[%s10409_s0 + %s8212_s7]]   ;;  %s8216_s7 = smov 30  }
  0x28   :  { %10424 = sst [smem:[#allocation14_spill]] %s8363_s6 }
  0x29   :  { %s8383_s6 = sld [smem:[%s10409_s0 + %s8213_s15]]   ;;  %s8217_s15 = smov 31  }
  0x2a   :  { %10425 = sst [smem:[#allocation15_spill]] %s8368_s27 }
  0x2b   :  { %10426 = sst [smem:[#allocation16_spill]] %s8373_s4 }
  0x2c   :  { %10427 = sst [smem:[#allocation17_spill]] %s8378_s12 }
  0x2d   :  { %s8388_s27 = sld [smem:[%s10409_s0 + %s8214_s22]]   ;;  %s8218_s22 = smov 32  }
  0x2e   :  { %s8393_s4 = sld [smem:[%s10409_s0 + %s8215_s28]]   ;;  %s8219_s28 = smov 33  }
  0x2f   :  { %10428 = sst [smem:[#allocation18_spill]] %s8383_s6 }
  0x30   :  { %s8398_s12 = sld [smem:[%s10409_s0 + %s8216_s7]]   ;;  %s8220_s7 = smov 34  }
  0x31   :  { %s8403_s6 = sld [smem:[%s10409_s0 + %s8217_s15]]  }
  0x33   :  { %10429 = sst [smem:[#allocation19_spill]] %s8388_s27 }
  0x34   :  { %10430 = sst [smem:[#allocation20_spill]] %s8393_s4 }
  0x35   :  { %s8408_s27 = sld [smem:[%s10409_s0 + %s8218_s22]]  }
  0x36   :  { %10431 = sst [smem:[#allocation21_spill]] %s8398_s12 }
  0x37   :  { %s8413_s4 = sld [smem:[%s10409_s0 + %s8219_s28]]  }
  0x38   :  { %s8418_s12 = sld [smem:[%s10409_s0 + %s8220_s7]]  }
  0x39   :  { %v165_v0 = vld [vmem:[%s8253_s9] sm:$0xff]  ;;  %v166_v1 = vld [vmem:[%s8253_s9 + $0x8] sm:$0xff]  ;;  %vm176_vm0 = vcmask 392192   ;;  %v167_v2 = vld [vmem:[%s8253_s9 + $0x10] sm:$0xff] }
  0x3a   :  { %v6994_v3 = vpack.c.bf16 %v166_v1, %v165_v0  ;;  %vm6995_vm1 = vmpackc.low %vm176_vm0, %vm176_vm0  ;;  %v168_v4 = vld [vmem:[%s8253_s9 + $0x18] sm:$0xff]  ;;  %v161_v5 = vld [vmem:[%s8248_s5] sm:$0xff] }
  0x3b   :  { %v7000_v6 = vpack.c.bf16 %v168_v4, %v167_v2  ;;  %6401 = vmatprep.mubr.msk.f32.mxu0 %vm176_vm0, %v161_v5 }
  0x3c   :  { %6996 = vmatprep.subr.msk.bf16.mxu0 %vm6995_vm1, %v6994_v3 }
  0x3d   :  { %74 = vsyncpa [#allocation3], 0  ;;  %6999 = vmatpush3.bf16.xpose.msk.msra.mxu0 %vm6995_vm1, %v6994_v3  ;;  %v162_v7 = vld [vmem:[%s8248_s5 + $0x8] sm:$0xff]  ;;  %v163_v8 = vld [vmem:[%s8248_s5 + $0x10] sm:$0xff]  ;;  %vm292_vm2 = vcmask 1040384   ;;  %vm379_vm3 = vcmask 261120  }
  0x3e   :  { %7002 = vmatprep.subr.msk.bf16.mxu0 %vm6995_vm1, %v7000_v6  ;;  %v164_v9 = vld [vmem:[%s8248_s5 + $0x18] sm:$0xff]  ;;  %v5768_v10 = vld [vmem:[%s8258_s13] ss:$0 sm:$0xff]  ;;  %v289_v15 = vld [vmem:[%s8268_s21 + $0x10] sm:$0xff]  ;;  %vm668_vm5 = vcmask 64512   ;;  %s8221_s0 = smov 96  }
  0x3f   :  { %v286_v17 = vld [vmem:[%s8263_s17] sm:$0x1]  ;;  %v288_v28 = vld [vmem:[%s8268_s21 + $0x8] sm:$0xff]  ;;  %v325_v51 = vld [vmem:[%s8273_s25 + $0x10] sm:$0xff]  ;;  %s8222_s5 = smov 88   ;;  %s8223_s9 = smov 120  }
  0x40   :  { %v287_v20 = vld [vmem:[%s8268_s21] sm:$0xff]  ;;  %v324_v46 = vld [vmem:[%s8273_s25 + $0x8] sm:$0xff]  ;;  %v326_v52 = vld [vmem:[%s8273_s25 + $0x18] sm:$0xff]  ;;  %s8224_s13 = smov 64   ;;  %s8225_s17 = smov 56   ;;  %vm2131_vm7 = vcmask 130048  }
  0x41   :  { %v323_v45 = vld [vmem:[%s8273_s25] sm:$0xff]  ;;  %v338_v48 = vld [vmem:[%s8293_s14 + $0x8] sm:$0xff]  ;;  %vm8477_vm4 = vmpackc.low %vm379_vm3, %vm379_vm3  ;;  %s8226_s21 = smov 80   ;;  %s8231_s15 = smov 40   ;;  %vm2138_vm8 = vcmask 195584  }
  0x42   :  { %v337_v47 = vld [vmem:[%s8293_s14] sm:$0xff]  ;;  %v484_v50 = vadd.f32 %v338_v48, %v324_v46  ;;  %v339_v54 = vld [vmem:[%s8293_s14 + $0x10] sm:$0xff]  ;;  %v340_v55 = vld [vmem:[%s8293_s14 + $0x18] sm:$0xff]  ;;  %s8232_s16 = smov 8   ;;  %s8233_s18 = smov 16  }
  0x43   :  { %v483_v49 = vadd.f32 %v337_v47, %v323_v45  ;;  %v485_v57 = vadd.f32 %v339_v54, %v325_v51  ;;  %v486_v58 = vadd.f32 %v340_v55, %v326_v52  ;;  %v327_v59 = vld [vmem:[%s8273_s25 + $0x20] sm:$0xff]  ;;  %v328_v60 = vld [vmem:[%s8273_s25 + $0x28] sm:$0xff]  ;;  %v333_v54 = vld [vmem:[%s8273_s25 + $0x50] sm:$0xff]  ;;  %s10438_s22 = sld [smem:[#allocation8_spill]]  ;;  %s10439_s23 = sld [smem:[#allocation7_spill]] }
  0x44   :  { %v341_v61 = vld [vmem:[%s8293_s14 + $0x20] sm:$0xff]  ;;  %v342_v62 = vld [vmem:[%s8293_s14 + $0x28] sm:$0xff]  ;;  %v334_v55 = vld [vmem:[%s8273_s25 + $0x58] sm:$0xff]  ;;  %s10440_s26 = sld [smem:[#allocation9_spill]]  ;;  %s10441_s28 = sld [smem:[#allocation12_spill]] }
  0x45   :  { %7005 = vmatpush3.bf16.xpose.msk.msra.mxu0 %vm6995_vm1, %v7000_v6  ;;  %v7006_v56 = vpack.c.bf16 %v484_v50, %v483_v49  ;;  %v7012_v63 = vpack.c.bf16 %v486_v58, %v485_v57  ;;  %v487_v0 = vadd.f32 %v341_v61, %v327_v59  ;;  %v488_v1 = vadd.f32 %v342_v62, %v328_v60  ;;  %v331_v46 = vld [vmem:[%s8273_s25 + $0x40] sm:$0xff]  ;;  %v332_v47 = vld [vmem:[%s8273_s25 + $0x48] sm:$0xff]  ;;  %v348_v57 = vld [vmem:[%s8293_s14 + $0x58] sm:$0xff]  ;;  %s10442_s1 = sld [smem:[#allocation10_spill]]  ;;  %s10444_s2 = sld [smem:[#allocation13_spill]] }
  0x46   :  { %v345_v48 = vld [vmem:[%s8293_s14 + $0x40] sm:$0xff]  ;;  %v346_v49 = vld [vmem:[%s8293_s14 + $0x48] sm:$0xff]  ;;  %v494_v59 = vadd.f32 %v348_v57, %v334_v55  ;;  %vm8630_vm6 = vmpackc.low %vm668_vm5, %vm668_vm5  ;;  %s10446_s7 = sld [smem:[#allocation15_spill]]  ;;  %s10447_s10 = sld [smem:[#allocation18_spill]] }
  0x47   :  { %7008 = vmatprep.subr.msk.bf16.mxu1 %vm8477_vm4, %v7006_v56  ;;  %v7018_v2 = vpack.c.bf16 %v488_v1, %v487_v0  ;;  %v491_v50 = vadd.f32 %v345_v48, %v331_v46  ;;  %v492_v51 = vadd.f32 %v346_v49, %v332_v47  ;;  %s10448_s11 = sld [smem:[#allocation16_spill]] }
  0x48   :  { %7011 = vmatpush3.bf16.xpose.msk.msra.mxu1 %vm8477_vm4, %v7006_v56  ;;  %v347_v56 = vld [vmem:[%s8293_s14 + $0x50] sm:$0xff] }
  0x49   :  { %7014 = vmatprep.subr.msk.bf16.mxu1 %vm8477_vm4, %v7012_v63  ;;  %v7030_v52 = vpack.c.bf16 %v492_v51, %v491_v50  ;;  %v493_v58 = vadd.f32 %v347_v56, %v333_v54 }
  0x4b   :  { %v7036_v60 = vpack.c.bf16 %v494_v59, %v493_v58 }
  0x4c   :  { %6402 = vmatmul.mubr.msk.f32.vlgmr.msra.gmra.mrb[0].mxu0 %vm176_vm0, %v162_v7 }
  0x4d   :  { %6404 = vmatprep.mubr.msk.f32.mxu0 %vm176_vm0, %v163_v8 }
  0x50   :  { %6405 = vmatmul.mubr.msk.f32.gmra.mrb[2].mxu0 %vm176_vm0, %v164_v9  ;;  %7017 = vmatpush3.bf16.xpose.msk.msra.mxu1 %vm8477_vm4, %v7012_v63 }
  0x51   :  { %7020 = vmatprep.subr.msk.bf16.mxu1 %vm8477_vm4, %v7018_v2 }
  0x58   :  { %7023 = vmatpush3.bf16.xpose.msk.msra.mxu1 %vm8477_vm4, %v7018_v2 }
 0x11f   :  { %v6403_v11 = vpop.f32.mrb[0].mxu0 }
 0x120   :  { %v273_v12 = vadd.f32 %v6403_v11, %v5768_v10  ;;  %v267_v13 = vpop.f32.mrb[1].mxu0 }
 0x121   :  { %v268_v14 = vadd.f32 %v5768_v10, %v267_v13 }
 0x122   :  { %v294_v16 = vrot.slane %v273_v12, 7 }
 0x123   :  { %v293_v18 = vrot.slane %v268_v14, 7  ;;  %v6406_v19 = vpop.f32.mrb[2].mxu0 }
 0x124   :  { %v300_v21 = vsel %vm292_vm2, %v294_v16, 0.0  ;;  %v283_v22 = vadd.f32 %v6406_v19, %v5768_v10  ;;  %v277_v23 = vpop.f32.mrb[3].mxu0 }
 0x125   :  { %v8439_v24 = vadd.f32 %v300_v21, %v289_v15  ;;  %v295_v25 = vsel %vm292_vm2, %v293_v18, %v294_v16  ;;  %v278_v26 = vadd.f32 %v5768_v10, %v277_v23  ;;  %v299_v27 = vsel %vm292_vm2, %v286_v17, %v293_v18 }
 0x126   :  { %v307_v29 = vrot.slane %v283_v22, 7  ;;  %v8444_v30 = vadd.f32 %v299_v27, %v287_v20  ;;  %v8451_v35 = vadd.f32 %v295_v25, %v288_v28 }
 0x127   :  { %v306_v31 = vrot.slane %v278_v26, 7  ;;  %v386_v32 = vsel %vm379_vm3, %v8439_v24, 0.0 }
 0x128   :  { %v313_v33 = vsel %vm292_vm2, %v307_v29, 0.0  ;;  %387 = vadd.xlane.f32.xlu1 %v386_v32  ;;  %v380_v34 = vsel %vm379_vm3, %v8444_v30, 0.0  ;;  %v383_v42 = vsel %vm379_vm3, %v8451_v35, 0.0 }
 0x129   :  { %v308_v36 = vsel %vm292_vm2, %v306_v31, %v307_v29  ;;  %v312_v37 = vsel %vm292_vm2, %v286_v17, %v306_v31  ;;  %381 = vadd.xlane.f32.xlu0 %v380_v34  ;;  %v8455_v38 = vadd.f32 %v313_v33, %v289_v15  ;;  %v329_v34 = vld [vmem:[%s8273_s25 + $0x30] sm:$0xff] }
 0x12a   :  { %v8457_v39 = vadd.f32 %v312_v37, %v287_v20  ;;  %v8459_v40 = vadd.f32 %v308_v36, %v288_v28  ;;  %v330_v36 = vld [vmem:[%s8273_s25 + $0x38] sm:$0xff]  ;;  %v343_v37 = vld [vmem:[%s8293_s14 + $0x30] sm:$0xff] }
 0x12b   :  { %v395_v43 = vsel %vm379_vm3, %v8455_v38, 0.0 }
 0x12c   :  { %v389_v41 = vsel %vm379_vm3, %v8457_v39, 0.0  ;;  %v392_v44 = vsel %vm379_vm3, %v8459_v40, 0.0 }
 0x12d   :  { %390 = vadd.xlane.f32.xlu1 %v389_v41  ;;  %384 = vadd.xlane.f32.xlu0 %v383_v42  ;;  %v344_v42 = vld [vmem:[%s8293_s14 + $0x38] sm:$0xff]  ;;  %s8229_s14 = smov 104  }
 0x131   :  { %396 = vadd.xlane.f32.xlu1 %v395_v43  ;;  %393 = vadd.xlane.f32.xlu0 %v392_v44  ;;  %v489_v43 = vadd.f32 %v343_v37, %v329_v34  ;;  %v490_v44 = vadd.f32 %v344_v42, %v330_v36 }
 0x133   :  { %v7024_v45 = vpack.c.bf16 %v490_v44, %v489_v43 }
 0x135   :  { %7026 = vmatprep.subr.msk.bf16.mxu1 %vm8477_vm4, %v7024_v45 }
 0x136   :  { %7029 = vmatpush3.bf16.xpose.msk.msra.mxu1 %vm8477_vm4, %v7024_v45 }
 0x137   :  { %7032 = vmatprep.subr.msk.bf16.mxu1 %vm8477_vm4, %v7030_v52 }
 0x13e   :  { %7035 = vmatpush3.bf16.xpose.msk.msra.mxu1 %vm8477_vm4, %v7030_v52 }
 0x13f   :  { %7038 = vmatprep.subr.msk.bf16.mxu1 %vm8477_vm4, %v7036_v60 }
 0x146   :  { %7041 = vmatpush3.bf16.xpose.msk.msra.mxu1 %vm8477_vm4, %v7036_v60 }
 0x1b5   :  { %v388_v3 = vpop.xlane.xlu1 %387 }
 0x1b6   :  { %v401_v4 = vmul.f32 0.03125, %v388_v3  ;;  %v382_v5 = vpop.xlane.xlu0 %381 }
 0x1b7   :  { %v399_v6 = vmul.f32 0.03125, %v382_v5 }
 0x1b8   :  { %v8500_v7 = vsub.f32 %v8439_v24, %v401_v4 }
 0x1b9   :  { %v8503_v8 = vsub.f32 %v8444_v30, %v399_v6 }
 0x1ba   :  { %v391_v9 = vpop.xlane.xlu1 %390  ;;  %v385_v10 = vpop.xlane.xlu0 %384  ;;  %v413_v14 = vmul.f32 %v8500_v7, %v8500_v7 }
 0x1bb   :  { %v402_v11 = vmul.f32 0.03125, %v391_v9  ;;  %v400_v12 = vmul.f32 0.03125, %v385_v10  ;;  %v411_v13 = vmul.f32 %v8503_v8, %v8503_v8 }
 0x1bc   :  { %v423_v23 = vsel %vm379_vm3, %v413_v14, 0.0 }
 0x1bd   :  { %v8510_v15 = vsub.f32 %v8457_v39, %v402_v11  ;;  %v8513_v16 = vsub.f32 %v8451_v35, %v400_v12  ;;  %v417_v17 = vsel %vm379_vm3, %v411_v13, 0.0 }
 0x1be   :  { %v397_v18 = vpop.xlane.xlu1 %396  ;;  %418 = vadd.xlane.f32.xlu0 %v417_v17  ;;  %v394_v19 = vpop.xlane.xlu0 %393 }
 0x1bf   :  { %v404_v20 = vmul.f32 0.03125, %v397_v18  ;;  %v403_v21 = vmul.f32 0.03125, %v394_v19  ;;  %v412_v22 = vmul.f32 %v8513_v16, %v8513_v16  ;;  %v414_v28 = vmul.f32 %v8510_v15, %v8510_v15 }
 0x1c1   :  { %v8520_v25 = vsub.f32 %v8455_v38, %v404_v20  ;;  %v8523_v26 = vsub.f32 %v8459_v40, %v403_v21  ;;  %v420_v27 = vsel %vm379_vm3, %v412_v22, 0.0  ;;  %v426_v31 = vsel %vm379_vm3, %v414_v28, 0.0  ;;  %v5777_v20 = vld [vmem:[%s8283_s3] ss:$0 sm:$0xff]  ;;  %s8227_s3 = smov 72  }
 0x1c2   :  { %424 = vadd.xlane.f32.xlu0 %v423_v23  ;;  %421 = vadd.xlane.f32.xlu1 %v420_v27  ;;  %v5778_v22 = vld [vmem:[%s8288_s8] ss:$0 sm:$0xff]  ;;  %s8228_s8 = smov 112  }
 0x1c3   :  { %v415_v29 = vmul.f32 %v8523_v26, %v8523_v26  ;;  %v416_v33 = vmul.f32 %v8520_v25, %v8520_v25 }
 0x1c5   :  { %v429_v32 = vsel %vm379_vm3, %v415_v29, 0.0  ;;  %v432_v41 = vsel %vm379_vm3, %v416_v33, 0.0 }
 0x1c6   :  { %427 = vadd.xlane.f32.xlu1 %v426_v31  ;;  %430 = vadd.xlane.f32.xlu0 %v429_v32 }
 0x1ca   :  { %433 = vadd.xlane.f32.xlu1 %v432_v41 }
 0x24b   :  { %v419_v61 = vpop.xlane.xlu0 %418 }
 0x24c   :  { %v435_v62 = vmul.f32 0.03125, %v419_v61 }
 0x24e   :  { %v441_v63 = vadd.f32 1e-06, %v435_v62 }
 0x24f   :  { %v422_v0 = vpop.xlane.xlu1 %421  ;;  %v425_v1 = vpop.xlane.xlu0 %424 }
 0x250   :  { %7779 = vrsqrt.f32 %v441_v63  ;;  %v436_v2 = vmul.f32 0.03125, %v422_v0  ;;  %v437_v3 = vmul.f32 0.03125, %v425_v1 }
 0x252   :  { %v442_v4 = vadd.f32 1e-06, %v436_v2  ;;  %v443_v5 = vadd.f32 1e-06, %v437_v3 }
 0x253   :  { %v428_v6 = vpop.xlane.xlu1 %427  ;;  %v431_v9 = vpop.xlane.xlu0 %430 }
 0x254   :  { %7781 = vrsqrt.f32 %v442_v4  ;;  %v438_v10 = vmul.f32 0.03125, %v428_v6  ;;  %v439_v11 = vmul.f32 0.03125, %v431_v9 }
 0x255   :  { %7783 = vrsqrt.f32 %v443_v5 }
 0x256   :  { %v444_v12 = vadd.f32 1e-06, %v438_v10  ;;  %v445_v13 = vadd.f32 1e-06, %v439_v11 }
 0x257   :  { %v434_v14 = vpop.xlane.xlu1 %433 }
 0x258   :  { %7785 = vrsqrt.f32 %v444_v12  ;;  %v440_v17 = vmul.f32 0.03125, %v434_v14 }
 0x259   :  { %7787 = vrsqrt.f32 %v445_v13 }
 0x25a   :  { %v7780_v18 = vpop.eup %7779  ;;  %v446_v19 = vadd.f32 1e-06, %v440_v17 }
 0x25b   :  { %v453_v21 = vmul.f32 %v7780_v18, %v8503_v8 }
 0x25c   :  { %7789 = vrsqrt.f32 %v446_v19 }
 0x25d   :  { %v465_v23 = vmul.f32 %v5777_v20, %v453_v21 }
 0x25e   :  { %v7782_v27 = vpop.eup %7781 }
 0x25f   :  { %v7784_v28 = vpop.eup %7783  ;;  %v477_v29 = vadd.f32 %v5778_v22, %v465_v23  ;;  %v454_v31 = vmul.f32 %v7782_v27, %v8513_v16 }
 0x260   :  { %v455_v32 = vmul.f32 %v7784_v28, %v8500_v7 }
 0x261   :  { %6431 = vmatprep.mubr.msk.f32.mxu1 %vm379_vm3, %v477_v29  ;;  %v466_v33 = vmul.f32 %v5777_v20, %v454_v31 }
 0x262   :  { %v7786_v34 = vpop.eup %7785  ;;  %v467_v36 = vmul.f32 %v5777_v20, %v455_v32 }
 0x263   :  { %v7788_v37 = vpop.eup %7787  ;;  %v478_v41 = vadd.f32 %v5778_v22, %v466_v33  ;;  %v456_v42 = vmul.f32 %v7786_v34, %v8510_v15 }
 0x264   :  { %v479_v8 = vadd.f32 %v5778_v22, %v467_v36  ;;  %v457_v43 = vmul.f32 %v7788_v37, %v8523_v26  ;;  %v5779_v26 = vld [vmem:[%s8298_s19] ss:$0 sm:$0xff]  ;;  %s8230_s19 = smov 48  }
 0x265   :  { %6432 = vmatmul.mubr.msk.f32.vlgmr.msra.gmra.mrb[0].mxu1 %vm379_vm3, %v478_v41  ;;  %v468_v44 = vmul.f32 %v5777_v20, %v456_v42 }
 0x266   :  { %v7790_v45 = vpop.eup %7789  ;;  %6434 = vmatprep.mubr.msk.f32.mxu1 %vm379_vm3, %v479_v8  ;;  %v469_v7 = vmul.f32 %v5777_v20, %v457_v43 }
 0x267   :  { %v480_v16 = vadd.f32 %v5778_v22, %v468_v44  ;;  %v458_v46 = vmul.f32 %v7790_v45, %v8520_v25 }
 0x268   :  { %v481_v47 = vadd.f32 %v5778_v22, %v469_v7 }
 0x269   :  { %6435 = vmatmul.mubr.msk.f32.gmra.mrb[2].mxu1 %vm379_vm3, %v480_v16  ;;  %v470_v48 = vmul.f32 %v5777_v20, %v458_v46 }
 0x26a   :  { %6437 = vmatprep.mubr.msk.f32.mxu1 %vm379_vm3, %v481_v47 }
 0x26b   :  { %v482_v15 = vadd.f32 %v5778_v22, %v470_v48 }
 0x26d   :  { %6438 = vmatmul.mubr.msk.f32.gmra.mrb[4].mxu1 %vm379_vm3, %v482_v15  ;;  %v8675_v15 = vld [vmem:[%s8278_s29 + $0x8] sm:$0xff] }
 0x338   :  { %v6433_v49 = vpop.f32.mrb[0].mxu1 }
 0x339   :  { %v8574_v50 = vadd.f32 %v6433_v49, %v5779_v26  ;;  %v621_v51 = vpop.f32.mrb[1].mxu1 }
 0x33a   :  { %v8576_v52 = vadd.f32 %v5779_v26, %v621_v51  ;;  %v8678_v51 = vld [vmem:[%s8278_s29] sm:$0xff] }
 0x33c   :  { %v6436_v54 = vpop.f32.mrb[2].mxu1  ;;  %6452 = vmatprep.mubr.msk.f32.mxu0 %vm668_vm5, %v8576_v52  ;;  %v8582_v25 = vpack.i.bf16 %v8574_v50, %v8576_v52 }
 0x33d   :  { %v8584_v55 = vadd.f32 %v6436_v54, %v5779_v26  ;;  %v631_v56 = vpop.f32.mrb[3].mxu1 }
 0x33e   :  { %v8586_v57 = vadd.f32 %v5779_v26, %v631_v56  ;;  %7540 = vrot.lane.b32.xlu0 %v8582_v25, %s8221_s0 }
 0x340   :  { %v6439_v58 = vpop.f32.mrb[4].mxu1  ;;  %v8592_v59 = vpack.i.bf16 %v8584_v55, %v8586_v57 }
 0x341   :  { %v8594_v60 = vadd.f32 %v6439_v58, %v5779_v26  ;;  %v641_v61 = vpop.f32.mrb[5].mxu1 }
 0x342   :  { %v8596_v62 = vadd.f32 %v5779_v26, %v641_v61  ;;  %7560 = vrot.lane.b32.xlu0 %v8592_v59, %s8222_s5  ;;  %7545 = vrot.lane.b32.xlu1 %v8592_v59, %s8221_s0 }
 0x344   :  { %v8604_v63 = vpack.i.bf16 %v8594_v60, %v8596_v62 }
 0x346   :  { %997 = vrot.lane.b32.xlu0 %v8576_v52, %s8223_s9  ;;  %7550 = vrot.lane.b32.xlu1 %v8604_v63, %s8221_s0 }
 0x34a   :  { %1001 = vrot.lane.b32.xlu0 %v8586_v57, %s8223_s9  ;;  %7555 = vrot.lane.b32.xlu1 %v8582_v25, %s8222_s5 }
 0x34e   :  { %1005 = vrot.lane.b32.xlu0 %v8596_v62, %s8223_s9  ;;  %7565 = vrot.lane.b32.xlu1 %v8604_v63, %s8222_s5 }
 0x352   :  { %7575 = vrot.lane.b32.xlu0 %v8592_v59, %s8224_s13  ;;  %999 = vrot.lane.b32.xlu1 %v8574_v50, %s8223_s9 }
 0x356   :  { %1003 = vrot.lane.b32.xlu1 %v8584_v55, %s8223_s9 }
 0x35a   :  { %1007 = vrot.lane.b32.xlu1 %v8594_v60, %s8223_s9 }
 0x35e   :  { %7570 = vrot.lane.b32.xlu1 %v8582_v25, %s8224_s13 }
 0x3b0   :  { %v7541_v0 = vpop.permute.xlu0 %7540 }
 0x3b1   :  { %v7543_v1 = vunpack.i.h.bf16 %v7541_v0  ;;  %v7542_v2 = vunpack.i.l.bf16 %v7541_v0 }
 0x3b3   :  { %v7042_v4 = vpack.c.bf16 %v7543_v1, %v7542_v2 }
 0x3b4   :  { %v7546_v5 = vpop.permute.xlu1 %7545  ;;  %v7561_v6 = vpop.permute.xlu0 %7560 }
 0x3b5   :  { %v7548_v9 = vunpack.i.h.bf16 %v7546_v5  ;;  %v7547_v10 = vunpack.i.l.bf16 %v7546_v5  ;;  %7044 = vmatprep.subr.msk.bf16.mxu0 %vm8630_vm6, %v7042_v4  ;;  %v7563_v18 = vunpack.i.h.bf16 %v7561_v6  ;;  %v7562_v20 = vunpack.i.l.bf16 %v7561_v6 }
 0x3b6   :  { %7047 = vmatpush3.bf16.xpose.msk.msra.mxu0 %vm8630_vm6, %v7042_v4 }
 0x3b7   :  { %v7048_v11 = vpack.c.bf16 %v7548_v9, %v7547_v10  ;;  %v7078_v29 = vpack.c.bf16 %v7563_v18, %v7562_v20 }
 0x3b8   :  { %v7551_v12 = vpop.permute.xlu1 %7550  ;;  %v998_v13 = vpop.permute.xlu0 %997 }
 0x3b9   :  { %v7553_v14 = vunpack.i.h.bf16 %v7551_v12  ;;  %v7552_v17 = vunpack.i.l.bf16 %v7551_v12  ;;  %7050 = vmatprep.subr.msk.bf16.mxu0 %vm8630_vm6, %v7048_v11  ;;  %6494 = vmatprep.mubr.msk.f32.mxu1 %vm668_vm5, %v998_v13 }
 0x3bb   :  { %v7054_v21 = vpack.c.bf16 %v7553_v14, %v7552_v17  ;;  %v8692_v14 = vld [vmem:[%s8278_s29 + $0x18] sm:$0xff] }
 0x3bc   :  { %v7556_v19 = vpop.permute.xlu1 %7555  ;;  %v1002_v31 = vpop.permute.xlu0 %1001 }
 0x3bd   :  { %v7558_v22 = vunpack.i.h.bf16 %v7556_v19  ;;  %v7557_v23 = vunpack.i.l.bf16 %v7556_v19 }
 0x3be   :  { %7053 = vmatpush3.bf16.xpose.msk.msra.mxu0 %vm8630_vm6, %v7048_v11 }
 0x3bf   :  { %v7072_v27 = vpack.c.bf16 %v7558_v22, %v7557_v23  ;;  %7056 = vmatprep.subr.msk.bf16.mxu0 %vm8630_vm6, %v7054_v21 }
 0x3c0   :  { %v7566_v28 = vpop.permute.xlu1 %7565  ;;  %v1006_v36 = vpop.permute.xlu0 %1005 }
 0x3c1   :  { %7074 = vmatprep.subr.msk.bf16.mxu1 %vm8630_vm6, %v7072_v27  ;;  %v7568_v33 = vunpack.i.h.bf16 %v7566_v28  ;;  %v7567_v34 = vunpack.i.l.bf16 %v7566_v28 }
 0x3c2   :  { %7077 = vmatpush3.bf16.xpose.msk.msra.mxu1 %vm8630_vm6, %v7072_v27 }
 0x3c3   :  { %7080 = vmatprep.subr.msk.bf16.mxu1 %vm8630_vm6, %v7078_v29  ;;  %v7084_v41 = vpack.c.bf16 %v7568_v33, %v7567_v34 }
 0x3c4   :  { %v1000_v32 = vpop.permute.xlu1 %999  ;;  %v7576_v8 = vpop.permute.xlu0 %7575 }
 0x3c5   :  { %v7578_v44 = vunpack.i.h.bf16 %v7576_v8  ;;  %v7577_v45 = vunpack.i.l.bf16 %v7576_v8 }
 0x3c6   :  { %7059 = vmatpush3.bf16.xpose.msk.msra.mxu0 %vm8630_vm6, %v7054_v21 }
 0x3c7   :  { %v7064_v47 = vpack.c.bf16 %v7578_v44, %v7577_v45 }
 0x3c8   :  { %v1004_v37 = vpop.permute.xlu1 %1003 }
 0x3ca   :  { %7083 = vmatpush3.bf16.xpose.msk.msra.mxu1 %vm8630_vm6, %v7078_v29  ;;  %v8701_v29 = vld [vmem:[%s8278_s29 + $0x28] sm:$0xff] }
 0x3cb   :  { %7086 = vmatprep.subr.msk.bf16.mxu1 %vm8630_vm6, %v7084_v41 }
 0x3cc   :  { %v1008_v42 = vpop.permute.xlu1 %1007 }
 0x3cd   :  { %6453 = vmatmul.mubr.msk.f32.vlgmr.msra.gmra.mrb[4].mxu0 %vm668_vm5, %v8574_v50 }
 0x3ce   :  { %6455 = vmatprep.mubr.msk.f32.mxu0 %vm668_vm5, %v8586_v57 }
 0x3d0   :  { %v7571_v43 = vpop.permute.xlu1 %7570 }
 0x3d1   :  { %v7573_v7 = vunpack.i.h.bf16 %v7571_v43  ;;  %v7572_v16 = vunpack.i.l.bf16 %v7571_v43  ;;  %6456 = vmatmul.mubr.msk.f32.gmra.mrb[6].mxu0 %vm668_vm5, %v8584_v55 }
 0x3d2   :  { %6458 = vmatprep.mubr.msk.f32.mxu0 %vm668_vm5, %v8596_v62  ;;  %7089 = vmatpush3.bf16.xpose.msk.msra.mxu1 %vm8630_vm6, %v7084_v41 }
 0x3d3   :  { %v7060_v46 = vpack.c.bf16 %v7573_v7, %v7572_v16  ;;  %v8721_v16 = vld [vmem:[%s8278_s29 + $0x20] sm:$0xff] }
 0x3d5   :  { %6459 = vmatmul.mubr.msk.f32.gmra.mrb[8].mxu0 %vm668_vm5, %v8594_v60  ;;  %7061 = vmatprep.subr.bf16.mxu0 %v7060_v46 }
 0x3d6   :  { %7063 = vmatpush3.bf16.msra.mxu0 %v7060_v46 }
 0x3d7   :  { %7065 = vmatprep.subr.bf16.mxu0 %v7064_v47 }
 0x3d9   :  { %6495 = vmatmul.mubr.msk.f32.vlgmr.msra.gmra.mrb[6].mxu1 %vm668_vm5, %v1000_v32  ;;  %v8705_v32 = vld [vmem:[%s8278_s29 + $0x10] sm:$0xff] }
 0x3da   :  { %7067 = vmatpush3.bf16.msra.mxu0 %v7064_v47  ;;  %6497 = vmatprep.mubr.msk.f32.mxu1 %vm668_vm5, %v1002_v31 }
 0x3dd   :  { %6498 = vmatmul.mubr.msk.f32.gmra.mrb[8].mxu1 %vm668_vm5, %v1004_v37 }
 0x3de   :  { %6500 = vmatprep.mubr.msk.f32.mxu1 %vm668_vm5, %v1006_v36 }
 0x3e1   :  { %6501 = vmatmul.mubr.msk.f32.gmra.mrb[10].mxu1 %vm668_vm5, %v1008_v42 }
 0x4a0   :  { %v6454_v48 = vpop.f32.mrb[4].mxu0 }
 0x4a1   :  { %v789_v26 = vmul.f32 0.35355338, %v6454_v48  ;;  %v759_v49 = vpop.f32.mrb[5].mxu0 }
 0x4a2   :  { %v788_v54 = vmul.f32 0.35355338, %v759_v49 }
 0x4a3   :  { %v8681_v56 = vadd.f32 %v789_v26, %v8675_v15 }
 0x4a4   :  { %v6457_v58 = vpop.f32.mrb[6].mxu0  ;;  %v8684_v61 = vadd.f32 %v788_v54, %v8678_v51 }
 0x4a5   :  { %v769_v0 = vpop.f32.mrb[7].mxu0  ;;  %v803_v1 = vsel %vm176_vm0, %v8681_v56, -inf  ;;  %v791_v11 = vmul.f32 0.35355338, %v6457_v58 }
 0x4a6   :  { %804 = vmax.xlane.f32.xlu1 %v803_v1  ;;  %v800_v2 = vsel %vm176_vm0, %v8684_v61, -inf  ;;  %v790_v23 = vmul.f32 0.35355338, %v769_v0 }
 0x4a7   :  { %801 = vmax.xlane.f32.xlu0 %v800_v2  ;;  %v8698_v28 = vadd.f32 %v791_v11, %v8692_v14 }
 0x4a8   :  { %v6460_v4 = vpop.f32.mrb[8].mxu0  ;;  %v796_v8 = vadd.f32 %v790_v23, %v8705_v32 }
 0x4a9   :  { %v779_v5 = vpop.f32.mrb[9].mxu0  ;;  %v793_v19 = vmul.f32 0.35355338, %v6460_v4  ;;  %v809_v42 = vsel %vm176_vm0, %v8698_v28, -inf }
 0x4aa   :  { %v792_v44 = vmul.f32 0.35355338, %v779_v5  ;;  %v806_v45 = vsel %vm176_vm0, %v796_v8, -inf }
 0x4ab   :  { %v8709_v37 = vadd.f32 %v793_v19, %v8701_v29 }
 0x4ac   :  { %v6496_v6 = vpop.f32.mrb[6].mxu1  ;;  %v8726_v48 = vadd.f32 %v792_v44, %v8721_v16 }
 0x4ad   :  { %v1141_v9 = vmul.f32 0.35355338, %v6496_v6  ;;  %v1111_v10 = vpop.f32.mrb[7].mxu1  ;;  %v815_v43 = vsel %vm176_vm0, %v8709_v37, -inf }
 0x4ae   :  { %v1140_v12 = vmul.f32 0.35355338, %v1111_v10  ;;  %v812_v26 = vsel %vm176_vm0, %v8726_v48, -inf }
 0x4af   :  { %v1147_v13 = vadd.f32 %v1141_v9, %v8675_v15 }
 0x4b0   :  { %v6499_v17 = vpop.f32.mrb[8].mxu1  ;;  %v1146_v18 = vadd.f32 %v1140_v12, %v8678_v51 }
 0x4b1   :  { %v1143_v20 = vmul.f32 0.35355338, %v6499_v17  ;;  %v1121_v21 = vpop.f32.mrb[9].mxu1  ;;  %v1155_v22 = vsel %vm176_vm0, %v1147_v13, -inf }
 0x4b2   :  { %1156 = vmax.xlane.f32.xlu1 %v1155_v22  ;;  %v1152_v27 = vsel %vm176_vm0, %v1146_v18, -inf  ;;  %v1142_v41 = vmul.f32 0.35355338, %v1121_v21 }
 0x4b3   :  { %1153 = vmax.xlane.f32.xlu0 %v1152_v27  ;;  %v1149_v31 = vadd.f32 %v1143_v20, %v8692_v14 }
 0x4b4   :  { %v6502_v33 = vpop.f32.mrb[10].mxu1  ;;  %v8718_v7 = vadd.f32 %v1142_v41, %v8705_v32 }
 0x4b5   :  { %v1131_v34 = vpop.f32.mrb[11].mxu1  ;;  %v1161_v36 = vsel %vm176_vm0, %v1149_v31, -inf  ;;  %v1145_v58 = vmul.f32 0.35355338, %v6502_v33 }
 0x4b6   :  { %1162 = vmax.xlane.f32.xlu1 %v1161_v36  ;;  %v1144_v46 = vmul.f32 0.35355338, %v1131_v34  ;;  %v1158_v47 = vsel %vm176_vm0, %v8718_v7, -inf }
 0x4b7   :  { %810 = vmax.xlane.f32.xlu0 %v809_v42  ;;  %v8740_v0 = vadd.f32 %v1145_v58, %v8701_v29 }
 0x4b8   :  { %v8731_v49 = vadd.f32 %v1144_v46, %v8721_v16 }
 0x4b9   :  { %v1167_v1 = vsel %vm176_vm0, %v8740_v0, -inf }
 0x4ba   :  { %816 = vmax.xlane.f32.xlu1 %v815_v43  ;;  %v1164_v54 = vsel %vm176_vm0, %v8731_v49, -inf }
 0x4bb   :  { %807 = vmax.xlane.f32.xlu0 %v806_v45 }
 0x4bf   :  { %1159 = vmax.xlane.f32.xlu0 %v1158_v47 }
 0x4c3   :  { %813 = vmax.xlane.f32.xlu0 %v812_v26 }
 0x4c7   :  { %1165 = vmax.xlane.f32.xlu0 %v1164_v54 }
 0x4cb   :  { %7580 = vrot.lane.b32.xlu1 %v8604_v63, %s8224_s13 }
 0x4dd   :  { %7585 = vrot.lane.b32.xlu0 %v8582_v25, %s8225_s17 }
 0x4ef   :  { %1168 = vmax.xlane.f32.xlu1 %v1167_v1 }
 0x500   :  { %7590 = vrot.lane.b32.xlu1 %v8592_v59, %s8225_s17 }
 0x504   :  { %7595 = vrot.lane.b32.xlu1 %v8604_v63, %s8225_s17 }
 0x533   :  { %v805_v2 = vpop.xlane.xlu1 %804 }
 0x534   :  { %v819_v4 = vsub.f32 %v8681_v56, %v805_v2  ;;  %v802_v6 = vpop.xlane.xlu0 %801 }
 0x535   :  { %v818_v9 = vsub.f32 %v8684_v61, %v802_v6 }
 0x536   :  { %v826_v5 = vmul.f32 1.442695, %v819_v4 }
 0x537   :  { %v824_v20 = vmul.f32 1.442695, %v818_v9 }
 0x538   :  { %7791 = vpow2.f32 %v826_v5 }
 0x53f   :  { %v1157_v10 = vpop.xlane.xlu1 %1156 }
 0x540   :  { %v1171_v11 = vsub.f32 %v1147_v13, %v1157_v10  ;;  %v1154_v12 = vpop.xlane.xlu0 %1153 }
 0x541   :  { %v1170_v17 = vsub.f32 %v1146_v18, %v1154_v12 }
 0x542   :  { %v8750_v19 = vpop.eup %7791  ;;  %v1178_v21 = vmul.f32 1.442695, %v1171_v11 }
 0x543   :  { %v1176_v22 = vmul.f32 1.442695, %v1170_v17  ;;  %v1163_v23 = vpop.xlane.xlu1 %1162  ;;  %v839_v27 = vsel %vm176_vm0, %v8750_v19, 0.0 }
 0x544   :  { %7793 = vpow2.f32 %v1178_v21  ;;  %v1173_v56 = vsub.f32 %v1149_v31, %v1163_v23  ;;  %v811_v33 = vpop.xlane.xlu0 %810  ;;  %840 = vadd.xlane.f32.xlu1 %v839_v27 }
 0x545   :  { %7795 = vpow2.f32 %v1176_v22  ;;  %v821_v61 = vsub.f32 %v8698_v28, %v811_v33 }
 0x546   :  { %7797 = vpow2.f32 %v824_v20  ;;  %v1182_v13 = vmul.f32 1.442695, %v1173_v56 }
 0x547   :  { %v830_v34 = vmul.f32 1.442695, %v821_v61  ;;  %v817_v18 = vpop.xlane.xlu1 %816 }
 0x548   :  { %v808_v36 = vpop.xlane.xlu0 %807  ;;  %v823_v42 = vsub.f32 %v8709_v37, %v817_v18 }
 0x549   :  { %7799 = vpow2.f32 %v830_v34  ;;  %v820_v41 = vsub.f32 %v796_v8, %v808_v36 }
 0x54a   :  { %7801 = vpow2.f32 %v1182_v13  ;;  %v834_v28 = vmul.f32 1.442695, %v823_v42 }
 0x54b   :  { %v828_v43 = vmul.f32 1.442695, %v820_v41  ;;  %v7581_v44 = vpop.permute.xlu1 %7580 }
 0x54c   :  { %v7583_v45 = vunpack.i.h.bf16 %v7581_v44  ;;  %v7582_v46 = vunpack.i.l.bf16 %v7581_v44  ;;  %v1160_v31 = vpop.xlane.xlu0 %1159 }
 0x54d   :  { %v1172_v47 = vsub.f32 %v8718_v7, %v1160_v31  ;;  %7803 = vpow2.f32 %v828_v43 }
 0x54e   :  { %v8757_v26 = vpop.eup %7793  ;;  %v7068_v54 = vpack.c.bf16 %v7583_v45, %v7582_v46 }
 0x54f   :  { %v8759_v58 = vpop.eup %7795  ;;  %v1180_v1 = vmul.f32 1.442695, %v1172_v47  ;;  %v1191_v8 = vsel %vm176_vm0, %v8757_v26, 0.0 }
 0x550   :  { %v8763_v2 = vpop.eup %7797  ;;  %7069 = vmatprep.subr.bf16.mxu0 %v7068_v54  ;;  %1192 = vadd.xlane.f32.xlu0 %v1191_v8  ;;  %v814_v37 = vpop.xlane.xlu0 %813  ;;  %v1188_v4 = vsel %vm176_vm0, %v8759_v58, 0.0 }
 0x551   :  { %7805 = vpow2.f32 %v1180_v1  ;;  %1189 = vadd.xlane.f32.xlu1 %v1188_v4  ;;  %7071 = vmatpush3.bf16.msra.mxu0 %v7068_v54  ;;  %v836_v5 = vsel %vm176_vm0, %v8763_v2, 0.0  ;;  %v822_v13 = vsub.f32 %v8726_v48, %v814_v37 }
 0x552   :  { %7807 = vpow2.f32 %v834_v28 }
 0x553   :  { %v8767_v7 = vpop.eup %7799  ;;  %v832_v36 = vmul.f32 1.442695, %v822_v13 }
 0x554   :  { %v8771_v6 = vpop.eup %7801  ;;  %837 = vadd.xlane.f32.xlu0 %v836_v5  ;;  %v1166_v9 = vpop.xlane.xlu0 %1165  ;;  %v845_v10 = vsel %vm176_vm0, %v8767_v7, 0.0 }
 0x555   :  { %846 = vadd.xlane.f32.xlu1 %v845_v10  ;;  %v1197_v11 = vsel %vm176_vm0, %v8771_v6, 0.0  ;;  %v1174_v44 = vsub.f32 %v8731_v49, %v1166_v9 }
 0x557   :  { %v8777_v12 = vpop.eup %7803  ;;  %v1184_v45 = vmul.f32 1.442695, %v1174_v44 }
 0x558   :  { %1198 = vadd.xlane.f32.xlu0 %v1197_v11  ;;  %v7586_v17 = vpop.permute.xlu0 %7585  ;;  %v842_v23 = vsel %vm176_vm0, %v8777_v12, 0.0 }
 0x559   :  { %v7588_v20 = vunpack.i.h.bf16 %v7586_v17  ;;  %v7587_v21 = vunpack.i.l.bf16 %v7586_v17 }
 0x55b   :  { %v8779_v22 = vpop.eup %7805  ;;  %v8783_v27 = vpack.c.bf16 %v7588_v20, %v7587_v21 }
 0x55c   :  { %v8785_v56 = vpop.eup %7807  ;;  %843 = vadd.xlane.f32.xlu0 %v842_v23  ;;  %v1194_v33 = vsel %vm176_vm0, %v8779_v22, 0.0 }
 0x55d   :  { %1195 = vadd.xlane.f32.xlu1 %v1194_v33  ;;  %7091 = vmatprep.subr.bf16.mxu0 %v8783_v27  ;;  %v851_v61 = vsel %vm176_vm0, %v8785_v56, 0.0 }
 0x560   :  { %852 = vadd.xlane.f32.xlu0 %v851_v61 }
 0x56e   :  { %7605 = vrot.lane.b32.xlu1 %v8592_v59, %s8226_s21 }
 0x572   :  { %7610 = vrot.lane.b32.xlu1 %v8582_v25, %s8227_s3 }
 0x576   :  { %7615 = vrot.lane.b32.xlu1 %v8604_v63, %s8226_s21 }
 0x57a   :  { %7620 = vrot.lane.b32.xlu1 %v8592_v59, %s8227_s3 }
 0x57c   :  { %v1169_v34 = vpop.xlane.xlu1 %1168 }
 0x57d   :  { %v1175_v18 = vsub.f32 %v8740_v0, %v1169_v34 }
 0x57e   :  { %1349 = vrot.lane.b32.xlu1 %v8576_v52, %s8228_s8 }
 0x57f   :  { %v1186_v41 = vmul.f32 1.442695, %v1175_v18 }
 0x580   :  { %v7591_v47 = vpop.permute.xlu1 %7590 }
 0x581   :  { %7809 = vpow2.f32 %v1186_v41  ;;  %v7593_v9 = vunpack.i.h.bf16 %v7591_v47  ;;  %v7592_v10 = vunpack.i.l.bf16 %v7591_v47 }
 0x582   :  { %7625 = vrot.lane.b32.xlu1 %v8604_v63, %s8227_s3  ;;  %7811 = vpow2.f32 %v832_v36 }
 0x583   :  { %7813 = vpow2.f32 %v1184_v45  ;;  %v7094_v23 = vpack.c.bf16 %v7593_v9, %v7592_v10 }
 0x584   :  { %v7596_v28 = vpop.permute.xlu1 %7595 }
 0x585   :  { %v7597_v21 = vunpack.i.l.bf16 %v7596_v28 }
 0x586   :  { %1355 = vrot.lane.b32.xlu1 %v8584_v55, %s8228_s8 }
 0x58a   :  { %1359 = vrot.lane.b32.xlu1 %v8594_v60, %s8228_s8 }
 0x58b   :  { %v8810_v48 = vpop.eup %7809 }
 0x58c   :  { %v1203_v0 = vsel %vm176_vm0, %v8810_v48, 0.0  ;;  %v8814_v42 = vpop.eup %7811 }
 0x58d   :  { %1204 = vadd.xlane.f32.xlu0 %v1203_v0  ;;  %v848_v43 = vsel %vm176_vm0, %v8814_v42, 0.0  ;;  %v8827_v46 = vpop.eup %7813 }
 0x58e   :  { %1703 = vrot.lane.b32.xlu1 %v8574_v50, %s8229_s14  ;;  %v1200_v31 = vsel %vm176_vm0, %v8827_v46, 0.0 }
 0x591   :  { %849 = vadd.xlane.f32.xlu0 %v848_v43 }
 0x592   :  { %1707 = vrot.lane.b32.xlu1 %v8584_v55, %s8229_s14 }
 0x596   :  { %1711 = vrot.lane.b32.xlu1 %v8594_v60, %s8229_s14 }
 0x5a7   :  { %7600 = vrot.lane.b32.xlu0 %v8582_v25, %s8226_s21 }
 0x5c6   :  { %1201 = vadd.xlane.f32.xlu0 %v1200_v31 }
 0x5d1   :  { %v841_v54 = vpop.xlane.xlu1 %840 }
 0x5d2   :  { %7815 = vrcp.f32 %v841_v54 }
 0x5dc   :  { %1351 = vrot.lane.b32.xlu0 %v8574_v50, %s8228_s8  ;;  %v7816_v4 = vpop.eup %7815 }
 0x5dd   :  { %v8833_v55 = vpop.xlane.xlu0 %1192  ;;  %v861_v17 = vmul.f32 %v7816_v4, %v8750_v19 }
 0x5de   :  { %v1190_v60 = vpop.xlane.xlu1 %1189 }
 0x5e0   :  { %1353 = vrot.lane.b32.xlu0 %v8586_v57, %s8228_s8 }
 0x5e1   :  { %v838_v49 = vpop.xlane.xlu0 %837 }
 0x5e2   :  { %7817 = vrcp.f32 %v838_v49  ;;  %v847_v8 = vpop.xlane.xlu1 %846 }
 0x5e3   :  { %7819 = vrcp.f32 %v847_v8 }
 0x5e4   :  { %1357 = vrot.lane.b32.xlu0 %v8596_v62, %s8228_s8 }
 0x5e5   :  { %v8839_v1 = vpop.xlane.xlu0 %1198 }
 0x5e8   :  { %1701 = vrot.lane.b32.xlu0 %v8576_v52, %s8229_s14  ;;  %v7598_v52 = vunpack.i.h.bf16 %v7596_v28 }
 0x5e9   :  { %v844_v50 = vpop.xlane.xlu0 %843 }
 0x5ea   :  { %7821 = vrcp.f32 %v844_v50  ;;  %v1196_v37 = vpop.xlane.xlu1 %1195  ;;  %v7098_v13 = vpack.c.bf16 %v7598_v52, %v7597_v21 }
 0x5eb   :  { %7823 = vrcp.f32 %v1190_v60 }
 0x5ec   :  { %v7818_v5 = vpop.eup %7817  ;;  %1705 = vrot.lane.b32.xlu0 %v8586_v57, %s8229_s14 }
 0x5ed   :  { %v860_v11 = vmul.f32 %v7818_v5, %v8763_v2  ;;  %v7820_v33 = vpop.eup %7819  ;;  %v853_v47 = vpop.xlane.xlu0 %852 }
 0x5ee   :  { %v8847_v20 = vpop.permute.xlu1 %7605  ;;  %7825 = vrcp.f32 %v853_v47 }
 0x5ef   :  { %6473 = vmatprep.mubr.msk.f32.mxu0 %vm176_vm0, %v860_v11  ;;  %v7608_v52 = vunpack.i.h.bf16 %v8847_v20 }
 0x5f0   :  { %1709 = vrot.lane.b32.xlu0 %v8596_v62, %s8229_s14  ;;  %6474 = vmatmul.mubr.msk.f32.vlgmr.msra.gmra.mrb[10].mxu0 %vm176_vm0, %v861_v17  ;;  %v863_v62 = vmul.f32 %v7820_v33, %v8767_v7 }
 0x5f1   :  { %7093 = vmatpush3.bf16.msra.mxu0 %v8783_v27 }
 0x5f2   :  { %7095 = vmatprep.subr.bf16.mxu0 %v7094_v23  ;;  %v7611_v57 = vpop.permute.xlu1 %7610 }
 0x5f3   :  { %v7613_v2 = vunpack.i.h.bf16 %v7611_v57  ;;  %v7612_v61 = vunpack.i.l.bf16 %v7611_v57 }
 0x5f4   :  { %v7822_v19 = vpop.eup %7821 }
 0x5f5   :  { %v7132_v34 = vpack.c.bf16 %v7613_v2, %v7612_v61  ;;  %7097 = vmatpush3.bf16.msra.mxu0 %v7094_v23  ;;  %v862_v18 = vmul.f32 %v7822_v19, %v8777_v12  ;;  %v7824_v5 = vpop.eup %7823 }
 0x5f6   :  { %7099 = vmatprep.subr.bf16.mxu0 %v7098_v13  ;;  %v7616_v36 = vpop.permute.xlu1 %7615 }
 0x5f7   :  { %6476 = vmatprep.mubr.msk.f32.mxu0 %vm176_vm0, %v862_v18  ;;  %7134 = vmatprep.subr.msk.bf16.mxu1 %vm8630_vm6, %v7132_v34  ;;  %v7617_v57 = vunpack.i.l.bf16 %v7616_v36 }
 0x5f8   :  { %6477 = vmatmul.mubr.msk.f32.gmra.mrb[12].mxu0 %vm176_vm0, %v863_v62  ;;  %7137 = vmatpush3.bf16.xpose.msk.msra.mxu1 %vm8630_vm6, %v7132_v34  ;;  %v7826_v9 = vpop.eup %7825 }
 0x5f9   :  { %7101 = vmatpush3.bf16.msra.mxu0 %v7098_v13  ;;  %v865_v11 = vmul.f32 %v7826_v9, %v8785_v56 }
 0x5fa   :  { %v7621_v27 = vpop.permute.xlu1 %7620 }
 0x5fb   :  { %v7623_v41 = vunpack.i.h.bf16 %v7621_v27  ;;  %v7622_v0 = vunpack.i.l.bf16 %v7621_v27 }
 0x5fd   :  { %v7138_v43 = vpack.c.bf16 %v7623_v41, %v7622_v0 }
 0x5fe   :  { %v8862_v12 = vpop.permute.xlu1 %1349 }
 0x5ff   :  { %7140 = vmatprep.subr.msk.bf16.mxu1 %vm8630_vm6, %v7138_v43 }
 0x600   :  { %7143 = vmatpush3.bf16.xpose.msk.msra.mxu1 %vm8630_vm6, %v7138_v43 }
 0x602   :  { %v7626_v7 = vpop.permute.xlu1 %7625 }
 0x603   :  { %v7628_v44 = vunpack.i.h.bf16 %v7626_v7  ;;  %v7627_v45 = vunpack.i.l.bf16 %v7626_v7 }
 0x605   :  { %v7144_v31 = vpack.c.bf16 %v7628_v44, %v7627_v45 }
 0x606   :  { %v1356_v33 = vpop.permute.xlu1 %1355 }
 0x607   :  { %7146 = vmatprep.subr.msk.bf16.mxu1 %vm8630_vm6, %v7144_v31 }
 0x608   :  { %7149 = vmatpush3.bf16.xpose.msk.msra.mxu1 %vm8630_vm6, %v7144_v31 }
 0x61a   :  { %v1205_v28 = vpop.xlane.xlu0 %1204 }
 0x61e   :  { %v850_v54 = vpop.xlane.xlu0 %849 }
 0x61f   :  { %7827 = vrcp.f32 %v850_v54 }
 0x620   :  { %7829 = vrcp.f32 %v8833_v55  ;;  %v1212_v55 = vmul.f32 %v7824_v5, %v8759_v58 }
 0x621   :  { %7831 = vrcp.f32 %v1196_v37 }
 0x622   :  { %v7601_v49 = vpop.permute.xlu0 %7600  ;;  %7833 = vrcp.f32 %v8839_v1  ;;  %v7607_v1 = vunpack.i.l.bf16 %v8847_v20  ;;  %v7618_v20 = vunpack.i.h.bf16 %v7616_v36 }
 0x623   :  { %v7603_v8 = vunpack.i.h.bf16 %v7601_v49  ;;  %v7602_v50 = vunpack.i.l.bf16 %v7601_v49  ;;  %7835 = vrcp.f32 %v1205_v28 }
 0x624   :  { %v7108_v56 = vpack.c.bf16 %v7608_v52, %v7607_v1 }
 0x625   :  { %v7102_v4 = vpack.c.bf16 %v7603_v8, %v7602_v50 }
 0x627   :  { %7104 = vmatprep.subr.msk.bf16.mxu0 %vm8630_vm6, %v7102_v4 }
 0x629   :  { %v7828_v10 = vpop.eup %7827 }
 0x62a   :  { %v864_v60 = vmul.f32 %v7828_v10, %v8814_v42  ;;  %v7830_v17 = vpop.eup %7829 }
 0x62b   :  { %v7832_v37 = vpop.eup %7831  ;;  %v1213_v21 = vmul.f32 %v7830_v17, %v8757_v26  ;;  %v7114_v26 = vpack.c.bf16 %v7618_v20, %v7617_v57 }
 0x62c   :  { %6479 = vmatprep.mubr.msk.f32.mxu0 %vm176_vm0, %v864_v60  ;;  %v7834_v23 = vpop.eup %7833  ;;  %v1214_v42 = vmul.f32 %v7832_v37, %v8779_v22 }
 0x62d   :  { %6480 = vmatmul.mubr.msk.f32.gmra.mrb[14].mxu0 %vm176_vm0, %v865_v11  ;;  %v1215_v58 = vmul.f32 %v7834_v23, %v8771_v6  ;;  %v1360_v6 = vpop.permute.xlu1 %1359  ;;  %v7836_v19 = vpop.eup %7835 }
 0x62e   :  { %6515 = vmatprep.mubr.msk.f32.mxu0 %vm176_vm0, %v1212_v55  ;;  %v1217_v62 = vmul.f32 %v7836_v19, %v8810_v48 }
 0x631   :  { %6516 = vmatmul.mubr.msk.f32.vlgmr.msra.gmra.mrb[16].mxu0 %vm176_vm0, %v1213_v21  ;;  %v1704_v36 = vpop.permute.xlu1 %1703 }
 0x632   :  { %7107 = vmatpush3.bf16.xpose.msk.msra.mxu0 %vm8630_vm6, %v7102_v4  ;;  %6518 = vmatprep.mubr.msk.f32.mxu0 %vm176_vm0, %v1214_v42 }
 0x633   :  { %7110 = vmatprep.subr.msk.bf16.mxu0 %vm8630_vm6, %v7108_v56 }
 0x635   :  { %6519 = vmatmul.mubr.msk.f32.gmra.mrb[18].mxu0 %vm176_vm0, %v1215_v58  ;;  %v1708_v41 = vpop.permute.xlu1 %1707 }
 0x63a   :  { %7113 = vmatpush3.bf16.xpose.msk.msra.mxu0 %vm8630_vm6, %v7108_v56 }
 0x63b   :  { %7116 = vmatprep.subr.msk.bf16.mxu0 %vm8630_vm6, %v7114_v26 }
 0x642   :  { %7119 = vmatpush3.bf16.xpose.msk.msra.mxu0 %vm8630_vm6, %v7114_v26 }
 0x653   :  { %v1202_v22 = vpop.xlane.xlu0 %1201 }
 0x654   :  { %7837 = vrcp.f32 %v1202_v22 }
 0x657   :  { %v1352_v2 = vpop.permute.xlu0 %1351 }
 0x65b   :  { %v1354_v61 = vpop.permute.xlu0 %1353 }
 0x65e   :  { %v7838_v13 = vpop.eup %7837 }
 0x65f   :  { %v1358_v34 = vpop.permute.xlu0 %1357  ;;  %v1216_v18 = vmul.f32 %v7838_v13, %v8827_v46  ;;  %v1712_v46 = vpop.permute.xlu1 %1711 }
 0x661   :  { %6521 = vmatprep.mubr.msk.f32.mxu0 %vm176_vm0, %v1216_v18 }
 0x662   :  { %6522 = vmatmul.mubr.msk.f32.gmra.mrb[20].mxu0 %vm176_vm0, %v1217_v62 }
 0x663   :  { %v1702_v27 = vpop.permute.xlu0 %1701  ;;  %6536 = vmatprep.mubr.msk.f32.mxu0 %vm668_vm5, %v8862_v12 }
 0x664   :  { %6578 = vmatprep.mubr.msk.f32.mxu1 %vm668_vm5, %v1702_v27 }
 0x665   :  { %6579 = vmatmul.mubr.msk.f32.vlgmr.msra.gmra.mrb[12].mxu1 %vm668_vm5, %v1704_v36 }
 0x666   :  { %6537 = vmatmul.mubr.msk.f32.vlgmr.msra.gmra.mrb[22].mxu0 %vm668_vm5, %v1352_v2 }
 0x667   :  { %v1706_v0 = vpop.permute.xlu0 %1705  ;;  %6539 = vmatprep.mubr.msk.f32.mxu0 %vm668_vm5, %v1354_v61 }
 0x668   :  { %6581 = vmatprep.mubr.msk.f32.mxu1 %vm668_vm5, %v1706_v0 }
 0x669   :  { %6582 = vmatmul.mubr.msk.f32.gmra.mrb[14].mxu1 %vm668_vm5, %v1708_v41 }
 0x66a   :  { %6540 = vmatmul.mubr.msk.f32.gmra.mrb[24].mxu0 %vm668_vm5, %v1356_v33 }
 0x66b   :  { %v1710_v48 = vpop.permute.xlu0 %1709  ;;  %6542 = vmatprep.mubr.msk.f32.mxu0 %vm668_vm5, %v1358_v34 }
 0x66c   :  { %6584 = vmatprep.mubr.msk.f32.mxu1 %vm668_vm5, %v1710_v48 }
 0x66d   :  { %6585 = vmatmul.mubr.msk.f32.gmra.mrb[16].mxu1 %vm668_vm5, %v1712_v46 }
 0x66e   :  { %6543 = vmatmul.mubr.msk.f32.gmra.mrb[26].mxu0 %vm668_vm5, %v1360_v6 }
 0x6c3   :  { %v8917_v43 = vpop.f32.mrb[10].mxu0 }
 0x6c4   :  { %v8919_v12 = vpop.f32.mrb[11].mxu0 }
 0x6cb   :  { %v8921_v7 = vpop.f32.mrb[12].mxu0 }
 0x6cc   :  { %v8923_v44 = vpop.f32.mrb[13].mxu0 }
 0x700   :  { %v8925_v45 = vpop.f32.mrb[14].mxu0 }
 0x701   :  { %v8927_v31 = vpop.f32.mrb[15].mxu0 }
 0x704   :  { %v8929_v47 = vpop.f32.mrb[16].mxu0 }
 0x705   :  { %v8931_v28 = vpop.f32.mrb[17].mxu0 }
 0x708   :  { %v8933_v54 = vpop.f32.mrb[18].mxu0 }
 0x709   :  { %v8935_v49 = vpop.f32.mrb[19].mxu0 }
 0x735   :  { %v8937_v8 = vpop.f32.mrb[20].mxu0 }
 0x736   :  { %v8939_v50 = vpop.f32.mrb[21].mxu0 }
 0x738   :  { %v6580_v4 = vpop.f32.mrb[12].mxu1 }
 0x739   :  { %v1845_v5 = vmul.f32 0.35355338, %v6580_v4  ;;  %v6538_v9 = vpop.f32.mrb[22].mxu0  ;;  %v1815_v10 = vpop.f32.mrb[13].mxu1 }
 0x73a   :  { %v1844_v60 = vmul.f32 0.35355338, %v1815_v10  ;;  %v1463_v11 = vpop.f32.mrb[23].mxu0 }
 0x73b   :  { %v1851_v17 = vadd.f32 %v1845_v5, %v8675_v15  ;;  %v1493_v5 = vmul.f32 0.35355338, %v6538_v9  ;;  %v1492_v10 = vmul.f32 0.35355338, %v1463_v11 }
 0x73c   :  { %v6583_v55 = vpop.f32.mrb[14].mxu1  ;;  %v1850_v37 = vadd.f32 %v1844_v60, %v8678_v51 }
 0x73d   :  { %v1847_v52 = vmul.f32 0.35355338, %v6583_v55  ;;  %v6541_v1 = vpop.f32.mrb[24].mxu0  ;;  %v1825_v21 = vpop.f32.mrb[15].mxu1  ;;  %v1859_v23 = vsel %vm176_vm0, %v1851_v17, -inf }
 0x73e   :  { %v1846_v42 = vmul.f32 0.35355338, %v1825_v21  ;;  %1860 = vmax.xlane.f32.xlu1 %v1859_v23  ;;  %v1473_v56 = vpop.f32.mrb[25].mxu0  ;;  %v1856_v58 = vsel %vm176_vm0, %v1850_v37, -inf  ;;  %v8969_v23 = vadd.f32 %v1493_v5, %v8675_v15 }
 0x73f   :  { %1857 = vmax.xlane.f32.xlu0 %v1856_v58  ;;  %v8946_v20 = vadd.f32 %v1847_v52, %v8692_v14  ;;  %v1494_v58 = vmul.f32 0.35355338, %v1473_v56 }
 0x740   :  { %v6586_v57 = vpop.f32.mrb[16].mxu1  ;;  %v1852_v26 = vadd.f32 %v1846_v42, %v8705_v32  ;;  %v1498_v42 = vadd.f32 %v1492_v10, %v8678_v51  ;;  %v1507_v9 = vsel %vm176_vm0, %v8969_v23, -inf }
 0x741   :  { %v1849_v22 = vmul.f32 0.35355338, %v6586_v57  ;;  %v6544_v33 = vpop.f32.mrb[26].mxu0  ;;  %v1835_v2 = vpop.f32.mrb[17].mxu1  ;;  %v1865_v6 = vsel %vm176_vm0, %v8946_v20, -inf }
 0x742   :  { %v1848_v61 = vmul.f32 0.35355338, %v1835_v2  ;;  %1866 = vmax.xlane.f32.xlu1 %v1865_v6  ;;  %v1483_v19 = vpop.f32.mrb[27].mxu0  ;;  %v1862_v13 = vsel %vm176_vm0, %v1852_v26, -inf  ;;  %v1497_v52 = vmul.f32 0.35355338, %v6544_v33  ;;  %v1500_v33 = vadd.f32 %v1494_v58, %v8705_v32 }
 0x743   :  { %1863 = vmax.xlane.f32.xlu0 %v1862_v13  ;;  %v8953_v34 = vadd.f32 %v1849_v22, %v8701_v29  ;;  %v1504_v57 = vsel %vm176_vm0, %v1498_v42, -inf  ;;  %v1496_v22 = vmul.f32 0.35355338, %v1483_v19 }
 0x744   :  { %v8956_v18 = vadd.f32 %v1848_v61, %v8721_v16  ;;  %v8977_v11 = vadd.f32 %v1497_v52, %v8701_v29  ;;  %v1510_v29 = vsel %vm176_vm0, %v1500_v33, -inf }
 0x745   :  { %v1871_v36 = vsel %vm176_vm0, %v8953_v34, -inf  ;;  %v8987_v56 = vadd.f32 %v1496_v22, %v8721_v16 }
 0x746   :  { %1872 = vmax.xlane.f32.xlu1 %v1871_v36  ;;  %v1868_v62 = vsel %vm176_vm0, %v8956_v18, -inf }
 0x747   :  { %1869 = vmax.xlane.f32.xlu0 %v1868_v62 }
 0x7cb   :  { %v1861_v27 = vpop.xlane.xlu1 %1860 }
 0x7cc   :  { %v1875_v41 = vsub.f32 %v1851_v17, %v1861_v27  ;;  %v1858_v0 = vpop.xlane.xlu0 %1857  ;;  %v1495_v17 = vmul.f32 0.35355338, %v6541_v1  ;;  %v1519_v1 = vsel %vm176_vm0, %v8977_v11, -inf }
 0x7cd   :  { %v1874_v48 = vsub.f32 %v1850_v37, %v1858_v0 }
 0x7ce   :  { %v1882_v46 = vmul.f32 1.442695, %v1875_v41  ;;  %v1501_v15 = vadd.f32 %v1495_v17, %v8692_v14  ;;  %v1516_v14 = vsel %vm176_vm0, %v8987_v56, -inf }
 0x7cf   :  { %v1880_v4 = vmul.f32 1.442695, %v1874_v48  ;;  %v1867_v61 = vpop.xlane.xlu1 %1866 }
 0x7d0   :  { %7839 = vpow2.f32 %v1882_v46  ;;  %v1513_v51 = vsel %vm176_vm0, %v1501_v15, -inf  ;;  %v1864_v2 = vpop.xlane.xlu0 %1863  ;;  %v1877_v16 = vsub.f32 %v8946_v20, %v1867_v61 }
 0x7d1   :  { %7841 = vpow2.f32 %v1880_v4  ;;  %v1876_v6 = vsub.f32 %v1852_v26, %v1864_v2 }
 0x7d2   :  { %v1886_v19 = vmul.f32 1.442695, %v1877_v16 }
 0x7d3   :  { %v1884_v32 = vmul.f32 1.442695, %v1876_v6  ;;  %v1873_v0 = vpop.xlane.xlu1 %1872 }
 0x7d4   :  { %v1870_v27 = vpop.xlane.xlu0 %1869  ;;  %v1879_v48 = vsub.f32 %v8953_v34, %v1873_v0 }
 0x7d5   :  { %7843 = vpow2.f32 %v1884_v32  ;;  %v1878_v20 = vsub.f32 %v8956_v18, %v1870_v27 }
 0x7d6   :  { %7845 = vpow2.f32 %v1886_v19  ;;  %v1890_v46 = vmul.f32 1.442695, %v1879_v48 }
 0x7d7   :  { %v1888_v41 = vmul.f32 1.442695, %v1878_v20 }
 0x7d9   :  { %7847 = vpow2.f32 %v1888_v41 }
 0x7da   :  { %v8962_v60 = vpop.eup %7839  ;;  %7849 = vpow2.f32 %v1890_v46 }
 0x7db   :  { %v8964_v55 = vpop.eup %7841  ;;  %v1895_v21 = vsel %vm176_vm0, %v8962_v60, 0.0 }
 0x7dc   :  { %1896 = vadd.xlane.f32.xlu1 %v1895_v21  ;;  %v1892_v37 = vsel %vm176_vm0, %v8964_v55, 0.0 }
 0x7dd   :  { %1893 = vadd.xlane.f32.xlu0 %v1892_v37 }
 0x7df   :  { %v8996_v13 = vpop.eup %7843 }
 0x7e0   :  { %1508 = vmax.xlane.f32.xlu1 %v1507_v9  ;;  %v1898_v36 = vsel %vm176_vm0, %v8996_v13, 0.0  ;;  %v9000_v62 = vpop.eup %7845 }
 0x7e1   :  { %1505 = vmax.xlane.f32.xlu0 %v1504_v57  ;;  %v1901_v26 = vsel %vm176_vm0, %v9000_v62, 0.0 }
 0x7e3   :  { %v9010_v4 = vpop.eup %7847 }
 0x7e4   :  { %1520 = vmax.xlane.f32.xlu1 %v1519_v1  ;;  %v1904_v5 = vsel %vm176_vm0, %v9010_v4, 0.0 }
 0x7e5   :  { %1514 = vmax.xlane.f32.xlu0 %v1513_v51 }
 0x7e9   :  { %1511 = vmax.xlane.f32.xlu0 %v1510_v29 }
 0x7ed   :  { %1517 = vmax.xlane.f32.xlu0 %v1516_v14 }
 0x7f5   :  { %7635 = vrot.lane.b32.xlu1 %v8592_v59, %s8230_s19 }
 0x803   :  { %7630 = vrot.lane.b32.xlu0 %v8582_v25, %s8230_s19 }
 0x819   :  { %1899 = vadd.xlane.f32.xlu1 %v1898_v36 }
 0x822   :  { %1902 = vadd.xlane.f32.xlu0 %v1901_v26 }
 0x82a   :  { %7645 = vrot.lane.b32.xlu1 %v8582_v25, %s8231_s15  ;;  %v9014_v25 = vpop.eup %7849 }
 0x82b   :  { %v1907_v18 = vsel %vm176_vm0, %v9014_v25, 0.0 }
 0x838   :  { %7640 = vrot.lane.b32.xlu0 %v8604_v63, %s8230_s19 }
 0x84e   :  { %1905 = vadd.xlane.f32.xlu1 %v1904_v5 }
 0x857   :  { %1908 = vadd.xlane.f32.xlu0 %v1907_v18 }
 0x869   :  { %v9018_v10 = vpop.xlane.xlu1 %1896 }
 0x86a   :  { %v9020_v52 = vpop.xlane.xlu0 %1893 }
 0x86d   :  { %v1509_v21 = vpop.xlane.xlu1 %1508 }
 0x86e   :  { %v1523_v34 = vsub.f32 %v8969_v23, %v1509_v21  ;;  %v1506_v17 = vpop.xlane.xlu0 %1505 }
 0x86f   :  { %v1522_v37 = vsub.f32 %v1498_v42, %v1506_v17 }
 0x870   :  { %v1530_v9 = vmul.f32 1.442695, %v1523_v34 }
 0x871   :  { %v1528_v58 = vmul.f32 1.442695, %v1522_v37  ;;  %v1521_v57 = vpop.xlane.xlu1 %1520 }
 0x872   :  { %7851 = vpow2.f32 %v1530_v9  ;;  %v1527_v1 = vsub.f32 %v8977_v11, %v1521_v57  ;;  %v1515_v22 = vpop.xlane.xlu0 %1514 }
 0x873   :  { %7853 = vpow2.f32 %v1528_v58  ;;  %v1525_v51 = vsub.f32 %v1501_v15, %v1515_v22 }
 0x874   :  { %v1538_v29 = vmul.f32 1.442695, %v1527_v1 }
 0x875   :  { %v1534_v14 = vmul.f32 1.442695, %v1525_v51  ;;  %v7636_v23 = vpop.permute.xlu1 %7635 }
 0x876   :  { %v1512_v2 = vpop.xlane.xlu0 %1511  ;;  %v7638_v36 = vunpack.i.h.bf16 %v7636_v23  ;;  %v7637_v27 = vunpack.i.l.bf16 %v7636_v23 }
 0x877   :  { %7855 = vpow2.f32 %v1534_v14  ;;  %v1524_v6 = vsub.f32 %v1500_v33, %v1512_v2 }
 0x878   :  { %7857 = vpow2.f32 %v1538_v29  ;;  %v7124_v5 = vpack.c.bf16 %v7638_v36, %v7637_v27 }
 0x879   :  { %v1532_v32 = vmul.f32 1.442695, %v1524_v6 }
 0x87a   :  { %v1518_v61 = vpop.xlane.xlu0 %1517 }
 0x87b   :  { %7859 = vpow2.f32 %v1532_v32  ;;  %v1526_v42 = vsub.f32 %v8987_v56, %v1518_v61 }
 0x87c   :  { %v9025_v16 = vpop.eup %7851 }
 0x87d   :  { %v9027_v19 = vpop.eup %7853  ;;  %v1536_v11 = vmul.f32 1.442695, %v1526_v42  ;;  %v1543_v15 = vsel %vm176_vm0, %v9025_v16, 0.0 }
 0x87e   :  { %1544 = vadd.xlane.f32.xlu1 %v1543_v15  ;;  %v7631_v26 = vpop.permute.xlu0 %7630  ;;  %v1540_v33 = vsel %vm176_vm0, %v9027_v19, 0.0 }
 0x87f   :  { %7861 = vpow2.f32 %v1536_v11  ;;  %v7633_v20 = vunpack.i.h.bf16 %v7631_v26  ;;  %v7632_v41 = vunpack.i.l.bf16 %v7631_v26  ;;  %1541 = vadd.xlane.f32.xlu0 %v1540_v33 }
 0x881   :  { %v9033_v56 = vpop.eup %7855  ;;  %v7120_v0 = vpack.c.bf16 %v7633_v20, %v7632_v41 }
 0x882   :  { %v1549_v48 = vsel %vm176_vm0, %v9033_v56, 0.0  ;;  %v9037_v46 = vpop.eup %7857 }
 0x883   :  { %1550 = vadd.xlane.f32.xlu1 %v1549_v48  ;;  %7121 = vmatprep.subr.bf16.mxu0 %v7120_v0  ;;  %v1555_v21 = vsel %vm176_vm0, %v9037_v46, 0.0 }
 0x884   :  { %7123 = vmatpush3.bf16.msra.mxu0 %v7120_v0 }
 0x885   :  { %v9039_v18 = vpop.eup %7859  ;;  %7125 = vmatprep.subr.bf16.mxu0 %v7124_v5 }
 0x886   :  { %v1546_v34 = vsel %vm176_vm0, %v9039_v18, 0.0 }
 0x887   :  { %1556 = vadd.xlane.f32.xlu1 %v1555_v21  ;;  %1547 = vadd.xlane.f32.xlu0 %v1546_v34 }
 0x888   :  { %7127 = vmatpush3.bf16.msra.mxu0 %v7124_v5 }
 0x889   :  { %v9045_v17 = vpop.eup %7861 }
 0x88a   :  { %v1552_v37 = vsel %vm176_vm0, %v9045_v17, 0.0 }
 0x88b   :  { %1553 = vadd.xlane.f32.xlu0 %v1552_v37 }
 0x898   :  { %7655 = vrot.lane.b32.xlu1 %v8604_v63, %s8231_s15 }
 0x89c   :  { %2059 = vrot.lane.b32.xlu1 %v8931_v28, %s8232_s16 }
 0x8a0   :  { %2061 = vrot.lane.b32.xlu1 %v8929_v47, %s8232_s16 }
 0x8a1   :  { %7650 = vrot.lane.b32.xlu0 %v8592_v59, %s8231_s15 }
 0x8a4   :  { %2065 = vrot.lane.b32.xlu1 %v8933_v54, %s8232_s16 }
 0x8a5   :  { %2063 = vrot.lane.b32.xlu0 %v8935_v49, %s8232_s16 }
 0x8a6   :  { %v1900_v9 = vpop.xlane.xlu1 %1899 }
 0x8aa   :  { %v7646_v57 = vpop.permute.xlu1 %7645 }
 0x8ab   :  { %v7648_v1 = vunpack.i.h.bf16 %v7646_v57  ;;  %v7647_v22 = vunpack.i.l.bf16 %v7646_v57 }
 0x8ad   :  { %v7150_v47 = vpack.c.bf16 %v7648_v1, %v7647_v22 }
 0x8af   :  { %v1903_v58 = vpop.xlane.xlu0 %1902 }
 0x8b3   :  { %v7641_v63 = vpop.permute.xlu0 %7640 }
 0x8b4   :  { %v7643_v51 = vunpack.i.h.bf16 %v7641_v63  ;;  %v7642_v28 = vunpack.i.l.bf16 %v7641_v63 }
 0x8b6   :  { %v7128_v29 = vpack.c.bf16 %v7643_v51, %v7642_v28  ;;  %v351_v51 = vld [vmem:[%s8303_s24 + $0x8] sm:$0xff] }
 0x8b8   :  { %7129 = vmatprep.subr.bf16.mxu0 %v7128_v29 }
 0x8b9   :  { %7131 = vmatpush3.bf16.msra.mxu0 %v7128_v29  ;;  %v353_v29 = vld [vmem:[%s8303_s24 + $0x18] sm:$0xff] }
 0x8ba   :  { %7151 = vmatprep.subr.bf16.mxu0 %v7150_v47 }
 0x8db   :  { %v1906_v59 = vpop.xlane.xlu1 %1905 }
 0x8e4   :  { %v1909_v14 = vpop.xlane.xlu0 %1908 }
 0x90b   :  { %v1545_v2 = vpop.xlane.xlu1 %1544 }
 0x90c   :  { %7863 = vrcp.f32 %v1545_v2  ;;  %v1542_v54 = vpop.xlane.xlu0 %1541 }
 0x90d   :  { %7865 = vrcp.f32 %v1542_v54 }
 0x910   :  { %v1551_v49 = vpop.xlane.xlu1 %1550 }
 0x911   :  { %7867 = vrcp.f32 %v1551_v49 }
 0x914   :  { %v1557_v6 = vpop.xlane.xlu1 %1556  ;;  %v1548_v32 = vpop.xlane.xlu0 %1547 }
 0x915   :  { %7869 = vrcp.f32 %v1548_v32 }
 0x916   :  { %v7864_v61 = vpop.eup %7863  ;;  %7871 = vrcp.f32 %v1557_v6 }
 0x917   :  { %v7866_v23 = vpop.eup %7865  ;;  %v1565_v15 = vmul.f32 %v7864_v61, %v9025_v16 }
 0x918   :  { %v1554_v42 = vpop.xlane.xlu0 %1553  ;;  %v1564_v11 = vmul.f32 %v7866_v23, %v9027_v19  ;;  %v7656_v36 = vpop.permute.xlu1 %7655 }
 0x919   :  { %7873 = vrcp.f32 %v1554_v42  ;;  %v7658_v33 = vunpack.i.h.bf16 %v7656_v36  ;;  %v7657_v27 = vunpack.i.l.bf16 %v7656_v36 }
 0x91a   :  { %7875 = vrcp.f32 %v9020_v52  ;;  %6557 = vmatprep.mubr.msk.f32.mxu0 %vm176_vm0, %v1564_v11 }
 0x91b   :  { %6558 = vmatmul.mubr.msk.f32.vlgmr.msra.gmra.mrb[28].mxu0 %vm176_vm0, %v1565_v15  ;;  %7877 = vrcp.f32 %v9018_v10  ;;  %v7868_v19 = vpop.eup %7867  ;;  %v7158_v48 = vpack.c.bf16 %v7658_v33, %v7657_v27 }
 0x91c   :  { %7153 = vmatpush3.bf16.msra.mxu0 %v7150_v47  ;;  %v7651_v26 = vpop.permute.xlu0 %7650  ;;  %7879 = vrcp.f32 %v1900_v9  ;;  %v1567_v10 = vmul.f32 %v7868_v19, %v9033_v56  ;;  %v2060_v11 = vpop.permute.xlu1 %2059 }
 0x91d   :  { %v7653_v20 = vunpack.i.h.bf16 %v7651_v26  ;;  %v7652_v41 = vunpack.i.l.bf16 %v7651_v26  ;;  %7881 = vrcp.f32 %v1903_v58 }
 0x91e   :  { %7883 = vrcp.f32 %v1906_v59 }
 0x91f   :  { %v7154_v0 = vpack.c.bf16 %v7653_v20, %v7652_v41  ;;  %v7870_v16 = vpop.eup %7869  ;;  %7885 = vrcp.f32 %v1909_v14  ;;  %v2125_v20 = vsel %vm668_vm5, %v8919_v12, %v2060_v11  ;;  %v358_v11 = vld [vmem:[%s8323_s20 + $0x8] sm:$0xff] }
 0x920   :  { %v1566_v52 = vmul.f32 %v7870_v16, %v9039_v18  ;;  %v7872_v5 = vpop.eup %7871  ;;  %v2064_v36 = vpop.permute.xlu0 %2063 }
 0x921   :  { %7155 = vmatprep.subr.bf16.mxu0 %v7154_v0  ;;  %v1569_v18 = vmul.f32 %v7872_v5, %v9037_v46  ;;  %v2127_v12 = vsel %vm668_vm5, %v8923_v44, %v2064_v36  ;;  %v360_v36 = vld [vmem:[%s8323_s20 + $0x18] sm:$0xff] }
 0x922   :  { %7157 = vmatpush3.bf16.msra.mxu0 %v7154_v0  ;;  %6560 = vmatprep.mubr.msk.f32.mxu0 %vm176_vm0, %v1566_v52 }
 0x923   :  { %v7874_v21 = vpop.eup %7873  ;;  %7159 = vmatprep.subr.bf16.mxu0 %v7158_v48  ;;  %6561 = vmatmul.mubr.msk.f32.gmra.mrb[30].mxu0 %vm176_vm0, %v1567_v10 }
 0x924   :  { %v7876_v34 = vpop.eup %7875  ;;  %v1568_v37 = vmul.f32 %v7874_v21, %v9045_v17 }
 0x925   :  { %v7878_v9 = vpop.eup %7877  ;;  %v1916_v58 = vmul.f32 %v7876_v34, %v8964_v55 }
 0x926   :  { %6563 = vmatprep.mubr.msk.f32.mxu0 %vm176_vm0, %v1568_v37  ;;  %7161 = vmatpush3.bf16.msra.mxu0 %v7158_v48  ;;  %v7880_v57 = vpop.eup %7879  ;;  %v1917_v56 = vmul.f32 %v7878_v9, %v8962_v60 }
 0x927   :  { %6564 = vmatmul.mubr.msk.f32.gmra.mrb[32].mxu0 %vm176_vm0, %v1569_v18  ;;  %v7882_v63 = vpop.eup %7881  ;;  %v1918_v17 = vmul.f32 %v7880_v57, %v8996_v13  ;;  %v350_v13 = vld [vmem:[%s8303_s24] sm:$0xff] }
 0x928   :  { %6599 = vmatprep.mubr.msk.f32.mxu0 %vm176_vm0, %v1916_v58  ;;  %v7884_v1 = vpop.eup %7883  ;;  %v1919_v55 = vmul.f32 %v7882_v63, %v9000_v62  ;;  %v7162_v28 = vpack.c.bf16 %v351_v51, %v350_v13  ;;  %v352_v62 = vld [vmem:[%s8303_s24 + $0x10] sm:$0xff]  ;;  %s8234_s24 = smov 24   ;;  %v5880_v13 = vld [vmem:[%s8308_s30] ss:$0 sm:$0xff]  ;;  %s10436_s30 = sld [smem:[#allocation5_spill]] }
 0x929   :  { %v7886_v46 = vpop.eup %7885  ;;  %v1920_v22 = vmul.f32 %v7884_v1, %v9010_v4  ;;  %v7168_v4 = vpack.c.bf16 %v353_v29, %v352_v62 }
 0x92a   :  { %v1921_v60 = vmul.f32 %v7886_v46, %v9014_v25  ;;  %7164 = vmatprep.subr.msk.bf16.mxu0 %vm8477_vm4, %v7162_v28 }
 0x92b   :  { %6600 = vmatmul.mubr.msk.f32.vlgmr.msra.gmra.mrb[34].mxu0 %vm176_vm0, %v1917_v56 }
 0x92c   :  { %6602 = vmatprep.mubr.msk.f32.mxu0 %vm176_vm0, %v1918_v17 }
 0x92f   :  { %6603 = vmatmul.mubr.msk.f32.gmra.mrb[36].mxu0 %vm176_vm0, %v1919_v55 }
 0x930   :  { %6605 = vmatprep.mubr.msk.f32.mxu0 %vm176_vm0, %v1920_v22  ;;  %7167 = vmatpush3.bf16.xpose.msk.msra.mxu0 %vm8477_vm4, %v7162_v28 }
 0x931   :  { %7170 = vmatprep.subr.msk.bf16.mxu0 %vm8477_vm4, %v7168_v4 }
 0x933   :  { %6606 = vmatmul.mubr.msk.f32.gmra.mrb[38].mxu0 %vm176_vm0, %v1921_v60 }
 0x938   :  { %7173 = vmatpush3.bf16.xpose.msk.msra.mxu0 %vm8477_vm4, %v7168_v4 }
 0x9ee   :  { %v6559_v47 = vpop.f32.mrb[28].mxu0 }
 0x9ef   :  { %2085 = vrot.lane.b32.xlu1 %v6559_v47, %s8233_s18  ;;  %v1672_v59 = vpop.f32.mrb[29].mxu0 }
 0x9f0   :  { %2083 = vrot.lane.b32.xlu0 %v1672_v59, %s8233_s18 }
 0x9f6   :  { %v6562_v25 = vpop.f32.mrb[30].mxu0 }
 0x9f7   :  { %2089 = vrot.lane.b32.xlu1 %v6562_v25, %s8233_s18  ;;  %v1682_v14 = vpop.f32.mrb[31].mxu0 }
 0x9f8   :  { %2087 = vrot.lane.b32.xlu0 %v1682_v14, %s8233_s18 }
 0x9fa   :  { %v6565_v2 = vpop.f32.mrb[32].mxu0 }
 0x9fb   :  { %v1692_v54 = vpop.f32.mrb[33].mxu0 }
 0x9fe   :  { %v6601_v49 = vpop.f32.mrb[34].mxu0 }
 0x9ff   :  { %2109 = vrot.lane.b32.xlu1 %v6601_v49, %s8234_s24  ;;  %v2024_v6 = vpop.f32.mrb[35].mxu0 }
 0xa00   :  { %2107 = vrot.lane.b32.xlu0 %v2024_v6, %s8234_s24 }
 0xa02   :  { %v6604_v32 = vpop.f32.mrb[36].mxu0 }
 0xa03   :  { %2069 = vrot.lane.b32.xlu1 %v8937_v8, %s8232_s16  ;;  %v2034_v61 = vpop.f32.mrb[37].mxu0  ;;  %v2062_v8 = vpop.permute.xlu1 %2061 }
 0xa04   :  { %2067 = vrot.lane.b32.xlu0 %v8939_v50, %s8232_s16  ;;  %v2126_v19 = vsel %vm668_vm5, %v8917_v43, %v2062_v8  ;;  %v359_v8 = vld [vmem:[%s8323_s20 + $0x10] sm:$0xff] }
 0xa06   :  { %v6607_v23 = vpop.f32.mrb[38].mxu0 }
 0xa07   :  { %2113 = vrot.lane.b32.xlu1 %v6604_v32, %s8234_s24  ;;  %v2044_v42 = vpop.f32.mrb[39].mxu0  ;;  %v2066_v15 = vpop.permute.xlu1 %2065 }
 0xa08   :  { %2111 = vrot.lane.b32.xlu0 %v2034_v61, %s8234_s24  ;;  %v2128_v43 = vsel %vm668_vm5, %v8921_v7, %v2066_v15 }
 0xa0b   :  { %2093 = vrot.lane.b32.xlu1 %v6565_v2, %s8233_s18 }
 0xa0c   :  { %2091 = vrot.lane.b32.xlu0 %v1692_v54, %s8233_s18 }
 0xa0f   :  { %2117 = vrot.lane.b32.xlu1 %v6607_v23, %s8234_s24 }
 0xa10   :  { %2115 = vrot.lane.b32.xlu0 %v2044_v42, %s8234_s24 }
 0xa61   :  { %v2086_v26 = vpop.permute.xlu1 %2085 }
 0xa62   :  { %v2084_v50 = vpop.permute.xlu0 %2083  ;;  %v2133_v52 = vsel %vm2131_vm7, %v2126_v19, %v2086_v26  ;;  %v7180_v26 = vpack.c.bf16 %v360_v36, %v359_v8 }
 0xa63   :  { %v2132_v0 = vsel %vm2131_vm7, %v2125_v20, %v2084_v50  ;;  %v361_v50 = vld [vmem:[%s8323_s20 + $0x20] sm:$0xff]  ;;  %v363_v20 = vld [vmem:[%s8323_s20 + $0x30] sm:$0xff] }
 0xa69   :  { %v2090_v33 = vpop.permute.xlu1 %2089 }
 0xa6a   :  { %v2088_v27 = vpop.permute.xlu0 %2087  ;;  %v2135_v18 = vsel %vm2131_vm7, %v2128_v43, %v2090_v33  ;;  %v362_v33 = vld [vmem:[%s8323_s20 + $0x28] sm:$0xff] }
 0xa6b   :  { %v2134_v37 = vsel %vm2131_vm7, %v2127_v12, %v2088_v27  ;;  %v7186_v27 = vpack.c.bf16 %v362_v33, %v361_v50 }
 0xa71   :  { %v2110_v41 = vpop.permute.xlu1 %2109 }
 0xa72   :  { %v2108_v16 = vpop.permute.xlu0 %2107  ;;  %v2140_v5 = vsel %vm2138_vm8, %v2133_v52, %v2110_v41  ;;  %v364_v41 = vld [vmem:[%s8323_s20 + $0x38] sm:$0xff] }
 0xa73   :  { %v2139_v48 = vsel %vm2138_vm8, %v2132_v0, %v2108_v16  ;;  %v7192_v19 = vpack.c.bf16 %v364_v41, %v363_v20  ;;  %v365_v0 = vld [vmem:[%s8323_s20 + $0x40] sm:$0xff]  ;;  %v366_v16 = vld [vmem:[%s8323_s20 + $0x48] sm:$0xff] }
 0xa74   :  { %6616 = vmatprep.mubr.msk.f32.mxu0 %vm379_vm3, %v2139_v48  ;;  %v7198_v52 = vpack.c.bf16 %v366_v16, %v365_v0  ;;  %v367_v48 = vld [vmem:[%s8323_s20 + $0x50] sm:$0xff]  ;;  %v5881_v41 = vld [vmem:[%s10436_s30] ss:$0 sm:$0xff] }
 0xa75   :  { %v2070_v10 = vpop.permute.xlu1 %2069  ;;  %6617 = vmatmul.mubr.msk.f32.vlgmr.msra.gmra.mrb[40].mxu0 %vm379_vm3, %v2140_v5  ;;  %v368_v5 = vld [vmem:[%s8323_s20 + $0x58] sm:$0xff] }
 0xa76   :  { %v2068_v21 = vpop.permute.xlu0 %2067  ;;  %v2130_v17 = vsel %vm668_vm5, %v8925_v45, %v2070_v10  ;;  %v7204_v10 = vpack.c.bf16 %v368_v5, %v367_v48 }
 0xa77   :  { %v2129_v63 = vsel %vm668_vm5, %v8927_v31, %v2068_v21 }
 0xa79   :  { %v2114_v34 = vpop.permute.xlu1 %2113 }
 0xa7a   :  { %v2112_v9 = vpop.permute.xlu0 %2111  ;;  %v2142_v57 = vsel %vm2138_vm8, %v2135_v18, %v2114_v34 }
 0xa7b   :  { %v2141_v58 = vsel %vm2138_vm8, %v2134_v37, %v2112_v9 }
 0xa7c   :  { %6619 = vmatprep.mubr.msk.f32.mxu0 %vm379_vm3, %v2141_v58 }
 0xa7d   :  { %v2094_v56 = vpop.permute.xlu1 %2093  ;;  %6620 = vmatmul.mubr.msk.f32.gmra.mrb[42].mxu0 %vm379_vm3, %v2142_v57 }
 0xa7e   :  { %v2092_v44 = vpop.permute.xlu0 %2091  ;;  %v2137_v46 = vsel %vm2131_vm7, %v2130_v17, %v2094_v56 }
 0xa7f   :  { %v2136_v1 = vsel %vm2131_vm7, %v2129_v63, %v2092_v44 }
 0xa81   :  { %v2118_v7 = vpop.permute.xlu1 %2117 }
 0xa82   :  { %v2116_v55 = vpop.permute.xlu0 %2115  ;;  %v2144_v60 = vsel %vm2138_vm8, %v2137_v46, %v2118_v7 }
 0xa83   :  { %v2143_v22 = vsel %vm2138_vm8, %v2136_v1, %v2116_v55 }
 0xa84   :  { %6622 = vmatprep.mubr.msk.f32.mxu0 %vm379_vm3, %v2143_v22 }
 0xa85   :  { %6623 = vmatmul.mubr.msk.f32.gmra.mrb[44].mxu0 %vm379_vm3, %v2144_v60 }
 0xb48   :  { %v6618_v51 = vpop.f32.mrb[40].mxu0 }
 0xb49   :  { %v2271_v31 = vadd.f32 %v6618_v51, %v8451_v35  ;;  %v2241_v28 = vpop.f32.mrb[41].mxu0 }
 0xb4a   :  { %v2270_v45 = vadd.f32 %v2241_v28, %v8444_v30 }
 0xb4b   :  { %v9148_v62 = vadd.f32 %v5880_v13, %v2271_v31 }
 0xb4c   :  { %v9150_v29 = vadd.f32 %v5880_v13, %v2270_v45 }
 0xb4d   :  { %v2291_v4 = vsel %vm379_vm3, %v9148_v62, 0.0 }
 0xb4e   :  { %2292 = vadd.xlane.f32.xlu1 %v2291_v4  ;;  %v2288_v47 = vsel %vm379_vm3, %v9150_v29, 0.0 }
 0xb4f   :  { %2289 = vadd.xlane.f32.xlu0 %v2288_v47 }
 0xb50   :  { %v6621_v59 = vpop.f32.mrb[42].mxu0 }
 0xb51   :  { %v2251_v25 = vpop.f32.mrb[43].mxu0  ;;  %v2273_v14 = vadd.f32 %v6621_v59, %v8457_v39 }
 0xb52   :  { %v2272_v35 = vadd.f32 %v2251_v25, %v8439_v24 }
 0xb53   :  { %v9160_v30 = vadd.f32 %v5880_v13, %v2273_v14 }
 0xb54   :  { %v9158_v2 = vadd.f32 %v5880_v13, %v2272_v35 }
 0xb55   :  { %v2297_v24 = vsel %vm379_vm3, %v9160_v30, 0.0 }
 0xb56   :  { %v2294_v54 = vsel %vm379_vm3, %v9158_v2, 0.0 }
 0xb57   :  { %2295 = vadd.xlane.f32.xlu0 %v2294_v54  ;;  %v369_v54 = vld [vmem:[%s8323_s20 + $0x60] sm:$0xff] }
 0xb58   :  { %v6624_v49 = vpop.f32.mrb[44].mxu0 }
 0xb59   :  { %v2275_v6 = vadd.f32 %v6624_v49, %v8455_v38  ;;  %v2261_v32 = vpop.f32.mrb[45].mxu0  ;;  %v370_v49 = vld [vmem:[%s8323_s20 + $0x68] sm:$0xff] }
 0xb5a   :  { %v2274_v39 = vadd.f32 %v2261_v32, %v8459_v40  ;;  %v357_v40 = vld [vmem:[%s8323_s20] sm:$0xff]  ;;  %v371_v32 = vld [vmem:[%s8323_s20 + $0x70] sm:$0xff] }
 0xb5b   :  { %v9168_v61 = vadd.f32 %v5880_v13, %v2275_v6  ;;  %2298 = vadd.xlane.f32.xlu0 %v2297_v24  ;;  %v7174_v15 = vpack.c.bf16 %v358_v11, %v357_v40  ;;  %v7210_v6 = vpack.c.bf16 %v370_v49, %v369_v54 }
 0xb5c   :  { %v9170_v23 = vadd.f32 %v5880_v13, %v2274_v39  ;;  %v372_v39 = vld [vmem:[%s8323_s20 + $0x78] sm:$0xff]  ;;  %s10437_s20 = sld [smem:[#allocation6_spill]] }
 0xb5d   :  { %v2303_v42 = vsel %vm379_vm3, %v9168_v61, 0.0  ;;  %7176 = vmatprep.subr.msk.bf16.mxu1 %vm8477_vm4, %v7174_v15  ;;  %v7216_v24 = vpack.c.bf16 %v372_v39, %v371_v32 }
 0xb5e   :  { %2304 = vadd.xlane.f32.xlu1 %v2303_v42  ;;  %v2300_v38 = vsel %vm379_vm3, %v9170_v23, 0.0  ;;  %7179 = vmatpush3.bf16.xpose.msk.msra.mxu1 %vm8477_vm4, %v7174_v15 }
 0xb5f   :  { %2301 = vadd.xlane.f32.xlu0 %v2300_v38  ;;  %7182 = vmatprep.subr.msk.bf16.mxu1 %vm8477_vm4, %v7180_v26 }
 0xb66   :  { %7185 = vmatpush3.bf16.xpose.msk.msra.mxu1 %vm8477_vm4, %v7180_v26 }
 0xb67   :  { %7188 = vmatprep.subr.msk.bf16.mxu1 %vm8477_vm4, %v7186_v27 }
 0xb6e   :  { %7191 = vmatpush3.bf16.xpose.msk.msra.mxu1 %vm8477_vm4, %v7186_v27 }
 0xb6f   :  { %7194 = vmatprep.subr.msk.bf16.mxu1 %vm8477_vm4, %v7192_v19 }
 0xb76   :  { %7197 = vmatpush3.bf16.xpose.msk.msra.mxu1 %vm8477_vm4, %v7192_v19 }
 0xb77   :  { %7200 = vmatprep.subr.msk.bf16.mxu1 %vm8477_vm4, %v7198_v52 }
 0xb7e   :  { %7203 = vmatpush3.bf16.xpose.msk.msra.mxu1 %vm8477_vm4, %v7198_v52 }
 0xb7f   :  { %7206 = vmatprep.subr.msk.bf16.mxu1 %vm8477_vm4, %v7204_v10 }
 0xb86   :  { %7209 = vmatpush3.bf16.xpose.msk.msra.mxu1 %vm8477_vm4, %v7204_v10 }
 0xb87   :  { %7212 = vmatprep.subr.msk.bf16.mxu1 %vm8477_vm4, %v7210_v6 }
 0xb8e   :  { %7215 = vmatpush3.bf16.xpose.msk.msra.mxu1 %vm8477_vm4, %v7210_v6 }
 0xb8f   :  { %7218 = vmatprep.subr.msk.bf16.mxu1 %vm8477_vm4, %v7216_v24 }
 0xb96   :  { %7221 = vmatpush3.bf16.xpose.msk.msra.mxu1 %vm8477_vm4, %v7216_v24 }
 0xbdb   :  { %v2293_v21 = vpop.xlane.xlu1 %2292 }
 0xbdc   :  { %v2307_v12 = vmul.f32 0.03125, %v2293_v21  ;;  %v2290_v34 = vpop.xlane.xlu0 %2289 }
 0xbdd   :  { %v2306_v43 = vmul.f32 0.03125, %v2290_v34  ;;  %v5882_v34 = vld [vmem:[%s10437_s20] ss:$0 sm:$0xff] }
 0xbde   :  { %v2313_v37 = vsub.f32 %v9148_v62, %v2307_v12 }
 0xbdf   :  { %v2312_v9 = vsub.f32 %v9150_v29, %v2306_v43 }
 0xbe0   :  { %v2319_v18 = vmul.f32 %v2313_v37, %v2313_v37 }
 0xbe1   :  { %v2318_v58 = vmul.f32 %v2312_v9, %v2312_v9 }
 0xbe2   :  { %v2327_v57 = vsel %vm379_vm3, %v2319_v18, 0.0 }
 0xbe3   :  { %2328 = vadd.xlane.f32.xlu1 %v2327_v57  ;;  %v2324_v56 = vsel %vm379_vm3, %v2318_v58, 0.0 }
 0xbe4   :  { %v2296_v44 = vpop.xlane.xlu0 %2295  ;;  %2325 = vadd.xlane.f32.xlu0 %v2324_v56 }
 0xbe5   :  { %v2308_v63 = vmul.f32 0.03125, %v2296_v44 }
 0xbe7   :  { %v9217_v7 = vsub.f32 %v9158_v2, %v2308_v63 }
 0xbe8   :  { %v2299_v17 = vpop.xlane.xlu0 %2298 }
 0xbe9   :  { %v2309_v1 = vmul.f32 0.03125, %v2299_v17  ;;  %v2320_v55 = vmul.f32 %v9217_v7, %v9217_v7 }
 0xbeb   :  { %v9222_v46 = vsub.f32 %v9160_v30, %v2309_v1  ;;  %v2305_v22 = vpop.xlane.xlu1 %2304  ;;  %v2330_v60 = vsel %vm379_vm3, %v2320_v55, 0.0 }
 0xbec   :  { %v2311_v13 = vmul.f32 0.03125, %v2305_v22  ;;  %2331 = vadd.xlane.f32.xlu0 %v2330_v60  ;;  %v2302_v51 = vpop.xlane.xlu0 %2301 }
 0xbed   :  { %v2310_v31 = vmul.f32 0.03125, %v2302_v51  ;;  %v2321_v28 = vmul.f32 %v9222_v46, %v9222_v46 }
 0xbee   :  { %v9228_v45 = vsub.f32 %v9168_v61, %v2311_v13 }
 0xbef   :  { %v9231_v4 = vsub.f32 %v9170_v23, %v2310_v31  ;;  %v2333_v47 = vsel %vm379_vm3, %v2321_v28, 0.0 }
 0xbf0   :  { %2334 = vadd.xlane.f32.xlu1 %v2333_v47  ;;  %v2323_v59 = vmul.f32 %v9228_v45, %v9228_v45 }
 0xbf1   :  { %v2322_v25 = vmul.f32 %v9231_v4, %v9231_v4 }
 0xbf2   :  { %v2339_v14 = vsel %vm379_vm3, %v2323_v59, 0.0  ;;  %v374_v59 = vld [vmem:[%s10438_s22] sm:$0xff] }
 0xbf3   :  { %v2336_v35 = vsel %vm379_vm3, %v2322_v25, 0.0  ;;  %v375_v25 = vld [vmem:[%s10438_s22 + $0x8] sm:$0xff] }
 0xbf4   :  { %2340 = vadd.xlane.f32.xlu1 %v2339_v14  ;;  %2337 = vadd.xlane.f32.xlu0 %v2336_v35  ;;  %v7222_v14 = vpack.c.bf16 %v375_v25, %v374_v59  ;;  %v376_v35 = vld [vmem:[%s10438_s22 + $0x10] sm:$0xff] }
 0xbf6   :  { %7223 = vmatprep.subr.bf16.mxu0 %v7222_v14 }
 0xbf7   :  { %7225 = vmatpush3.bf16.xpose.msra.mxu0 %v7222_v14 }
 0xc70   :  { %v2329_v42 = vpop.xlane.xlu1 %2328 }
 0xc71   :  { %v2343_v38 = vmul.f32 0.03125, %v2329_v42  ;;  %v2326_v40 = vpop.xlane.xlu0 %2325 }
 0xc72   :  { %v2342_v11 = vmul.f32 0.03125, %v2326_v40 }
 0xc73   :  { %v2349_v8 = vadd.f32 1e-06, %v2343_v38 }
 0xc74   :  { %v2348_v15 = vadd.f32 1e-06, %v2342_v11 }
 0xc75   :  { %7887 = vrsqrt.f32 %v2349_v8 }
 0xc76   :  { %7889 = vrsqrt.f32 %v2348_v15 }
 0xc79   :  { %v2332_v36 = vpop.xlane.xlu0 %2331 }
 0xc7a   :  { %v2344_v26 = vmul.f32 0.03125, %v2332_v36 }
 0xc7c   :  { %v2350_v50 = vadd.f32 1e-06, %v2344_v26 }
 0xc7d   :  { %v2335_v33 = vpop.xlane.xlu1 %2334 }
 0xc7e   :  { %7891 = vrsqrt.f32 %v2350_v50  ;;  %v2345_v27 = vmul.f32 0.03125, %v2335_v33 }
 0xc7f   :  { %v7888_v20 = vpop.eup %7887 }
 0xc80   :  { %v7890_v19 = vpop.eup %7889  ;;  %v2361_v0 = vmul.f32 %v7888_v20, %v2313_v37  ;;  %v2351_v16 = vadd.f32 1e-06, %v2345_v27 }
 0xc81   :  { %v2341_v52 = vpop.xlane.xlu1 %2340  ;;  %v2338_v48 = vpop.xlane.xlu0 %2337  ;;  %v2360_v5 = vmul.f32 %v7890_v19, %v2312_v9 }
 0xc82   :  { %v2373_v10 = vmul.f32 %v5881_v41, %v2361_v0  ;;  %7893 = vrsqrt.f32 %v2351_v16  ;;  %v2347_v21 = vmul.f32 0.03125, %v2341_v52  ;;  %v2346_v12 = vmul.f32 0.03125, %v2338_v48 }
 0xc83   :  { %v2372_v43 = vmul.f32 %v5881_v41, %v2360_v5 }
 0xc84   :  { %v2353_v18 = vadd.f32 1e-06, %v2347_v21  ;;  %v2352_v58 = vadd.f32 1e-06, %v2346_v12  ;;  %v2385_v56 = vadd.f32 %v5882_v34, %v2373_v10 }
 0xc85   :  { %v2384_v57 = vadd.f32 %v5882_v34, %v2372_v43 }
 0xc86   :  { %7895 = vrsqrt.f32 %v2353_v18 }
 0xc87   :  { %7897 = vrsqrt.f32 %v2352_v58  ;;  %6657 = vmatprep.mubr.msk.f32.mxu1 %vm379_vm3, %v2384_v57 }
 0xc88   :  { %v7892_v44 = vpop.eup %7891  ;;  %6658 = vmatmul.mubr.msk.f32.vlgmr.msra.gmra.mrb[18].mxu1 %vm379_vm3, %v2385_v56 }
 0xc89   :  { %v2362_v37 = vmul.f32 %v7892_v44, %v9217_v7 }
 0xc8b   :  { %v2374_v9 = vmul.f32 %v5881_v41, %v2362_v37 }
 0xc8c   :  { %v7894_v63 = vpop.eup %7893 }
 0xc8d   :  { %v2386_v17 = vadd.f32 %v5882_v34, %v2374_v9  ;;  %v2363_v1 = vmul.f32 %v7894_v63, %v9222_v46 }
 0xc8f   :  { %6660 = vmatprep.mubr.msk.f32.mxu1 %vm379_vm3, %v2386_v17  ;;  %v2375_v55 = vmul.f32 %v5881_v41, %v2363_v1 }
 0xc90   :  { %v7896_v22 = vpop.eup %7895 }
 0xc91   :  { %v7898_v60 = vpop.eup %7897  ;;  %v2387_v13 = vadd.f32 %v5882_v34, %v2375_v55  ;;  %v2365_v51 = vmul.f32 %v7896_v22, %v9228_v45  ;;  %v377_v45 = vld [vmem:[%s10438_s22 + $0x18] sm:$0xff] }
 0xc92   :  { %v2364_v31 = vmul.f32 %v7898_v60, %v9231_v4  ;;  %v7226_v54 = vpack.c.bf16 %v377_v45, %v376_v35  ;;  %v5883_v4 = vld [vmem:[%s10439_s23] ss:$0 sm:$0xff] }
 0xc93   :  { %6661 = vmatmul.mubr.msk.f32.gmra.mrb[20].mxu1 %vm379_vm3, %v2387_v13  ;;  %v2377_v7 = vmul.f32 %v5881_v41, %v2365_v51 }
 0xc94   :  { %v2376_v28 = vmul.f32 %v5881_v41, %v2364_v31  ;;  %7227 = vmatprep.subr.bf16.mxu0 %v7226_v54 }
 0xc95   :  { %v2389_v47 = vadd.f32 %v5882_v34, %v2377_v7  ;;  %7229 = vmatpush3.bf16.xpose.msra.mxu0 %v7226_v54 }
 0xc96   :  { %v2388_v46 = vadd.f32 %v5882_v34, %v2376_v28 }
 0xc98   :  { %6663 = vmatprep.mubr.msk.f32.mxu1 %vm379_vm3, %v2388_v46 }
 0xc99   :  { %6664 = vmatmul.mubr.msk.f32.gmra.mrb[22].mxu1 %vm379_vm3, %v2389_v47 }
 0xd5b   :  { %v6659_v49 = vpop.f32.mrb[18].mxu1 }
 0xd5c   :  { %v9269_v6 = vadd.f32 %v6659_v49, %v5883_v4  ;;  %v2528_v32 = vpop.f32.mrb[19].mxu1 }
 0xd5d   :  { %v9271_v39 = vadd.f32 %v5883_v4, %v2528_v32 }
 0xd5e   :  { %v9274_v24 = vmul.f32 0.70710677, %v9269_v6 }
 0xd5f   :  { %v9277_v42 = vmul.f32 0.70710677, %v9271_v39 }
 0xd60   :  { %v2582_v38 = vand.u32 2147483647, %v9274_v24  ;;  %vm2570_vm9 = vcmp.lt.f32.partialorder %v9274_v24, 0.0 }
 0xd61   :  { %v2581_v40 = vand.u32 2147483647, %v9277_v42  ;;  %vm2569_vm10 = vcmp.lt.f32.partialorder %v9277_v42, 0.0 }
 0xd62   :  { %v2588_v11 = vmul.f32 0.3275911, %v2582_v38  ;;  %v2666_v19 = vsub.f32 0.0, %v2582_v38 }
 0xd63   :  { %v2587_v8 = vmul.f32 0.3275911, %v2581_v40  ;;  %v2665_v57 = vsub.f32 0.0, %v2581_v40 }
 0xd64   :  { %v2594_v15 = vadd.f32 1.0, %v2588_v11  ;;  %v2672_v34 = vmul.f32 %v2666_v19, %v2582_v38 }
 0xd65   :  { %v2593_v36 = vadd.f32 1.0, %v2587_v8  ;;  %v2671_v22 = vmul.f32 %v2665_v57, %v2581_v40 }
 0xd66   :  { %7899 = vrcp.f32 %v2594_v15  ;;  %v6662_v26 = vpop.f32.mrb[20].mxu1  ;;  %v2679_v1 = vmul.f32 1.442695, %v2672_v34 }
 0xd67   :  { %v9281_v50 = vadd.f32 %v6662_v26, %v5883_v4  ;;  %v2538_v33 = vpop.f32.mrb[21].mxu1  ;;  %7901 = vrcp.f32 %v2593_v36  ;;  %v2677_v25 = vmul.f32 1.442695, %v2671_v22 }
 0xd68   :  { %v9283_v27 = vadd.f32 %v5883_v4, %v2538_v33 }
 0xd69   :  { %v9286_v20 = vmul.f32 0.70710677, %v9281_v50 }
 0xd6a   :  { %v9289_v41 = vmul.f32 0.70710677, %v9283_v27 }
 0xd6b   :  { %v2584_v0 = vand.u32 2147483647, %v9286_v20  ;;  %vm2572_vm11 = vcmp.lt.f32.partialorder %v9286_v20, 0.0 }
 0xd6c   :  { %v2583_v16 = vand.u32 2147483647, %v9289_v41  ;;  %v6665_v52 = vpop.f32.mrb[22].mxu1  ;;  %vm2571_vm12 = vcmp.lt.f32.partialorder %v9289_v41, 0.0 }
 0xd6d   :  { %v2590_v48 = vmul.f32 0.3275911, %v2584_v0  ;;  %v9293_v5 = vadd.f32 %v6665_v52, %v5883_v4  ;;  %v2548_v10 = vpop.f32.mrb[23].mxu1  ;;  %v2668_v7 = vsub.f32 0.0, %v2584_v0 }
 0xd6e   :  { %v2589_v21 = vmul.f32 0.3275911, %v2583_v16  ;;  %v9295_v12 = vadd.f32 %v5883_v4, %v2548_v10  ;;  %v2667_v14 = vsub.f32 0.0, %v2583_v16 }
 0xd6f   :  { %v2596_v43 = vadd.f32 1.0, %v2590_v48  ;;  %v9298_v18 = vmul.f32 0.70710677, %v9293_v5  ;;  %v2674_v54 = vmul.f32 %v2668_v7, %v2584_v0 }
 0xd70   :  { %v7900_v58 = vpop.eup %7899  ;;  %v2595_v56 = vadd.f32 1.0, %v2589_v21  ;;  %v9301_v44 = vmul.f32 0.70710677, %v9295_v12  ;;  %v2673_v40 = vmul.f32 %v2667_v14, %v2583_v16 }
 0xd71   :  { %v2612_v37 = vmul.f32 1.0614054, %v7900_v58  ;;  %7903 = vrcp.f32 %v2596_v43  ;;  %v9303_v9 = vpop.eup %7901  ;;  %v2586_v63 = vand.u32 2147483647, %v9298_v18  ;;  %v2683_v26 = vmul.f32 1.442695, %v2674_v54 }
 0xd72   :  { %7905 = vrcp.f32 %v2595_v56  ;;  %v2585_v55 = vand.u32 2147483647, %v9301_v44  ;;  %v2611_v31 = vmul.f32 1.0614054, %v9303_v9  ;;  %v2681_v21 = vmul.f32 1.442695, %v2673_v40 }
 0xd73   :  { %v2618_v17 = vadd.f32 -1.4531521, %v2612_v37  ;;  %v2592_v60 = vmul.f32 0.3275911, %v2586_v63  ;;  %7907 = vpow2.f32 %v2679_v1  ;;  %v2670_v33 = vsub.f32 0.0, %v2586_v63 }
 0xd74   :  { %v2591_v51 = vmul.f32 0.3275911, %v2585_v55  ;;  %v2617_v59 = vadd.f32 -1.4531521, %v2611_v31  ;;  %v2669_v19 = vsub.f32 0.0, %v2585_v55  ;;  %v8235_v43 = vmov 1.0  }
 0xd75   :  { %v2624_v13 = vmul.f32 %v7900_v58, %v2618_v17  ;;  %v2598_v28 = vadd.f32 1.0, %v2592_v60  ;;  %v2576_v57 = vsel %vm2570_vm9, -1.0, %v8235_v43  ;;  %v2676_v1 = vmul.f32 %v2670_v33, %v2586_v63 }
 0xd76   :  { %v2597_v46 = vadd.f32 1.0, %v2591_v51  ;;  %v2623_v45 = vmul.f32 %v9303_v9, %v2617_v59  ;;  %v2675_v22 = vmul.f32 %v2669_v19, %v2585_v55  ;;  %v2575_v33 = vsel %vm2569_vm10, -1.0, %v8235_v43 }
 0xd77   :  { %v2630_v47 = vadd.f32 1.4214138, %v2624_v13  ;;  %7909 = vrcp.f32 %v2598_v28  ;;  %v2687_v14 = vmul.f32 1.442695, %v2676_v1  ;;  %vm2574_vm13 = vcmp.lt.f32.partialorder %v9298_v18, 0.0 }
 0xd78   :  { %7911 = vrcp.f32 %v2597_v46  ;;  %v2629_v32 = vadd.f32 1.4214138, %v2623_v45  ;;  %v2685_v54 = vmul.f32 1.442695, %v2675_v22  ;;  %v2558_v22 = vmul.f32 0.5, %v9269_v6 }
 0xd79   :  { %v2636_v35 = vmul.f32 %v7900_v58, %v2630_v47  ;;  %7913 = vpow2.f32 %v2677_v25  ;;  %v2577_v6 = vsel %vm2571_vm12, -1.0, %v8235_v43  ;;  %vm2573_vm14 = vcmp.lt.f32.partialorder %v9301_v44, 0.0 }
 0xd7a   :  { %v2635_v15 = vmul.f32 %v9303_v9, %v2629_v32  ;;  %7915 = vpow2.f32 %v2683_v26  ;;  %v2562_v44 = vmul.f32 0.5, %v9293_v5 }
 0xd7b   :  { %v9309_v4 = vpop.eup %7903  ;;  %v2642_v49 = vadd.f32 -0.28449672, %v2636_v35  ;;  %7917 = vpow2.f32 %v2681_v21 }
 0xd7c   :  { %v9311_v38 = vpop.eup %7905  ;;  %v2614_v11 = vmul.f32 1.0614054, %v9309_v4  ;;  %v2641_v48 = vadd.f32 -0.28449672, %v2635_v15  ;;  %7919 = vpow2.f32 %v2687_v14 }
 0xd7d   :  { %v2648_v8 = vmul.f32 %v7900_v58, %v2642_v49  ;;  %v2613_v36 = vmul.f32 1.0614054, %v9311_v38  ;;  %v7908_v16 = vpop.eup %7907  ;;  %7921 = vpow2.f32 %v2685_v54 }
 0xd7e   :  { %v2620_v0 = vadd.f32 -1.4531521, %v2614_v11  ;;  %v2647_v56 = vmul.f32 %v9303_v9, %v2641_v48 }
 0xd7f   :  { %v2654_v52 = vadd.f32 0.2548296, %v2648_v8  ;;  %v2619_v10 = vadd.f32 -1.4531521, %v2613_v36 }
 0xd80   :  { %v2626_v34 = vmul.f32 %v9309_v4, %v2620_v0  ;;  %v2653_v31 = vadd.f32 0.2548296, %v2647_v56 }
 0xd81   :  { %v2660_v24 = vmul.f32 %v7900_v58, %v2654_v52  ;;  %v2625_v37 = vmul.f32 %v9311_v38, %v2619_v10  ;;  %v9321_v17 = vpop.eup %7909 }
 0xd82   :  { %v2632_v60 = vadd.f32 1.4214138, %v2626_v34  ;;  %v9323_v13 = vpop.eup %7911  ;;  %v2616_v28 = vmul.f32 1.0614054, %v9321_v17  ;;  %v2659_v59 = vmul.f32 %v9303_v9, %v2653_v31 }
 0xd83   :  { %v2690_v51 = vmul.f32 %v7908_v16, %v2660_v24  ;;  %v2631_v7 = vadd.f32 1.4214138, %v2625_v37  ;;  %v2615_v47 = vmul.f32 1.0614054, %v9323_v13  ;;  %v7914_v25 = vpop.eup %7913  ;;  %v2557_v24 = vmul.f32 0.5, %v9271_v39 }
 0xd84   :  { %v2638_v58 = vmul.f32 %v9309_v4, %v2632_v60  ;;  %v2622_v55 = vadd.f32 -1.4531521, %v2616_v28  ;;  %v2689_v49 = vmul.f32 %v7914_v25, %v2659_v59  ;;  %v7916_v21 = vpop.eup %7915 }
 0xd85   :  { %v2696_v46 = vsub.f32 1.0, %v2690_v51  ;;  %v2637_v63 = vmul.f32 %v9311_v38, %v2631_v7  ;;  %v2621_v45 = vadd.f32 -1.4531521, %v2615_v47  ;;  %v7918_v1 = vpop.eup %7917 }
 0xd86   :  { %v2644_v35 = vadd.f32 -0.28449672, %v2638_v58  ;;  %v2628_v40 = vmul.f32 %v9321_v17, %v2622_v55  ;;  %v2695_v36 = vsub.f32 1.0, %v2689_v49  ;;  %v7920_v55 = vpop.eup %7919 }
 0xd87   :  { %v2643_v32 = vadd.f32 -0.28449672, %v2637_v63  ;;  %v2702_v11 = vmul.f32 %v2696_v46, %v2576_v57  ;;  %v2627_v15 = vmul.f32 %v9323_v13, %v2621_v45  ;;  %v2559_v45 = vmul.f32 0.5, %v9283_v27 }
 0xd88   :  { %v2650_v8 = vmul.f32 %v9309_v4, %v2644_v35  ;;  %v2634_v26 = vadd.f32 1.4214138, %v2628_v40  ;;  %v2701_v52 = vmul.f32 %v2695_v36, %v2575_v33  ;;  %v7922_v35 = vpop.eup %7921 }
 0xd89   :  { %v2649_v9 = vmul.f32 %v9311_v38, %v2643_v32  ;;  %v2633_v0 = vadd.f32 1.4214138, %v2627_v15  ;;  %v2708_v34 = vadd.f32 1.0, %v2702_v11  ;;  %v2560_v32 = vmul.f32 0.5, %v9281_v50 }
 0xd8a   :  { %v2656_v19 = vadd.f32 0.2548296, %v2650_v8  ;;  %v2640_v10 = vmul.f32 %v9321_v17, %v2634_v26  ;;  %v2707_v56 = vadd.f32 1.0, %v2701_v52  ;;  %v2561_v26 = vmul.f32 0.5, %v9295_v12 }
 0xd8b   :  { %v2655_v48 = vadd.f32 0.2548296, %v2649_v9  ;;  %v2639_v57 = vmul.f32 %v9323_v13, %v2633_v0  ;;  %v2714_v28 = vmul.f32 %v2708_v34, %v2558_v22  ;;  %v5906_v0 = vld [vmem:[%s10440_s26] ss:$0 sm:$0xff] }
 0xd8c   :  { %v2662_v16 = vmul.f32 %v9309_v4, %v2656_v19  ;;  %v2646_v37 = vadd.f32 -0.28449672, %v2640_v10  ;;  %v2713_v31 = vmul.f32 %v2707_v56, %v2557_v24 }
 0xd8d   :  { %v2661_v42 = vmul.f32 %v9311_v38, %v2655_v48  ;;  %v2645_v51 = vadd.f32 -0.28449672, %v2639_v57  ;;  %v2578_v38 = vsel %vm2572_vm11, -1.0, %v8235_v43 }
 0xd8e   :  { %v2692_v60 = vmul.f32 %v7916_v21, %v2662_v16  ;;  %v2652_v4 = vmul.f32 %v9321_v17, %v2646_v37  ;;  %6674 = vmatprep.mubr.f32.mxu0 %v2713_v31 }
 0xd8f   :  { %v2691_v7 = vmul.f32 %v7918_v1, %v2661_v42  ;;  %v2651_v39 = vmul.f32 %v9323_v13, %v2645_v51  ;;  %6675 = vmatmul.mubr.f32.vlgmr.msra.gmra.mrb[46].mxu0 %v2714_v28  ;;  %v2835_v28 = vld [vmem:[%s10441_s28 + $0x8] sm:$0xff] }
 0xd90   :  { %v2698_v58 = vsub.f32 1.0, %v2692_v60  ;;  %v2658_v46 = vadd.f32 0.2548296, %v2652_v4 }
 0xd91   :  { %v2697_v47 = vsub.f32 1.0, %v2691_v7  ;;  %v2657_v59 = vadd.f32 0.2548296, %v2651_v39  ;;  %v8140_v39 = vld [vmem:[%s8273_s25 + $0x8] sm:$0xff] }
 0xd92   :  { %v2704_v20 = vmul.f32 %v2698_v58, %v2578_v38  ;;  %v2664_v41 = vmul.f32 %v9321_v17, %v2658_v46  ;;  %v2580_v17 = vsel %vm2574_vm13, -1.0, %v8235_v43  ;;  %v8139_v58 = vld [vmem:[%s8273_s25] sm:$0xff]  ;;  %v2979_v38 = vadd.f32 %v8140_v39, %v2835_v28  ;;  %v2836_v46 = vld [vmem:[%s10441_s28 + $0x10] sm:$0xff]  ;;  %v2843_v39 = vld [vmem:[%s10441_s28 + $0x48] sm:$0xff] }
 0xd93   :  { %v2703_v63 = vmul.f32 %v2697_v47, %v2577_v6  ;;  %v2663_v14 = vmul.f32 %v9323_v13, %v2657_v59  ;;  %v2579_v13 = vsel %vm2573_vm14, -1.0, %v8235_v43  ;;  %v2837_v6 = vld [vmem:[%s10441_s28 + $0x18] sm:$0xff] }
 0xd94   :  { %v2710_v25 = vadd.f32 1.0, %v2704_v20  ;;  %v2694_v49 = vmul.f32 %v7920_v55, %v2664_v41  ;;  %v8141_v20 = vld [vmem:[%s8273_s25 + $0x10] sm:$0xff]  ;;  %v2838_v55 = vld [vmem:[%s10441_s28 + $0x20] sm:$0xff] }
 0xd95   :  { %v2709_v54 = vadd.f32 1.0, %v2703_v63  ;;  %v2693_v40 = vmul.f32 %v7922_v35, %v2663_v14  ;;  %v2980_v59 = vadd.f32 %v8141_v20, %v2836_v46  ;;  %v8142_v63 = vld [vmem:[%s8273_s25 + $0x18] sm:$0xff]  ;;  %v8143_v35 = vld [vmem:[%s8273_s25 + $0x20] sm:$0xff]  ;;  %v8148_v46 = vld [vmem:[%s8273_s25 + $0x48] sm:$0xff] }
 0xd96   :  { %v2700_v8 = vsub.f32 1.0, %v2694_v49  ;;  %v2716_v15 = vmul.f32 %v2710_v25, %v2560_v32  ;;  %v2981_v41 = vadd.f32 %v8142_v63, %v2837_v6  ;;  %v2839_v25 = vld [vmem:[%s10441_s28 + $0x28] sm:$0xff]  ;;  %v2987_v6 = vadd.f32 %v8148_v46, %v2843_v39  ;;  %v2845_v63 = vld [vmem:[%s10441_s28 + $0x58] sm:$0xff] }
 0xd97   :  { %v2715_v11 = vmul.f32 %v2709_v54, %v2559_v45  ;;  %v2699_v36 = vsub.f32 1.0, %v2693_v40  ;;  %v2982_v45 = vadd.f32 %v8143_v35, %v2838_v55  ;;  %v8144_v54 = vld [vmem:[%s8273_s25 + $0x28] sm:$0xff]  ;;  %v2840_v40 = vld [vmem:[%s10441_s28 + $0x30] sm:$0xff] }
 0xd98   :  { %v2706_v27 = vmul.f32 %v2700_v8, %v2580_v17  ;;  %v7236_v14 = vpack.c.bf16 %v2981_v41, %v2980_v59  ;;  %v2983_v49 = vadd.f32 %v8144_v54, %v2839_v25  ;;  %v8145_v8 = vld [vmem:[%s8273_s25 + $0x30] sm:$0xff]  ;;  %v8150_v25 = vld [vmem:[%s8273_s25 + $0x58] sm:$0xff] }
 0xd99   :  { %6677 = vmatprep.mubr.f32.mxu0 %v2715_v11  ;;  %v2705_v18 = vmul.f32 %v2699_v36, %v2579_v13  ;;  %v2841_v11 = vld [vmem:[%s10441_s28 + $0x38] sm:$0xff]  ;;  %v2984_v17 = vadd.f32 %v8145_v8, %v2840_v40  ;;  %v2844_v59 = vld [vmem:[%s10441_s28 + $0x50] sm:$0xff] }
 0xd9a   :  { %6678 = vmatmul.mubr.f32.gmra.mrb[48].mxu0 %v2716_v15  ;;  %v2712_v9 = vadd.f32 1.0, %v2706_v27  ;;  %v7242_v32 = vpack.c.bf16 %v2983_v49, %v2982_v45  ;;  %v8146_v15 = vld [vmem:[%s8273_s25 + $0x38] sm:$0xff]  ;;  %v8149_v41 = vld [vmem:[%s8273_s25 + $0x50] sm:$0xff] }
 0xd9b   :  { %v2711_v50 = vadd.f32 1.0, %v2705_v18  ;;  %v2985_v36 = vadd.f32 %v8146_v15, %v2841_v11  ;;  %v2988_v55 = vadd.f32 %v8149_v41, %v2844_v59 }
 0xd9c   :  { %v2718_v19 = vmul.f32 %v2712_v9, %v2562_v44 }
 0xd9d   :  { %v2717_v33 = vmul.f32 %v2711_v50, %v2561_v26  ;;  %v7248_v13 = vpack.c.bf16 %v2985_v36, %v2984_v17 }
 0xd9f   :  { %6680 = vmatprep.mubr.f32.mxu0 %v2717_v33 }
 0xda0   :  { %6681 = vmatmul.mubr.f32.gmra.mrb[50].mxu0 %v2718_v19 }
 0xe62   :  { %v6676_v52 = vpop.f32.mrb[46].mxu0 }
 0xe63   :  { %v2815_v48 = vadd.f32 %v6676_v52, %v9148_v62  ;;  %v2785_v10 = vpop.f32.mrb[47].mxu0 }
 0xe64   :  { %v2814_v21 = vadd.f32 %v2785_v10, %v9150_v29 }
 0xe65   :  { %v9363_v34 = vadd.f32 %v5906_v0, %v2815_v48 }
 0xe66   :  { %v9365_v16 = vadd.f32 %v5906_v0, %v2814_v21 }
 0xe67   :  { %v2879_v12 = vsel %vm379_vm3, %v9363_v34, 0.0 }
 0xe68   :  { %2880 = vadd.xlane.f32.xlu1 %v2879_v12  ;;  %v2876_v5 = vsel %vm379_vm3, %v9365_v16, 0.0 }
 0xe69   :  { %2877 = vadd.xlane.f32.xlu0 %v2876_v5 }
 0xe6d   :  { %v6679_v57 = vpop.f32.mrb[48].mxu0 }
 0xe6e   :  { %v2817_v24 = vadd.f32 %v6679_v57, %v9160_v30  ;;  %v2795_v56 = vpop.f32.mrb[49].mxu0 }
 0xe6f   :  { %v2816_v62 = vadd.f32 %v2795_v56, %v9158_v2 }
 0xe70   :  { %v9373_v42 = vadd.f32 %v5906_v0, %v2817_v24 }
 0xe71   :  { %v9375_v29 = vadd.f32 %v5906_v0, %v2816_v62 }
 0xe72   :  { %v2885_v37 = vsel %vm379_vm3, %v9373_v42, 0.0 }
 0xe73   :  { %2886 = vadd.xlane.f32.xlu1 %v2885_v37  ;;  %v2882_v1 = vsel %vm379_vm3, %v9375_v29, 0.0  ;;  %v6682_v22 = vpop.f32.mrb[50].mxu0 }
 0xe74   :  { %2883 = vadd.xlane.f32.xlu0 %v2882_v1  ;;  %v2819_v30 = vadd.f32 %v6682_v22, %v9168_v61  ;;  %v2805_v2 = vpop.f32.mrb[51].mxu0  ;;  %v2834_v61 = vld [vmem:[%s10441_s28] sm:$0xff] }
 0xe75   :  { %v2818_v60 = vadd.f32 %v2805_v2, %v9170_v23  ;;  %v2978_v23 = vadd.f32 %v8139_v58, %v2834_v61 }
 0xe76   :  { %v9383_v51 = vadd.f32 %v5906_v0, %v2819_v30 }
 0xe77   :  { %v9385_v31 = vadd.f32 %v5906_v0, %v2818_v60  ;;  %v7230_v47 = vpack.c.bf16 %v2979_v38, %v2978_v23  ;;  %v2842_v23 = vld [vmem:[%s10441_s28 + $0x40] sm:$0xff] }
 0xe78   :  { %v2891_v7 = vsel %vm379_vm3, %v9383_v51, 0.0  ;;  %v8147_v38 = vld [vmem:[%s8273_s25 + $0x40] sm:$0xff]  ;;  %s10443_s25 = sld [smem:[#allocation11_spill]] }
 0xe79   :  { %2892 = vadd.xlane.f32.xlu1 %v2891_v7  ;;  %v2888_v4 = vsel %vm379_vm3, %v9385_v31, 0.0  ;;  %7232 = vmatprep.subr.msk.bf16.mxu0 %vm8477_vm4, %v7230_v47 }
 0xe7a   :  { %2889 = vadd.xlane.f32.xlu0 %v2888_v4  ;;  %7235 = vmatpush3.bf16.xpose.msk.msra.mxu0 %vm8477_vm4, %v7230_v47  ;;  %v2986_v47 = vadd.f32 %v8147_v38, %v2842_v23 }
 0xe7b   :  { %7238 = vmatprep.subr.msk.bf16.mxu0 %vm8477_vm4, %v7236_v14 }
 0xe7c   :  { %v7254_v20 = vpack.c.bf16 %v2987_v6, %v2986_v47 }
 0xe82   :  { %7241 = vmatpush3.bf16.xpose.msk.msra.mxu0 %vm8477_vm4, %v7236_v14  ;;  %v2989_v14 = vadd.f32 %v8150_v25, %v2845_v63 }
 0xe83   :  { %7244 = vmatprep.subr.msk.bf16.mxu0 %vm8477_vm4, %v7242_v32 }
 0xe84   :  { %v7260_v35 = vpack.c.bf16 %v2989_v14, %v2988_v55 }
 0xe8a   :  { %7247 = vmatpush3.bf16.xpose.msk.msra.mxu0 %vm8477_vm4, %v7242_v32 }
 0xe8b   :  { %7250 = vmatprep.subr.msk.bf16.mxu0 %vm8477_vm4, %v7248_v13 }
 0xe92   :  { %7253 = vmatpush3.bf16.xpose.msk.msra.mxu0 %vm8477_vm4, %v7248_v13 }
 0xe93   :  { %7256 = vmatprep.subr.msk.bf16.mxu0 %vm8477_vm4, %v7254_v20 }
 0xe9a   :  { %7259 = vmatpush3.bf16.xpose.msk.msra.mxu0 %vm8477_vm4, %v7254_v20 }
 0xe9b   :  { %7262 = vmatprep.subr.msk.bf16.mxu0 %vm8477_vm4, %v7260_v35 }
 0xea2   :  { %7265 = vmatpush3.bf16.xpose.msk.msra.mxu0 %vm8477_vm4, %v7260_v35 }
 0xef5   :  { %v2881_v27 = vpop.xlane.xlu1 %2880 }
 0xef6   :  { %v2895_v18 = vmul.f32 0.03125, %v2881_v27  ;;  %v2878_v9 = vpop.xlane.xlu0 %2877 }
 0xef7   :  { %v2894_v26 = vmul.f32 0.03125, %v2878_v9  ;;  %v5907_v9 = vld [vmem:[%s10442_s1] ss:$0 sm:$0xff] }
 0xef8   :  { %v9424_v50 = vsub.f32 %v9363_v34, %v2895_v18 }
 0xef9   :  { %v9427_v44 = vsub.f32 %v9365_v16, %v2894_v26 }
 0xefa   :  { %v2907_v33 = vmul.f32 %v9424_v50, %v9424_v50 }
 0xefb   :  { %v2906_v19 = vmul.f32 %v9427_v44, %v9427_v44 }
 0xefc   :  { %v2915_v0 = vsel %vm379_vm3, %v2907_v33, 0.0 }
 0xefd   :  { %2916 = vadd.xlane.f32.xlu1 %v2915_v0  ;;  %v2912_v52 = vsel %vm379_vm3, %v2906_v19, 0.0 }
 0xefe   :  { %2913 = vadd.xlane.f32.xlu0 %v2912_v52 }
 0xf00   :  { %v2887_v48 = vpop.xlane.xlu1 %2886 }
 0xf01   :  { %v2897_v10 = vmul.f32 0.03125, %v2887_v48  ;;  %v2884_v21 = vpop.xlane.xlu0 %2883 }
 0xf02   :  { %v2896_v12 = vmul.f32 0.03125, %v2884_v21 }
 0xf03   :  { %v9436_v5 = vsub.f32 %v9373_v42, %v2897_v10 }
 0xf04   :  { %v9439_v57 = vsub.f32 %v9375_v29, %v2896_v12 }
 0xf05   :  { %v2909_v24 = vmul.f32 %v9436_v5, %v9436_v5 }
 0xf06   :  { %v2908_v56 = vmul.f32 %v9439_v57, %v9439_v57  ;;  %v2893_v62 = vpop.xlane.xlu1 %2892 }
 0xf07   :  { %v2921_v37 = vsel %vm379_vm3, %v2909_v24, 0.0  ;;  %v2899_v1 = vmul.f32 0.03125, %v2893_v62  ;;  %v2890_v22 = vpop.xlane.xlu0 %2889  ;;  %v5908_v24 = vld [vmem:[%s10443_s25] ss:$0 sm:$0xff] }
 0xf08   :  { %2922 = vadd.xlane.f32.xlu1 %v2921_v37  ;;  %v2918_v30 = vsel %vm379_vm3, %v2908_v56, 0.0  ;;  %v2898_v2 = vmul.f32 0.03125, %v2890_v22 }
 0xf09   :  { %2919 = vadd.xlane.f32.xlu0 %v2918_v30  ;;  %v9448_v60 = vsub.f32 %v9383_v51, %v2899_v1 }
 0xf0a   :  { %v9451_v7 = vsub.f32 %v9385_v31, %v2898_v2 }
 0xf0b   :  { %v2911_v4 = vmul.f32 %v9448_v60, %v9448_v60 }
 0xf0c   :  { %v2910_v61 = vmul.f32 %v9451_v7, %v9451_v7 }
 0xf0d   :  { %v2927_v28 = vsel %vm379_vm3, %v2911_v4, 0.0 }
 0xf0e   :  { %2928 = vadd.xlane.f32.xlu1 %v2927_v28  ;;  %v2924_v58 = vsel %vm379_vm3, %v2910_v61, 0.0 }
 0xf0f   :  { %2925 = vadd.xlane.f32.xlu0 %v2924_v58 }
 0xf8a   :  { %v2917_v45 = vpop.xlane.xlu1 %2916 }
 0xf8b   :  { %v2931_v54 = vmul.f32 0.03125, %v2917_v45  ;;  %v2914_v49 = vpop.xlane.xlu0 %2913 }
 0xf8c   :  { %v2930_v32 = vmul.f32 0.03125, %v2914_v49 }
 0xf8d   :  { %v2937_v40 = vadd.f32 1e-06, %v2931_v54 }
 0xf8e   :  { %v2936_v11 = vadd.f32 1e-06, %v2930_v32 }
 0xf8f   :  { %7923 = vrsqrt.f32 %v2937_v40 }
 0xf90   :  { %7925 = vrsqrt.f32 %v2936_v11 }
 0xf95   :  { %v2923_v8 = vpop.xlane.xlu1 %2922 }
 0xf96   :  { %v2933_v17 = vmul.f32 0.03125, %v2923_v8  ;;  %v2920_v15 = vpop.xlane.xlu0 %2919 }
 0xf97   :  { %v2932_v36 = vmul.f32 0.03125, %v2920_v15 }
 0xf98   :  { %v2939_v13 = vadd.f32 1e-06, %v2933_v17 }
 0xf99   :  { %v2938_v27 = vadd.f32 1e-06, %v2932_v36  ;;  %v7924_v18 = vpop.eup %7923 }
 0xf9a   :  { %7927 = vrsqrt.f32 %v2939_v13  ;;  %v7926_v33 = vpop.eup %7925  ;;  %v2949_v19 = vmul.f32 %v7924_v18, %v9424_v50 }
 0xf9b   :  { %7929 = vrsqrt.f32 %v2938_v27  ;;  %v2929_v26 = vpop.xlane.xlu1 %2928  ;;  %v2948_v10 = vmul.f32 %v7926_v33, %v9427_v44 }
 0xf9c   :  { %v2935_v0 = vmul.f32 0.03125, %v2929_v26  ;;  %v2926_v52 = vpop.xlane.xlu0 %2925  ;;  %v2961_v21 = vmul.f32 %v5907_v9, %v2949_v19 }
 0xf9d   :  { %v2934_v48 = vmul.f32 0.03125, %v2926_v52  ;;  %v2960_v62 = vmul.f32 %v5907_v9, %v2948_v10 }
 0xf9e   :  { %v2941_v12 = vadd.f32 1e-06, %v2935_v0  ;;  %v2973_v1 = vadd.f32 %v5908_v24, %v2961_v21  ;;  %v9545_v21 = vld [vmem:[%s8278_s29 + $0x8] sm:$0xff] }
 0xf9f   :  { %v2940_v56 = vadd.f32 1e-06, %v2934_v48  ;;  %v2972_v37 = vadd.f32 %v5908_v24, %v2960_v62 }
 0xfa0   :  { %7931 = vrsqrt.f32 %v2941_v12 }
 0xfa1   :  { %7933 = vrsqrt.f32 %v2940_v56  ;;  %6707 = vmatprep.mubr.msk.f32.mxu0 %vm379_vm3, %v2972_v37 }
 0xfa2   :  { %6708 = vmatmul.mubr.msk.f32.vlgmr.msra.gmra.mrb[52].mxu0 %vm379_vm3, %v2973_v1 }
 0xfa4   :  { %v7928_v22 = vpop.eup %7927 }
 0xfa5   :  { %v7930_v30 = vpop.eup %7929  ;;  %v2951_v50 = vmul.f32 %v7928_v22, %v9436_v5 }
 0xfa6   :  { %v2950_v2 = vmul.f32 %v7930_v30, %v9439_v57  ;;  %v5909_v57 = vld [vmem:[%s10444_s2] ss:$0 sm:$0xff] }
 0xfa7   :  { %v2963_v44 = vmul.f32 %v5907_v9, %v2951_v50 }
 0xfa8   :  { %v2962_v4 = vmul.f32 %v5907_v9, %v2950_v2  ;;  %v9555_v2 = vld [vmem:[%s8278_s29 + $0x18] sm:$0xff] }
 0xfa9   :  { %v2975_v58 = vadd.f32 %v5908_v24, %v2963_v44 }
 0xfaa   :  { %v2974_v61 = vadd.f32 %v5908_v24, %v2962_v4  ;;  %v7932_v28 = vpop.eup %7931 }
 0xfab   :  { %v7934_v23 = vpop.eup %7933  ;;  %v2953_v39 = vmul.f32 %v7932_v28, %v9448_v60 }
 0xfac   :  { %6710 = vmatprep.mubr.msk.f32.mxu0 %vm379_vm3, %v2974_v61  ;;  %v2952_v38 = vmul.f32 %v7934_v23, %v9451_v7  ;;  %v9559_v61 = vld [vmem:[%s8278_s29 + $0x10] sm:$0xff] }
 0xfad   :  { %6711 = vmatmul.mubr.msk.f32.gmra.mrb[54].mxu0 %vm379_vm3, %v2975_v58  ;;  %v2965_v47 = vmul.f32 %v5907_v9, %v2953_v39 }
 0xfae   :  { %v2964_v46 = vmul.f32 %v5907_v9, %v2952_v38 }
 0xfaf   :  { %v2977_v6 = vadd.f32 %v5908_v24, %v2965_v47  ;;  %v9564_v47 = vld [vmem:[%s8278_s29 + $0x20] sm:$0xff] }
 0xfb0   :  { %v2976_v5 = vadd.f32 %v5908_v24, %v2964_v46  ;;  %v9549_v24 = vld [vmem:[%s8278_s29] sm:$0xff] }
 0xfb2   :  { %6713 = vmatprep.mubr.msk.f32.mxu0 %vm379_vm3, %v2976_v5  ;;  %v9568_v5 = vld [vmem:[%s8278_s29 + $0x28] sm:$0xff] }
 0xfb3   :  { %6714 = vmatmul.mubr.msk.f32.gmra.mrb[56].mxu0 %vm379_vm3, %v2977_v6 }
0x1075   :  { %v6709_v20 = vpop.f32.mrb[52].mxu0 }
0x1076   :  { %v9490_v59 = vadd.f32 %v6709_v20, %v5909_v57  ;;  %v3116_v63 = vpop.f32.mrb[53].mxu0 }
0x1077   :  { %v9492_v41 = vadd.f32 %v5909_v57, %v3116_v63 }
0x1079   :  { %6728 = vmatprep.mubr.msk.f32.mxu1 %vm668_vm5, %v9492_v41  ;;  %v9498_v60 = vpack.i.bf16 %v9490_v59, %v9492_v41 }
0x107b   :  { %7660 = vrot.lane.b32.xlu0 %v9498_v60, %s8221_s0 }
0x1080   :  { %v6712_v7 = vpop.f32.mrb[54].mxu0 }
0x1081   :  { %v9502_v55 = vadd.f32 %v6712_v7, %v5909_v57  ;;  %v3126_v25 = vpop.f32.mrb[55].mxu0 }
0x1082   :  { %v9504_v14 = vadd.f32 %v5909_v57, %v3126_v25 }
0x1084   :  { %v9508_v35 = vpack.i.bf16 %v9502_v55, %v9504_v14 }
0x1086   :  { %7665 = vrot.lane.b32.xlu1 %v9508_v35, %s8221_s0  ;;  %v6715_v45 = vpop.f32.mrb[56].mxu0 }
0x1087   :  { %v9512_v54 = vadd.f32 %v6715_v45, %v5909_v57  ;;  %v3136_v49 = vpop.f32.mrb[57].mxu0 }
0x1088   :  { %v9514_v32 = vadd.f32 %v5909_v57, %v3136_v49 }
0x108a   :  { %v9518_v40 = vpack.i.bf16 %v9512_v54, %v9514_v32 }
0x108c   :  { %7670 = vrot.lane.b32.xlu1 %v9518_v40, %s8221_s0  ;;  %s10449_s0 = sld [smem:[#allocation17_spill]] }
0x10ed   :  { %v7661_v11 = vpop.permute.xlu0 %7660 }
0x10ee   :  { %v7663_v8 = vunpack.i.h.bf16 %v7661_v11  ;;  %v7662_v17 = vunpack.i.l.bf16 %v7661_v11 }
0x10f0   :  { %v7266_v15 = vpack.c.bf16 %v7663_v8, %v7662_v17 }
0x10f2   :  { %7268 = vmatprep.subr.msk.bf16.mxu1 %vm8630_vm6, %v7266_v15 }
0x10f3   :  { %7271 = vmatpush3.bf16.xpose.msk.msra.mxu1 %vm8630_vm6, %v7266_v15 }
0x10f8   :  { %v7666_v36 = vpop.permute.xlu1 %7665 }
0x10f9   :  { %v7668_v13 = vunpack.i.h.bf16 %v7666_v36  ;;  %v7667_v27 = vunpack.i.l.bf16 %v7666_v36 }
0x10fb   :  { %v7272_v18 = vpack.c.bf16 %v7668_v13, %v7667_v27 }
0x10fd   :  { %7274 = vmatprep.subr.msk.bf16.mxu1 %vm8630_vm6, %v7272_v18 }
0x10fe   :  { %7277 = vmatpush3.bf16.xpose.msk.msra.mxu1 %vm8630_vm6, %v7272_v18  ;;  %v7671_v9 = vpop.permute.xlu1 %7670 }
0x10ff   :  { %v7673_v26 = vunpack.i.h.bf16 %v7671_v9  ;;  %v7672_v33 = vunpack.i.l.bf16 %v7671_v9 }
0x1101   :  { %v7278_v19 = vpack.c.bf16 %v7673_v26, %v7672_v33 }
0x1103   :  { %7280 = vmatprep.subr.msk.bf16.mxu1 %vm8630_vm6, %v7278_v19 }
0x1106   :  { %7283 = vmatpush3.bf16.xpose.msk.msra.mxu1 %vm8630_vm6, %v7278_v19 }
0x110d   :  { %6729 = vmatmul.mubr.msk.f32.vlgmr.msra.gmra.mrb[24].mxu1 %vm668_vm5, %v9490_v59 }
0x110e   :  { %6731 = vmatprep.mubr.msk.f32.mxu1 %vm668_vm5, %v9504_v14 }
0x1111   :  { %6732 = vmatmul.mubr.msk.f32.gmra.mrb[26].mxu1 %vm668_vm5, %v9502_v55 }
0x1112   :  { %6734 = vmatprep.mubr.msk.f32.mxu1 %vm668_vm5, %v9514_v32 }
0x1115   :  { %6735 = vmatmul.mubr.msk.f32.gmra.mrb[28].mxu1 %vm668_vm5, %v9512_v54 }
0x11e0   :  { %v6730_v0 = vpop.f32.mrb[24].mxu1 }
0x11e1   :  { %v3283_v52 = vmul.f32 0.35355338, %v6730_v0  ;;  %v3253_v48 = vpop.f32.mrb[25].mxu1 }
0x11e2   :  { %v3282_v10 = vmul.f32 0.35355338, %v3253_v48 }
0x11e3   :  { %v3289_v12 = vadd.f32 %v9545_v21, %v3283_v52 }
0x11e4   :  { %v3288_v56 = vadd.f32 %v9549_v24, %v3282_v10  ;;  %v6733_v62 = vpop.f32.mrb[26].mxu1 }
0x11e5   :  { %v3285_v37 = vmul.f32 0.35355338, %v6733_v62  ;;  %v3263_v1 = vpop.f32.mrb[27].mxu1  ;;  %v3297_v22 = vsel %vm176_vm0, %v3289_v12, -inf }
0x11e6   :  { %v3284_v30 = vmul.f32 0.35355338, %v3263_v1  ;;  %3298 = vmax.xlane.f32.xlu0 %v3297_v22  ;;  %v3294_v50 = vsel %vm176_vm0, %v3288_v56, -inf }
0x11e7   :  { %v3291_v44 = vadd.f32 %v9555_v2, %v3285_v37  ;;  %3295 = vmax.xlane.f32.xlu1 %v3294_v50 }
0x11e8   :  { %v6736_v4 = vpop.f32.mrb[28].mxu1  ;;  %v3290_v28 = vadd.f32 %v9559_v61, %v3284_v30 }
0x11e9   :  { %v3287_v58 = vmul.f32 0.35355338, %v6736_v4  ;;  %v3273_v23 = vpop.f32.mrb[29].mxu1  ;;  %v3303_v39 = vsel %vm176_vm0, %v3291_v44, -inf }
0x11ea   :  { %v3286_v38 = vmul.f32 0.35355338, %v3273_v23  ;;  %3304 = vmax.xlane.f32.xlu0 %v3303_v39  ;;  %v3300_v57 = vsel %vm176_vm0, %v3290_v28, -inf }
0x11eb   :  { %v3293_v6 = vadd.f32 %v9568_v5, %v3287_v58 }
0x11ec   :  { %v3292_v46 = vadd.f32 %v9564_v47, %v3286_v38 }
0x11ed   :  { %v3309_v63 = vsel %vm176_vm0, %v3293_v6, -inf }
0x11ee   :  { %3301 = vmax.xlane.f32.xlu0 %v3300_v57  ;;  %v3306_v20 = vsel %vm176_vm0, %v3292_v46, -inf }
0x11ef   :  { %3307 = vmax.xlane.f32.xlu1 %v3306_v20 }
0x11f2   :  { %3310 = vmax.xlane.f32.xlu0 %v3309_v63 }
0x1200   :  { %7675 = vrot.lane.b32.xlu1 %v9498_v60, %s8224_s13 }
0x1204   :  { %7685 = vrot.lane.b32.xlu1 %v9518_v40, %s8224_s13 }
0x1208   :  { %7680 = vrot.lane.b32.xlu0 %v9508_v35, %s8224_s13  ;;  %s10452_s13 = sld [smem:[#allocation21_spill]] }
0x1273   :  { %v3299_v7 = vpop.xlane.xlu0 %3298 }
0x1274   :  { %v3313_v25 = vsub.f32 %v3289_v12, %v3299_v7  ;;  %v3296_v45 = vpop.xlane.xlu1 %3295 }
0x1275   :  { %v3312_v49 = vsub.f32 %v3288_v56, %v3296_v45 }
0x1276   :  { %v3320_v11 = vmul.f32 1.442695, %v3313_v25 }
0x1277   :  { %v3318_v8 = vmul.f32 1.442695, %v3312_v49  ;;  %v3305_v17 = vpop.xlane.xlu0 %3304 }
0x1278   :  { %7935 = vpow2.f32 %v3320_v11  ;;  %v3315_v15 = vsub.f32 %v3291_v44, %v3305_v17 }
0x1279   :  { %7937 = vpow2.f32 %v3318_v8 }
0x127a   :  { %v3324_v36 = vmul.f32 1.442695, %v3315_v15 }
0x127b   :  { %v3302_v13 = vpop.xlane.xlu0 %3301 }
0x127c   :  { %7939 = vpow2.f32 %v3324_v36  ;;  %v3314_v27 = vsub.f32 %v3290_v28, %v3302_v13  ;;  %v3308_v18 = vpop.xlane.xlu1 %3307 }
0x127d   :  { %v3316_v26 = vsub.f32 %v3292_v46, %v3308_v18 }
0x127e   :  { %v3322_v9 = vmul.f32 1.442695, %v3314_v27 }
0x127f   :  { %v3311_v33 = vpop.xlane.xlu0 %3310  ;;  %v3326_v12 = vmul.f32 1.442695, %v3316_v26 }
0x1280   :  { %7941 = vpow2.f32 %v3322_v9  ;;  %v3317_v19 = vsub.f32 %v3293_v6, %v3311_v33  ;;  %v7676_v0 = vpop.permute.xlu1 %7675 }
0x1281   :  { %v7678_v52 = vunpack.i.h.bf16 %v7676_v0  ;;  %v7677_v48 = vunpack.i.l.bf16 %v7676_v0 }
0x1282   :  { %v7936_v10 = vpop.eup %7935  ;;  %v3328_v56 = vmul.f32 1.442695, %v3317_v19 }
0x1283   :  { %v7938_v62 = vpop.eup %7937  ;;  %v7681_v37 = vpop.permute.xlu0 %7680  ;;  %v3333_v1 = vsel %vm176_vm0, %v7936_v10, 0.0  ;;  %v7284_v22 = vpack.c.bf16 %v7678_v52, %v7677_v48 }
0x1284   :  { %7943 = vpow2.f32 %v3328_v56  ;;  %v7683_v30 = vunpack.i.h.bf16 %v7681_v37  ;;  %v7682_v50 = vunpack.i.l.bf16 %v7681_v37  ;;  %3334 = vadd.xlane.f32.xlu0 %v3333_v1  ;;  %v7686_v44 = vpop.permute.xlu1 %7685  ;;  %v3330_v4 = vsel %vm176_vm0, %v7938_v62, 0.0 }
0x1285   :  { %v7688_v28 = vunpack.i.h.bf16 %v7686_v44  ;;  %v7687_v58 = vunpack.i.l.bf16 %v7686_v44  ;;  %3331 = vadd.xlane.f32.xlu1 %v3330_v4  ;;  %7285 = vmatprep.subr.bf16.mxu0 %v7284_v22  ;;  %7945 = vpow2.f32 %v3326_v12 }
0x1286   :  { %v7940_v23 = vpop.eup %7939  ;;  %7287 = vmatpush3.bf16.msra.mxu0 %v7284_v22  ;;  %v7288_v39 = vpack.c.bf16 %v7683_v30, %v7682_v50 }
0x1287   :  { %v3339_v38 = vsel %vm176_vm0, %v7940_v23, 0.0  ;;  %v7292_v46 = vpack.c.bf16 %v7688_v28, %v7687_v58 }
0x1288   :  { %3340 = vadd.xlane.f32.xlu0 %v3339_v38  ;;  %7289 = vmatprep.subr.bf16.mxu0 %v7288_v39 }
0x128a   :  { %v7942_v6 = vpop.eup %7941  ;;  %7291 = vmatpush3.bf16.msra.mxu0 %v7288_v39 }
0x128b   :  { %7293 = vmatprep.subr.bf16.mxu0 %v7292_v46  ;;  %v3336_v57 = vsel %vm176_vm0, %v7942_v6, 0.0 }
0x128c   :  { %3337 = vadd.xlane.f32.xlu1 %v3336_v57 }
0x128e   :  { %v7944_v20 = vpop.eup %7943  ;;  %7295 = vmatpush3.bf16.msra.mxu0 %v7292_v46 }
0x128f   :  { %v3345_v63 = vsel %vm176_vm0, %v7944_v20, 0.0  ;;  %v7946_v7 = vpop.eup %7945 }
0x1290   :  { %3346 = vadd.xlane.f32.xlu0 %v3345_v63  ;;  %v3342_v25 = vsel %vm176_vm0, %v7946_v7, 0.0 }
0x1294   :  { %3343 = vadd.xlane.f32.xlu0 %v3342_v25 }
0x129d   :  { %7695 = vrot.lane.b32.xlu1 %v9508_v35, %s8222_s5 }
0x12a1   :  { %7700 = vrot.lane.b32.xlu1 %v9518_v40, %s8222_s5 }
0x12a5   :  { %3491 = vrot.lane.b32.xlu1 %v9492_v41, %s8223_s9 }
0x12a9   :  { %3493 = vrot.lane.b32.xlu1 %v9490_v59, %s8223_s9 }
0x12aa   :  { %7690 = vrot.lane.b32.xlu0 %v9498_v60, %s8222_s5  ;;  %s10450_s5 = sld [smem:[#allocation20_spill]] }
0x12ad   :  { %3495 = vrot.lane.b32.xlu1 %v9504_v14, %s8223_s9 }
0x12ae   :  { %3497 = vrot.lane.b32.xlu0 %v9502_v55, %s8223_s9 }
0x12b1   :  { %3499 = vrot.lane.b32.xlu1 %v9514_v32, %s8223_s9 }
0x12b2   :  { %3501 = vrot.lane.b32.xlu0 %v9512_v54, %s8223_s9  ;;  %s10451_s9 = sld [smem:[#allocation19_spill]] }
0x1311   :  { %v3335_v45 = vpop.xlane.xlu0 %3334 }
0x1312   :  { %7947 = vrcp.f32 %v3335_v45  ;;  %v3332_v49 = vpop.xlane.xlu1 %3331 }
0x1313   :  { %7949 = vrcp.f32 %v3332_v49 }
0x1315   :  { %v3341_v11 = vpop.xlane.xlu0 %3340 }
0x1316   :  { %7951 = vrcp.f32 %v3341_v11 }
0x1319   :  { %v3338_v8 = vpop.xlane.xlu1 %3337 }
0x131a   :  { %7953 = vrcp.f32 %v3338_v8 }
0x131c   :  { %v7948_v17 = vpop.eup %7947 }
0x131d   :  { %v7950_v15 = vpop.eup %7949  ;;  %v3347_v36 = vpop.xlane.xlu0 %3346  ;;  %v3355_v27 = vmul.f32 %v7948_v17, %v7936_v10 }
0x131e   :  { %v3354_v13 = vmul.f32 %v7950_v15, %v7938_v62  ;;  %7955 = vrcp.f32 %v3347_v36  ;;  %v7696_v9 = vpop.permute.xlu1 %7695 }
0x131f   :  { %v7698_v19 = vunpack.i.h.bf16 %v7696_v9  ;;  %v7697_v48 = vunpack.i.l.bf16 %v7696_v9 }
0x1320   :  { %6749 = vmatprep.mubr.msk.f32.mxu0 %vm176_vm0, %v3354_v13  ;;  %v7952_v26 = vpop.eup %7951 }
0x1321   :  { %v3344_v18 = vpop.xlane.xlu0 %3343  ;;  %6750 = vmatmul.mubr.msk.f32.vlgmr.msra.gmra.mrb[58].mxu0 %vm176_vm0, %v3355_v27  ;;  %v3357_v37 = vmul.f32 %v7952_v26, %v7940_v23  ;;  %v7302_v62 = vpack.c.bf16 %v7698_v19, %v7697_v48 }
0x1322   :  { %7957 = vrcp.f32 %v3344_v18  ;;  %v7701_v1 = vpop.permute.xlu1 %7700 }
0x1323   :  { %v7703_v44 = vunpack.i.h.bf16 %v7701_v1  ;;  %v7702_v4 = vunpack.i.l.bf16 %v7701_v1 }
0x1324   :  { %v7954_v33 = vpop.eup %7953 }
0x1325   :  { %v7691_v0 = vpop.permute.xlu0 %7690  ;;  %v3356_v52 = vmul.f32 %v7954_v33, %v7942_v6  ;;  %v7308_v23 = vpack.c.bf16 %v7703_v44, %v7702_v4 }
0x1326   :  { %v7693_v12 = vunpack.i.h.bf16 %v7691_v0  ;;  %v7692_v56 = vunpack.i.l.bf16 %v7691_v0  ;;  %v3492_v58 = vpop.permute.xlu1 %3491 }
0x1327   :  { %6752 = vmatprep.mubr.msk.f32.mxu0 %vm176_vm0, %v3356_v52 }
0x1328   :  { %v7296_v10 = vpack.c.bf16 %v7693_v12, %v7692_v56  ;;  %6753 = vmatmul.mubr.msk.f32.gmra.mrb[60].mxu0 %vm176_vm0, %v3357_v37  ;;  %v7956_v22 = vpop.eup %7955 }
0x1329   :  { %v3359_v28 = vmul.f32 %v7956_v22, %v7944_v20  ;;  %v3498_v46 = vpop.permute.xlu0 %3497 }
0x132a   :  { %7298 = vmatprep.subr.msk.bf16.mxu0 %vm8630_vm6, %v7296_v10  ;;  %v3494_v39 = vpop.permute.xlu1 %3493 }
0x132b   :  { %7301 = vmatpush3.bf16.xpose.msk.msra.mxu0 %vm8630_vm6, %v7296_v10 }
0x132c   :  { %v7958_v30 = vpop.eup %7957  ;;  %7304 = vmatprep.subr.msk.bf16.mxu0 %vm8630_vm6, %v7302_v62 }
0x132d   :  { %v3358_v50 = vmul.f32 %v7958_v30, %v7946_v7  ;;  %v3502_v57 = vpop.permute.xlu0 %3501 }
0x132e   :  { %v3496_v38 = vpop.permute.xlu1 %3495 }
0x132f   :  { %6755 = vmatprep.mubr.msk.f32.mxu0 %vm176_vm0, %v3358_v50 }
0x1330   :  { %6756 = vmatmul.mubr.msk.f32.gmra.mrb[62].mxu0 %vm176_vm0, %v3359_v28 }
0x1331   :  { %6770 = vmatprep.mubr.msk.f32.mxu0 %vm668_vm5, %v3492_v58 }
0x1332   :  { %v3500_v6 = vpop.permute.xlu1 %3499 }
0x1333   :  { %7307 = vmatpush3.bf16.xpose.msk.msra.mxu0 %vm8630_vm6, %v7302_v62 }
0x1334   :  { %7310 = vmatprep.subr.msk.bf16.mxu0 %vm8630_vm6, %v7308_v23 }
0x133b   :  { %7313 = vmatpush3.bf16.xpose.msk.msra.mxu0 %vm8630_vm6, %v7308_v23 }
0x1342   :  { %6771 = vmatmul.mubr.msk.f32.vlgmr.msra.gmra.mrb[64].mxu0 %vm668_vm5, %v3494_v39 }
0x1343   :  { %6773 = vmatprep.mubr.msk.f32.mxu0 %vm668_vm5, %v3496_v38 }
0x1346   :  { %6774 = vmatmul.mubr.msk.f32.gmra.mrb[66].mxu0 %vm668_vm5, %v3498_v46 }
0x1347   :  { %6776 = vmatprep.mubr.msk.f32.mxu0 %vm668_vm5, %v3500_v6 }
0x134a   :  { %6777 = vmatmul.mubr.msk.f32.gmra.mrb[68].mxu0 %vm668_vm5, %v3502_v57 }
0x13f4   :  { %v9628_v20 = vpop.f32.mrb[58].mxu0 }
0x13f5   :  { %v9630_v63 = vpop.f32.mrb[59].mxu0 }
0x13fb   :  { %v9632_v7 = vpop.f32.mrb[60].mxu0 }
0x13fc   :  { %v9634_v25 = vpop.f32.mrb[61].mxu0 }
0x1403   :  { %v9636_v45 = vpop.f32.mrb[62].mxu0 }
0x1404   :  { %v9638_v49 = vpop.f32.mrb[63].mxu0 }
0x1415   :  { %v6772_v11 = vpop.f32.mrb[64].mxu0 }
0x1416   :  { %v3635_v8 = vmul.f32 0.35355338, %v6772_v11  ;;  %v3605_v17 = vpop.f32.mrb[65].mxu0 }
0x1417   :  { %v3634_v15 = vmul.f32 0.35355338, %v3605_v17 }
0x1418   :  { %v3641_v36 = vadd.f32 %v9545_v21, %v3635_v8 }
0x1419   :  { %v3640_v13 = vadd.f32 %v9549_v24, %v3634_v15  ;;  %v6775_v27 = vpop.f32.mrb[66].mxu0 }
0x141a   :  { %v3637_v18 = vmul.f32 0.35355338, %v6775_v27  ;;  %v3615_v9 = vpop.f32.mrb[67].mxu0  ;;  %v3649_v26 = vsel %vm176_vm0, %v3641_v36, -inf }
0x141b   :  { %v3636_v33 = vmul.f32 0.35355338, %v3615_v9  ;;  %3650 = vmax.xlane.f32.xlu0 %v3649_v26  ;;  %v3646_v19 = vsel %vm176_vm0, %v3640_v13, -inf }
0x141c   :  { %v3643_v0 = vadd.f32 %v9555_v2, %v3637_v18  ;;  %3647 = vmax.xlane.f32.xlu1 %v3646_v19 }
0x141d   :  { %v6778_v52 = vpop.f32.mrb[68].mxu0  ;;  %v3642_v48 = vadd.f32 %v9559_v61, %v3636_v33 }
0x141e   :  { %v3639_v12 = vmul.f32 0.35355338, %v6778_v52  ;;  %v3625_v56 = vpop.f32.mrb[69].mxu0  ;;  %v3655_v37 = vsel %vm176_vm0, %v3643_v0, -inf }
0x141f   :  { %v3638_v10 = vmul.f32 0.35355338, %v3625_v56  ;;  %3656 = vmax.xlane.f32.xlu0 %v3655_v37  ;;  %v3652_v22 = vsel %vm176_vm0, %v3642_v48, -inf }
0x1420   :  { %v3645_v1 = vadd.f32 %v9568_v5, %v3639_v12 }
0x1421   :  { %v3644_v62 = vadd.f32 %v9564_v47, %v3638_v10 }
0x1422   :  { %v3661_v50 = vsel %vm176_vm0, %v3645_v1, -inf }
0x1423   :  { %3653 = vmax.xlane.f32.xlu0 %v3652_v22  ;;  %v3658_v30 = vsel %vm176_vm0, %v3644_v62, -inf }
0x1424   :  { %3659 = vmax.xlane.f32.xlu1 %v3658_v30 }
0x1427   :  { %3662 = vmax.xlane.f32.xlu0 %v3661_v50 }
0x1435   :  { %7705 = vrot.lane.b32.xlu1 %v9498_v60, %s8225_s17 }
0x1439   :  { %7715 = vrot.lane.b32.xlu1 %v9518_v40, %s8225_s17 }
0x143d   :  { %7710 = vrot.lane.b32.xlu0 %v9508_v35, %s8225_s17 }
0x14a8   :  { %v3651_v44 = vpop.xlane.xlu0 %3650 }
0x14a9   :  { %v3665_v4 = vsub.f32 %v3641_v36, %v3651_v44  ;;  %v3648_v28 = vpop.xlane.xlu1 %3647 }
0x14aa   :  { %v3664_v58 = vsub.f32 %v3640_v13, %v3648_v28 }
0x14ab   :  { %v3672_v23 = vmul.f32 1.442695, %v3665_v4 }
0x14ac   :  { %v3670_v39 = vmul.f32 1.442695, %v3664_v58  ;;  %v3657_v38 = vpop.xlane.xlu0 %3656 }
0x14ad   :  { %7959 = vpow2.f32 %v3672_v23  ;;  %v3667_v46 = vsub.f32 %v3643_v0, %v3657_v38 }
0x14ae   :  { %7961 = vpow2.f32 %v3670_v39 }
0x14af   :  { %v3676_v6 = vmul.f32 1.442695, %v3667_v46 }
0x14b0   :  { %v3654_v57 = vpop.xlane.xlu0 %3653 }
0x14b1   :  { %7963 = vpow2.f32 %v3676_v6  ;;  %v3666_v11 = vsub.f32 %v3642_v48, %v3654_v57  ;;  %v3660_v8 = vpop.xlane.xlu1 %3659 }
0x14b2   :  { %v3668_v15 = vsub.f32 %v3644_v62, %v3660_v8 }
0x14b3   :  { %v3674_v17 = vmul.f32 1.442695, %v3666_v11 }
0x14b4   :  { %v3663_v27 = vpop.xlane.xlu0 %3662  ;;  %v3678_v33 = vmul.f32 1.442695, %v3668_v15 }
0x14b5   :  { %7965 = vpow2.f32 %v3674_v17  ;;  %v3669_v18 = vsub.f32 %v3645_v1, %v3663_v27  ;;  %v7706_v9 = vpop.permute.xlu1 %7705 }
0x14b6   :  { %v7708_v36 = vunpack.i.h.bf16 %v7706_v9  ;;  %v7707_v26 = vunpack.i.l.bf16 %v7706_v9 }
0x14b7   :  { %v7960_v13 = vpop.eup %7959  ;;  %v3680_v19 = vmul.f32 1.442695, %v3669_v18 }
0x14b8   :  { %v7962_v52 = vpop.eup %7961  ;;  %v7711_v12 = vpop.permute.xlu0 %7710  ;;  %v3685_v0 = vsel %vm176_vm0, %v7960_v13, 0.0  ;;  %v7314_v56 = vpack.c.bf16 %v7708_v36, %v7707_v26 }
0x14b9   :  { %7967 = vpow2.f32 %v3680_v19  ;;  %v7713_v37 = vunpack.i.h.bf16 %v7711_v12  ;;  %v7712_v48 = vunpack.i.l.bf16 %v7711_v12  ;;  %3686 = vadd.xlane.f32.xlu0 %v3685_v0  ;;  %v7716_v10 = vpop.permute.xlu1 %7715  ;;  %v3682_v62 = vsel %vm176_vm0, %v7962_v52, 0.0 }
0x14ba   :  { %v7718_v22 = vunpack.i.h.bf16 %v7716_v10  ;;  %v7717_v1 = vunpack.i.l.bf16 %v7716_v10  ;;  %3683 = vadd.xlane.f32.xlu1 %v3682_v62  ;;  %7315 = vmatprep.subr.bf16.mxu1 %v7314_v56  ;;  %7969 = vpow2.f32 %v3678_v33 }
0x14bb   :  { %v7964_v30 = vpop.eup %7963  ;;  %7317 = vmatpush3.bf16.msra.mxu1 %v7314_v56  ;;  %v7318_v50 = vpack.c.bf16 %v7713_v37, %v7712_v48 }
0x14bc   :  { %v3691_v44 = vsel %vm176_vm0, %v7964_v30, 0.0  ;;  %v7322_v4 = vpack.c.bf16 %v7718_v22, %v7717_v1 }
0x14bd   :  { %3692 = vadd.xlane.f32.xlu0 %v3691_v44  ;;  %7319 = vmatprep.subr.bf16.mxu1 %v7318_v50 }
0x14bf   :  { %v7966_v28 = vpop.eup %7965  ;;  %7321 = vmatpush3.bf16.msra.mxu1 %v7318_v50 }
0x14c0   :  { %7323 = vmatprep.subr.bf16.mxu1 %v7322_v4  ;;  %v3688_v58 = vsel %vm176_vm0, %v7966_v28, 0.0 }
0x14c1   :  { %3689 = vadd.xlane.f32.xlu1 %v3688_v58 }
0x14c3   :  { %v7968_v23 = vpop.eup %7967  ;;  %7325 = vmatpush3.bf16.msra.mxu1 %v7322_v4 }
0x14c4   :  { %v3697_v39 = vsel %vm176_vm0, %v7968_v23, 0.0  ;;  %v7970_v38 = vpop.eup %7969 }
0x14c5   :  { %3698 = vadd.xlane.f32.xlu0 %v3697_v39  ;;  %v3694_v46 = vsel %vm176_vm0, %v7970_v38, 0.0 }
0x14c9   :  { %3695 = vadd.xlane.f32.xlu0 %v3694_v46 }
0x14d2   :  { %7725 = vrot.lane.b32.xlu1 %v9508_v35, %s8226_s21 }
0x14d6   :  { %7730 = vrot.lane.b32.xlu1 %v9518_v40, %s8226_s21 }
0x14da   :  { %3843 = vrot.lane.b32.xlu1 %v9492_v41, %s8228_s8 }
0x14de   :  { %3845 = vrot.lane.b32.xlu1 %v9490_v59, %s8228_s8 }
0x14df   :  { %7720 = vrot.lane.b32.xlu0 %v9498_v60, %s8226_s21 }
0x14e2   :  { %3847 = vrot.lane.b32.xlu1 %v9504_v14, %s8228_s8 }
0x14e3   :  { %3849 = vrot.lane.b32.xlu0 %v9502_v55, %s8228_s8 }
0x14e6   :  { %3851 = vrot.lane.b32.xlu1 %v9514_v32, %s8228_s8 }
0x14e7   :  { %3853 = vrot.lane.b32.xlu0 %v9512_v54, %s8228_s8 }
0x1546   :  { %v3687_v6 = vpop.xlane.xlu0 %3686 }
0x1547   :  { %7971 = vrcp.f32 %v3687_v6  ;;  %v3684_v57 = vpop.xlane.xlu1 %3683 }
0x1548   :  { %7973 = vrcp.f32 %v3684_v57 }
0x154a   :  { %v3693_v11 = vpop.xlane.xlu0 %3692 }
0x154b   :  { %7975 = vrcp.f32 %v3693_v11 }
0x154e   :  { %v3690_v8 = vpop.xlane.xlu1 %3689 }
0x154f   :  { %7977 = vrcp.f32 %v3690_v8 }
0x1551   :  { %v7972_v17 = vpop.eup %7971 }
0x1552   :  { %v7974_v15 = vpop.eup %7973  ;;  %v3699_v27 = vpop.xlane.xlu0 %3698  ;;  %v3707_v9 = vmul.f32 %v7972_v17, %v7960_v13 }
0x1553   :  { %v3706_v18 = vmul.f32 %v7974_v15, %v7962_v52  ;;  %7979 = vrcp.f32 %v3699_v27  ;;  %v7726_v26 = vpop.permute.xlu1 %7725 }
0x1554   :  { %v7728_v12 = vunpack.i.h.bf16 %v7726_v26  ;;  %v7727_v37 = vunpack.i.l.bf16 %v7726_v26 }
0x1555   :  { %6791 = vmatprep.mubr.msk.f32.mxu1 %vm176_vm0, %v3706_v18  ;;  %v7976_v33 = vpop.eup %7975 }
0x1556   :  { %v3696_v36 = vpop.xlane.xlu0 %3695  ;;  %6792 = vmatmul.mubr.msk.f32.vlgmr.msra.gmra.mrb[30].mxu1 %vm176_vm0, %v3707_v9  ;;  %v3709_v62 = vmul.f32 %v7976_v33, %v7964_v30  ;;  %v7332_v52 = vpack.c.bf16 %v7728_v12, %v7727_v37 }
0x1557   :  { %7981 = vrcp.f32 %v3696_v36  ;;  %v7731_v22 = vpop.permute.xlu1 %7730 }
0x1558   :  { %v7733_v30 = vunpack.i.h.bf16 %v7731_v22  ;;  %v7732_v4 = vunpack.i.l.bf16 %v7731_v22 }
0x1559   :  { %v7978_v19 = vpop.eup %7977 }
0x155a   :  { %v7721_v0 = vpop.permute.xlu0 %7720  ;;  %v3708_v56 = vmul.f32 %v7978_v19, %v7966_v28  ;;  %v7338_v39 = vpack.c.bf16 %v7733_v30, %v7732_v4 }
0x155b   :  { %v7723_v48 = vunpack.i.h.bf16 %v7721_v0  ;;  %v7722_v10 = vunpack.i.l.bf16 %v7721_v0  ;;  %v3844_v58 = vpop.permute.xlu1 %3843 }
0x155c   :  { %6794 = vmatprep.mubr.msk.f32.mxu1 %vm176_vm0, %v3708_v56 }
0x155d   :  { %v7326_v13 = vpack.c.bf16 %v7723_v48, %v7722_v10  ;;  %6795 = vmatmul.mubr.msk.f32.gmra.mrb[32].mxu1 %vm176_vm0, %v3709_v62  ;;  %v7980_v1 = vpop.eup %7979 }
0x155e   :  { %v3711_v28 = vmul.f32 %v7980_v1, %v7968_v23  ;;  %v3850_v23 = vpop.permute.xlu0 %3849 }
0x155f   :  { %7328 = vmatprep.subr.msk.bf16.mxu1 %vm8630_vm6, %v7326_v13  ;;  %v3846_v46 = vpop.permute.xlu1 %3845 }
0x1560   :  { %7331 = vmatpush3.bf16.xpose.msk.msra.mxu1 %vm8630_vm6, %v7326_v13 }
0x1561   :  { %v7982_v50 = vpop.eup %7981  ;;  %7334 = vmatprep.subr.msk.bf16.mxu1 %vm8630_vm6, %v7332_v52 }
0x1562   :  { %v3710_v44 = vmul.f32 %v7982_v50, %v7970_v38  ;;  %v3854_v57 = vpop.permute.xlu0 %3853 }
0x1563   :  { %v3848_v38 = vpop.permute.xlu1 %3847 }
0x1564   :  { %6797 = vmatprep.mubr.msk.f32.mxu1 %vm176_vm0, %v3710_v44 }
0x1565   :  { %6798 = vmatmul.mubr.msk.f32.gmra.mrb[34].mxu1 %vm176_vm0, %v3711_v28 }
0x1566   :  { %6812 = vmatprep.mubr.msk.f32.mxu1 %vm668_vm5, %v3844_v58 }
0x1567   :  { %v3852_v6 = vpop.permute.xlu1 %3851 }
0x1568   :  { %7337 = vmatpush3.bf16.xpose.msk.msra.mxu1 %vm8630_vm6, %v7332_v52 }
0x1569   :  { %7340 = vmatprep.subr.msk.bf16.mxu1 %vm8630_vm6, %v7338_v39 }
0x1570   :  { %7343 = vmatpush3.bf16.xpose.msk.msra.mxu1 %vm8630_vm6, %v7338_v39 }
0x1577   :  { %6813 = vmatmul.mubr.msk.f32.vlgmr.msra.gmra.mrb[36].mxu1 %vm668_vm5, %v3846_v46 }
0x1578   :  { %6815 = vmatprep.mubr.msk.f32.mxu1 %vm668_vm5, %v3848_v38 }
0x157b   :  { %6816 = vmatmul.mubr.msk.f32.gmra.mrb[38].mxu1 %vm668_vm5, %v3850_v23 }
0x157c   :  { %6818 = vmatprep.mubr.msk.f32.mxu1 %vm668_vm5, %v3852_v6 }
0x157f   :  { %6819 = vmatmul.mubr.msk.f32.gmra.mrb[40].mxu1 %vm668_vm5, %v3854_v57 }
0x1629   :  { %v9706_v11 = vpop.f32.mrb[30].mxu1 }
0x162a   :  { %v9708_v8 = vpop.f32.mrb[31].mxu1 }
0x1630   :  { %v9710_v17 = vpop.f32.mrb[32].mxu1 }
0x1631   :  { %v9712_v15 = vpop.f32.mrb[33].mxu1 }
0x1638   :  { %v9714_v27 = vpop.f32.mrb[34].mxu1 }
0x1639   :  { %v9716_v18 = vpop.f32.mrb[35].mxu1 }
0x164a   :  { %v6814_v9 = vpop.f32.mrb[36].mxu1 }
0x164b   :  { %v3987_v36 = vmul.f32 0.35355338, %v6814_v9  ;;  %v3957_v26 = vpop.f32.mrb[37].mxu1 }
0x164c   :  { %v3986_v33 = vmul.f32 0.35355338, %v3957_v26 }
0x164d   :  { %v3993_v19 = vadd.f32 %v9545_v21, %v3987_v36 }
0x164e   :  { %v3992_v12 = vadd.f32 %v9549_v24, %v3986_v33  ;;  %v6817_v0 = vpop.f32.mrb[38].mxu1 }
0x164f   :  { %v3989_v56 = vmul.f32 0.35355338, %v6817_v0  ;;  %v3967_v37 = vpop.f32.mrb[39].mxu1  ;;  %v4001_v48 = vsel %vm176_vm0, %v3993_v19, -inf }
0x1650   :  { %v3988_v10 = vmul.f32 0.35355338, %v3967_v37  ;;  %4002 = vmax.xlane.f32.xlu0 %v4001_v48  ;;  %v3998_v62 = vsel %vm176_vm0, %v3992_v12, -inf }
0x1651   :  { %v3995_v13 = vadd.f32 %v9555_v2, %v3989_v56  ;;  %3999 = vmax.xlane.f32.xlu1 %v3998_v62 }
0x1652   :  { %v6820_v52 = vpop.f32.mrb[40].mxu1  ;;  %v3994_v22 = vadd.f32 %v9559_v61, %v3988_v10 }
0x1653   :  { %v3991_v1 = vmul.f32 0.35355338, %v6820_v52  ;;  %v3977_v50 = vpop.f32.mrb[41].mxu1  ;;  %v4007_v21 = vsel %vm176_vm0, %v3995_v13, -inf }
0x1654   :  { %v3990_v24 = vmul.f32 0.35355338, %v3977_v50  ;;  %4008 = vmax.xlane.f32.xlu0 %v4007_v21  ;;  %v4004_v4 = vsel %vm176_vm0, %v3994_v22, -inf }
0x1655   :  { %v3997_v30 = vadd.f32 %v9568_v5, %v3991_v1 }
0x1656   :  { %v3996_v44 = vadd.f32 %v9564_v47, %v3990_v24 }
0x1657   :  { %v4013_v2 = vsel %vm176_vm0, %v3997_v30, -inf }
0x1658   :  { %4005 = vmax.xlane.f32.xlu0 %v4004_v4  ;;  %v4010_v28 = vsel %vm176_vm0, %v3996_v44, -inf }
0x1659   :  { %4011 = vmax.xlane.f32.xlu1 %v4010_v28 }
0x165c   :  { %4014 = vmax.xlane.f32.xlu0 %v4013_v2 }
0x166a   :  { %7735 = vrot.lane.b32.xlu1 %v9498_v60, %s8230_s19 }
0x166e   :  { %7745 = vrot.lane.b32.xlu1 %v9518_v40, %s8230_s19 }
0x1672   :  { %7740 = vrot.lane.b32.xlu0 %v9508_v35, %s8230_s19 }
0x16dd   :  { %v4003_v61 = vpop.xlane.xlu0 %4002 }
0x16de   :  { %v4017_v47 = vsub.f32 %v3993_v19, %v4003_v61  ;;  %v4000_v5 = vpop.xlane.xlu1 %3999 }
0x16df   :  { %v4016_v58 = vsub.f32 %v3992_v12, %v4000_v5 }
0x16e0   :  { %v4024_v39 = vmul.f32 1.442695, %v4017_v47 }
0x16e1   :  { %v4022_v46 = vmul.f32 1.442695, %v4016_v58  ;;  %v4009_v38 = vpop.xlane.xlu0 %4008 }
0x16e2   :  { %7983 = vpow2.f32 %v4024_v39  ;;  %v4019_v23 = vsub.f32 %v3995_v13, %v4009_v38 }
0x16e3   :  { %7985 = vpow2.f32 %v4022_v46 }
0x16e4   :  { %v4028_v6 = vmul.f32 1.442695, %v4019_v23 }
0x16e5   :  { %v4006_v57 = vpop.xlane.xlu0 %4005 }
0x16e6   :  { %7987 = vpow2.f32 %v4028_v6  ;;  %v4018_v9 = vsub.f32 %v3994_v22, %v4006_v57  ;;  %v4012_v36 = vpop.xlane.xlu1 %4011 }
0x16e7   :  { %v4020_v33 = vsub.f32 %v3996_v44, %v4012_v36 }
0x16e8   :  { %v4026_v26 = vmul.f32 1.442695, %v4018_v9 }
0x16e9   :  { %v4015_v0 = vpop.xlane.xlu0 %4014  ;;  %v4030_v10 = vmul.f32 1.442695, %v4020_v33 }
0x16ea   :  { %7989 = vpow2.f32 %v4026_v26  ;;  %v4021_v56 = vsub.f32 %v3997_v30, %v4015_v0  ;;  %v7736_v37 = vpop.permute.xlu1 %7735 }
0x16eb   :  { %v7738_v19 = vunpack.i.h.bf16 %v7736_v37  ;;  %v7737_v48 = vunpack.i.l.bf16 %v7736_v37 }
0x16ec   :  { %v7984_v12 = vpop.eup %7983  ;;  %v4032_v62 = vmul.f32 1.442695, %v4021_v56 }
0x16ed   :  { %v7986_v52 = vpop.eup %7985  ;;  %v7344_v1 = vpack.c.bf16 %v7738_v19, %v7737_v48  ;;  %v7741_v13 = vpop.permute.xlu0 %7740  ;;  %v4037_v50 = vsel %vm176_vm0, %v7984_v12, 0.0 }
0x16ee   :  { %7991 = vpow2.f32 %v4032_v62  ;;  %v7743_v21 = vunpack.i.h.bf16 %v7741_v13  ;;  %v7742_v22 = vunpack.i.l.bf16 %v7741_v13  ;;  %4038 = vadd.xlane.f32.xlu0 %v4037_v50  ;;  %v7746_v24 = vpop.permute.xlu1 %7745  ;;  %v4034_v44 = vsel %vm176_vm0, %v7986_v52, 0.0 }
0x16ef   :  { %v7748_v4 = vunpack.i.h.bf16 %v7746_v24  ;;  %v7747_v30 = vunpack.i.l.bf16 %v7746_v24  ;;  %4035 = vadd.xlane.f32.xlu1 %v4034_v44  ;;  %7345 = vmatprep.subr.bf16.mxu0 %v7344_v1  ;;  %7993 = vpow2.f32 %v4030_v10 }
0x16f0   :  { %v7988_v28 = vpop.eup %7987  ;;  %v7348_v2 = vpack.c.bf16 %v7743_v21, %v7742_v22  ;;  %7347 = vmatpush3.bf16.msra.mxu0 %v7344_v1 }
0x16f1   :  { %v4043_v61 = vsel %vm176_vm0, %v7988_v28, 0.0  ;;  %v7352_v47 = vpack.c.bf16 %v7748_v4, %v7747_v30 }
0x16f2   :  { %4044 = vadd.xlane.f32.xlu0 %v4043_v61  ;;  %7349 = vmatprep.subr.bf16.mxu0 %v7348_v2 }
0x16f4   :  { %v7990_v5 = vpop.eup %7989  ;;  %7351 = vmatpush3.bf16.msra.mxu0 %v7348_v2 }
0x16f5   :  { %7353 = vmatprep.subr.bf16.mxu0 %v7352_v47  ;;  %v4040_v58 = vsel %vm176_vm0, %v7990_v5, 0.0 }
0x16f6   :  { %4041 = vadd.xlane.f32.xlu1 %v4040_v58 }
0x16f8   :  { %v7992_v39 = vpop.eup %7991  ;;  %7355 = vmatpush3.bf16.msra.mxu0 %v7352_v47 }
0x16f9   :  { %v4049_v46 = vsel %vm176_vm0, %v7992_v39, 0.0  ;;  %v7994_v38 = vpop.eup %7993 }
0x16fa   :  { %4050 = vadd.xlane.f32.xlu0 %v4049_v46  ;;  %v4046_v23 = vsel %vm176_vm0, %v7994_v38, 0.0 }
0x16fe   :  { %4047 = vadd.xlane.f32.xlu0 %v4046_v23 }
0x1707   :  { %7755 = vrot.lane.b32.xlu1 %v9508_v35, %s8227_s3 }
0x170b   :  { %7760 = vrot.lane.b32.xlu1 %v9518_v40, %s8227_s3 }
0x170f   :  { %4195 = vrot.lane.b32.xlu1 %v9492_v41, %s8229_s14 }
0x1713   :  { %4197 = vrot.lane.b32.xlu1 %v9490_v59, %s8229_s14 }
0x1714   :  { %7750 = vrot.lane.b32.xlu0 %v9498_v60, %s8227_s3 }
0x1717   :  { %4199 = vrot.lane.b32.xlu1 %v9504_v14, %s8229_s14 }
0x1718   :  { %4201 = vrot.lane.b32.xlu0 %v9502_v55, %s8229_s14 }
0x171b   :  { %4203 = vrot.lane.b32.xlu1 %v9514_v32, %s8229_s14 }
0x171c   :  { %4205 = vrot.lane.b32.xlu0 %v9512_v54, %s8229_s14 }
0x177b   :  { %v4039_v6 = vpop.xlane.xlu0 %4038 }
0x177c   :  { %7995 = vrcp.f32 %v4039_v6  ;;  %v4036_v41 = vpop.xlane.xlu1 %4035 }
0x177d   :  { %7997 = vrcp.f32 %v4036_v41 }
0x177f   :  { %v4045_v59 = vpop.xlane.xlu0 %4044 }
0x1780   :  { %7999 = vrcp.f32 %v4045_v59 }
0x1783   :  { %v4042_v57 = vpop.xlane.xlu1 %4041 }
0x1784   :  { %8001 = vrcp.f32 %v4042_v57 }
0x1786   :  { %v7996_v9 = vpop.eup %7995 }
0x1787   :  { %v7998_v36 = vpop.eup %7997  ;;  %v4051_v14 = vpop.xlane.xlu0 %4050  ;;  %v4059_v33 = vmul.f32 %v7996_v9, %v7984_v12 }
0x1788   :  { %v4058_v26 = vmul.f32 %v7998_v36, %v7986_v52  ;;  %8003 = vrcp.f32 %v4051_v14  ;;  %v7756_v54 = vpop.permute.xlu1 %7755  ;;  %v8157_v36 = vld [vmem:[%s8278_s29 + $0x8] sm:$0xff] }
0x1789   :  { %v7758_v56 = vunpack.i.h.bf16 %v7756_v54  ;;  %v7757_v48 = vunpack.i.l.bf16 %v7756_v54 }
0x178a   :  { %6833 = vmatprep.mubr.msk.f32.mxu0 %vm176_vm0, %v4058_v26  ;;  %v8000_v32 = vpop.eup %7999  ;;  %v8158_v26 = vld [vmem:[%s8278_s29] sm:$0xff] }
0x178b   :  { %v4048_v55 = vpop.xlane.xlu0 %4047  ;;  %6834 = vmatmul.mubr.msk.f32.vlgmr.msra.gmra.mrb[70].mxu0 %vm176_vm0, %v4059_v33  ;;  %v4061_v1 = vmul.f32 %v8000_v32, %v7988_v28  ;;  %v7362_v52 = vpack.c.bf16 %v7758_v56, %v7757_v48 }
0x178c   :  { %8005 = vrcp.f32 %v4048_v55  ;;  %v7761_v13 = vpop.permute.xlu1 %7760 }
0x178d   :  { %v7763_v24 = vunpack.i.h.bf16 %v7761_v13  ;;  %v7762_v44 = vunpack.i.l.bf16 %v7761_v13 }
0x178e   :  { %v8002_v0 = vpop.eup %8001 }
0x178f   :  { %v7751_v37 = vpop.permute.xlu0 %7750  ;;  %v4060_v19 = vmul.f32 %v8002_v0, %v7990_v5  ;;  %v7368_v28 = vpack.c.bf16 %v7763_v24, %v7762_v44 }
0x1790   :  { %v7753_v10 = vunpack.i.h.bf16 %v7751_v37  ;;  %v7752_v62 = vunpack.i.l.bf16 %v7751_v37  ;;  %v4196_v30 = vpop.permute.xlu1 %4195 }
0x1791   :  { %6836 = vmatprep.mubr.msk.f32.mxu0 %vm176_vm0, %v4060_v19  ;;  %v8159_v19 = vld [vmem:[%s8278_s29 + $0x10] sm:$0xff] }
0x1792   :  { %v7356_v12 = vpack.c.bf16 %v7753_v10, %v7752_v62  ;;  %6837 = vmatmul.mubr.msk.f32.gmra.mrb[72].mxu0 %vm176_vm0, %v4061_v1  ;;  %v8004_v50 = vpop.eup %8003  ;;  %v8160_v1 = vld [vmem:[%s8278_s29 + $0x18] sm:$0xff] }
0x1793   :  { %v4063_v4 = vmul.f32 %v8004_v50, %v7992_v39  ;;  %v4202_v47 = vpop.permute.xlu0 %4201 }
0x1794   :  { %7358 = vmatprep.subr.msk.bf16.mxu0 %vm8630_vm6, %v7356_v12  ;;  %v4198_v2 = vpop.permute.xlu1 %4197 }
0x1795   :  { %7361 = vmatpush3.bf16.xpose.msk.msra.mxu0 %vm8630_vm6, %v7356_v12 }
0x1796   :  { %v8006_v21 = vpop.eup %8005  ;;  %7364 = vmatprep.subr.msk.bf16.mxu0 %vm8630_vm6, %v7362_v52 }
0x1797   :  { %v4062_v22 = vmul.f32 %v8006_v21, %v7994_v38  ;;  %v4206_v58 = vpop.permute.xlu0 %4205 }
0x1798   :  { %v4200_v61 = vpop.permute.xlu1 %4199 }
0x1799   :  { %6839 = vmatprep.mubr.msk.f32.mxu0 %vm176_vm0, %v4062_v22 }
0x179a   :  { %6840 = vmatmul.mubr.msk.f32.gmra.mrb[74].mxu0 %vm176_vm0, %v4063_v4 }
0x179b   :  { %6854 = vmatprep.mubr.msk.f32.mxu0 %vm668_vm5, %v4196_v30 }
0x179c   :  { %v4204_v5 = vpop.permute.xlu1 %4203 }
0x179d   :  { %7367 = vmatpush3.bf16.xpose.msk.msra.mxu0 %vm8630_vm6, %v7362_v52 }
0x179e   :  { %7370 = vmatprep.subr.msk.bf16.mxu0 %vm8630_vm6, %v7368_v28 }
0x17a5   :  { %7373 = vmatpush3.bf16.xpose.msk.msra.mxu0 %vm8630_vm6, %v7368_v28 }
0x17ac   :  { %6855 = vmatmul.mubr.msk.f32.vlgmr.msra.gmra.mrb[76].mxu0 %vm668_vm5, %v4198_v2 }
0x17ad   :  { %6857 = vmatprep.mubr.msk.f32.mxu0 %vm668_vm5, %v4200_v61 }
0x17b0   :  { %6858 = vmatmul.mubr.msk.f32.gmra.mrb[78].mxu0 %vm668_vm5, %v4202_v47 }
0x17b1   :  { %6860 = vmatprep.mubr.msk.f32.mxu0 %vm668_vm5, %v4204_v5 }
0x17b4   :  { %6861 = vmatmul.mubr.msk.f32.gmra.mrb[80].mxu0 %vm668_vm5, %v4206_v58 }
0x185e   :  { %v9784_v39 = vpop.f32.mrb[70].mxu0 }
0x185f   :  { %v9786_v3 = vpop.f32.mrb[71].mxu0 }
0x1865   :  { %v9788_v46 = vpop.f32.mrb[72].mxu0 }
0x1866   :  { %v9790_v38 = vpop.f32.mrb[73].mxu0 }
0x186d   :  { %v9792_v23 = vpop.f32.mrb[74].mxu0 }
0x186e   :  { %v9794_v6 = vpop.f32.mrb[75].mxu0 }
0x187f   :  { %v6856_v41 = vpop.f32.mrb[76].mxu0 }
0x1880   :  { %v4339_v59 = vmul.f32 0.35355338, %v6856_v41  ;;  %v4309_v57 = vpop.f32.mrb[77].mxu0 }
0x1881   :  { %v4338_v9 = vmul.f32 0.35355338, %v4309_v57 }
0x1882   :  { %v4345_v14 = vadd.f32 %v8157_v36, %v4339_v59 }
0x1883   :  { %v4344_v33 = vadd.f32 %v8158_v26, %v4338_v9  ;;  %v6859_v55 = vpop.f32.mrb[78].mxu0 }
0x1884   :  { %v4319_v54 = vpop.f32.mrb[79].mxu0  ;;  %v4353_v32 = vsel %vm176_vm0, %v4345_v14, -inf  ;;  %v4341_v0 = vmul.f32 0.35355338, %v6859_v55 }
0x1885   :  { %v4340_v56 = vmul.f32 0.35355338, %v4319_v54  ;;  %4354 = vmax.xlane.f32.xlu0 %v4353_v32  ;;  %v4350_v37 = vsel %vm176_vm0, %v4344_v33, -inf }
0x1886   :  { %4351 = vmax.xlane.f32.xlu1 %v4350_v37  ;;  %v4347_v12 = vadd.f32 %v8160_v1, %v4341_v0 }
0x1887   :  { %v4346_v48 = vadd.f32 %v8159_v19, %v4340_v56  ;;  %v6862_v10 = vpop.f32.mrb[80].mxu0  ;;  %v8161_v56 = vld [vmem:[%s8278_s29 + $0x20] sm:$0xff]  ;;  %v8162_v19 = vld [vmem:[%s8278_s29 + $0x28] sm:$0xff]  ;;  %s10445_s29 = sld [smem:[#allocation14_spill]] }
0x1888   :  { %v4329_v62 = vpop.f32.mrb[81].mxu0  ;;  %v4359_v13 = vsel %vm176_vm0, %v4347_v12, -inf  ;;  %v4343_v0 = vmul.f32 0.35355338, %v6862_v10 }
0x1889   :  { %v4356_v52 = vsel %vm176_vm0, %v4346_v48, -inf  ;;  %v4342_v32 = vmul.f32 0.35355338, %v4329_v62 }
0x188a   :  { %4357 = vmax.xlane.f32.xlu0 %v4356_v52 }
0x188b   :  { %v4348_v37 = vadd.f32 %v8161_v56, %v4342_v32 }
0x188d   :  { %v4362_v1 = vsel %vm176_vm0, %v4348_v37, -inf  ;;  %v2847_v56 = vld [vmem:[%s10445_s29] sm:$0xff] }
0x188e   :  { %4360 = vmax.xlane.f32.xlu0 %v4359_v13 }
0x1897   :  { %7765 = vrot.lane.b32.xlu1 %v9498_v60, %s8231_s15 }
0x1912   :  { %v4355_v50 = vpop.xlane.xlu0 %4354 }
0x1913   :  { %v4369_v21 = vsub.f32 %v4345_v14, %v4355_v50  ;;  %v4352_v22 = vpop.xlane.xlu1 %4351 }
0x1914   :  { %v4368_v24 = vsub.f32 %v4344_v33, %v4352_v22 }
0x1915   :  { %v4376_v44 = vmul.f32 1.442695, %v4369_v21 }
0x1916   :  { %v4374_v4 = vmul.f32 1.442695, %v4368_v24 }
0x1917   :  { %8007 = vpow2.f32 %v4376_v44  ;;  %v7766_v30 = vpop.permute.xlu1 %7765  ;;  %v4358_v28 = vpop.xlane.xlu0 %4357 }
0x1918   :  { %8009 = vpow2.f32 %v4374_v4  ;;  %v7768_v2 = vunpack.i.h.bf16 %v7766_v30  ;;  %v7767_v61 = vunpack.i.l.bf16 %v7766_v30  ;;  %v4370_v47 = vsub.f32 %v4346_v48, %v4358_v28 }
0x1919   :  { %v4349_v48 = vadd.f32 %v8162_v19, %v4343_v0  ;;  %v2849_v19 = vld [vmem:[%s10445_s29 + $0x10] sm:$0xff] }
0x191a   :  { %v7374_v5 = vpack.c.bf16 %v7768_v2, %v7767_v61  ;;  %v4378_v58 = vmul.f32 1.442695, %v4370_v47 }
0x191b   :  { %v4361_v41 = vpop.xlane.xlu0 %4360 }
0x191c   :  { %8011 = vpow2.f32 %v4378_v58  ;;  %v4371_v59 = vsub.f32 %v4347_v12, %v4361_v41  ;;  %7375 = vmatprep.subr.bf16.mxu1 %v7374_v5  ;;  %v4365_v12 = vsel %vm176_vm0, %v4349_v48, -inf }
0x191d   :  { %7377 = vmatpush3.bf16.msra.mxu1 %v7374_v5 }
0x191e   :  { %v4380_v60 = vmul.f32 1.442695, %v4371_v59 }
0x1920   :  { %8013 = vpow2.f32 %v4380_v60 }
0x1921   :  { %v8008_v57 = vpop.eup %8007 }
0x1922   :  { %v8010_v9 = vpop.eup %8009  ;;  %v4389_v36 = vsel %vm176_vm0, %v8008_v57, 0.0 }
0x1923   :  { %4390 = vadd.xlane.f32.xlu0 %v4389_v36  ;;  %v4386_v14 = vsel %vm176_vm0, %v8010_v9, 0.0 }
0x1924   :  { %4387 = vadd.xlane.f32.xlu1 %v4386_v14 }
0x1926   :  { %v8012_v26 = vpop.eup %8011 }
0x1927   :  { %v4392_v33 = vsel %vm176_vm0, %v8012_v26, 0.0 }
0x1928   :  { %4393 = vadd.xlane.f32.xlu1 %v4392_v33 }
0x192a   :  { %v8014_v55 = vpop.eup %8013 }
0x192b   :  { %v4395_v54 = vsel %vm176_vm0, %v8014_v55, 0.0 }
0x192c   :  { %4396 = vadd.xlane.f32.xlu0 %v4395_v54 }
0x1939   :  { %7775 = vrot.lane.b32.xlu1 %v9518_v40, %s8231_s15 }
0x1942   :  { %7770 = vrot.lane.b32.xlu0 %v9508_v35, %s8231_s15 }
0x195d   :  { %4363 = vmax.xlane.f32.xlu1 %v4362_v1  ;;  %v2850_v1 = vld [vmem:[%s10445_s29 + $0x18] sm:$0xff] }
0x1961   :  { %4366 = vmax.xlane.f32.xlu0 %v4365_v12 }
0x196e   :  { %4555 = vrot.lane.b32.xlu1 %v9706_v11, %s8232_s16 }
0x1972   :  { %4577 = vrot.lane.b32.xlu1 %v9786_v3, %s8233_s18 }
0x1976   :  { %4579 = vrot.lane.b32.xlu1 %v9784_v39, %s8233_s18 }
0x1977   :  { %4553 = vrot.lane.b32.xlu0 %v9708_v8, %s8232_s16 }
0x197a   :  { %4559 = vrot.lane.b32.xlu1 %v9710_v17, %s8232_s16 }
0x197b   :  { %4557 = vrot.lane.b32.xlu0 %v9712_v15, %s8232_s16 }
0x197e   :  { %4583 = vrot.lane.b32.xlu1 %v9788_v46, %s8233_s18 }
0x197f   :  { %4581 = vrot.lane.b32.xlu0 %v9790_v38, %s8233_s18 }
0x19b0   :  { %v4391_v40 = vpop.xlane.xlu0 %4390 }
0x19b1   :  { %v4388_v35 = vpop.xlane.xlu1 %4387 }
0x19b2   :  { %8015 = vrcp.f32 %v4388_v35 }
0x19b3   :  { %8017 = vrcp.f32 %v4391_v40 }
0x19b5   :  { %v4394_v11 = vpop.xlane.xlu1 %4393 }
0x19b6   :  { %8019 = vrcp.f32 %v4394_v11 }
0x19b9   :  { %v4397_v39 = vpop.xlane.xlu0 %4396  ;;  %v7776_v3 = vpop.permute.xlu1 %7775 }
0x19ba   :  { %v7778_v62 = vunpack.i.h.bf16 %v7776_v3  ;;  %v7777_v52 = vunpack.i.l.bf16 %v7776_v3  ;;  %8021 = vrcp.f32 %v4397_v39 }
0x19bc   :  { %v8016_v8 = vpop.eup %8015  ;;  %v7382_v38 = vpack.c.bf16 %v7778_v62, %v7777_v52 }
0x19bd   :  { %v7771_v10 = vpop.permute.xlu0 %7770  ;;  %v4410_v17 = vmul.f32 %v8016_v8, %v8010_v9  ;;  %v8018_v50 = vpop.eup %8017 }
0x19be   :  { %v7773_v15 = vunpack.i.h.bf16 %v7771_v10  ;;  %v7772_v13 = vunpack.i.l.bf16 %v7771_v10  ;;  %v4411_v22 = vmul.f32 %v8018_v50, %v8008_v57 }
0x19bf   :  { %6875 = vmatprep.mubr.msk.f32.mxu1 %vm176_vm0, %v4410_v17 }
0x19c0   :  { %v7378_v46 = vpack.c.bf16 %v7773_v15, %v7772_v13  ;;  %v8020_v21 = vpop.eup %8019 }
0x19c1   :  { %v4412_v44 = vmul.f32 %v8020_v21, %v8012_v26 }
0x19c2   :  { %7379 = vmatprep.subr.bf16.mxu1 %v7378_v46 }
0x19c3   :  { %7381 = vmatpush3.bf16.msra.mxu1 %v7378_v46 }
0x19c4   :  { %7383 = vmatprep.subr.bf16.mxu1 %v7382_v38  ;;  %v8022_v24 = vpop.eup %8021 }
0x19c5   :  { %v4413_v4 = vmul.f32 %v8022_v24, %v8014_v55 }
0x19c7   :  { %7385 = vmatpush3.bf16.msra.mxu1 %v7382_v38 }
0x19ca   :  { %6876 = vmatmul.mubr.msk.f32.vlgmr.msra.gmra.mrb[42].mxu1 %vm176_vm0, %v4411_v22 }
0x19cb   :  { %6878 = vmatprep.mubr.msk.f32.mxu1 %vm176_vm0, %v4412_v44 }
0x19ce   :  { %6879 = vmatmul.mubr.msk.f32.gmra.mrb[44].mxu1 %vm176_vm0, %v4413_v4 }
0x19ea   :  { %v4364_v30 = vpop.xlane.xlu1 %4363 }
0x19eb   :  { %v4372_v28 = vsub.f32 %v4348_v37, %v4364_v30  ;;  %v2848_v37 = vld [vmem:[%s10445_s29 + $0x8] sm:$0xff] }
0x19ed   :  { %v4382_v2 = vmul.f32 1.442695, %v4372_v28 }
0x19ee   :  { %v4367_v61 = vpop.xlane.xlu0 %4366  ;;  %v4556_v47 = vpop.permute.xlu1 %4555 }
0x19ef   :  { %8023 = vpow2.f32 %v4382_v2  ;;  %v4373_v5 = vsub.f32 %v4349_v48, %v4367_v61  ;;  %v4620_v58 = vsel %vm668_vm5, %v9628_v20, %v4556_v47  ;;  %v7386_v48 = vpack.c.bf16 %v2848_v37, %v2847_v56  ;;  %v9883_v2 = vld [vmem:[%s10446_s7] ss:$0 sm:$0xff]  ;;  %v2859_v56 = vld [vmem:[%s10447_s10 + $0x28] sm:$0xff] }
0x19f1   :  { %v4384_v41 = vmul.f32 1.442695, %v4373_v5  ;;  %7388 = vmatprep.subr.msk.bf16.mxu1 %vm8477_vm4, %v7386_v48 }
0x19f2   :  { %v4554_v59 = vpop.permute.xlu0 %4553  ;;  %v4578_v60 = vpop.permute.xlu1 %4577  ;;  %7391 = vmatpush3.bf16.xpose.msk.msra.mxu1 %vm8477_vm4, %v7386_v48  ;;  %v2861_v48 = vld [vmem:[%s10447_s10 + $0x38] sm:$0xff] }
0x19f3   :  { %8025 = vpow2.f32 %v4384_v41  ;;  %v4619_v57 = vsel %vm668_vm5, %v9630_v63, %v4554_v59 }
0x19f4   :  { %v4625_v9 = vsel %vm2131_vm7, %v4619_v57, %v4578_v60 }
0x19f6   :  { %v4558_v36 = vpop.permute.xlu0 %4557  ;;  %v4580_v14 = vpop.permute.xlu1 %4579 }
0x19f7   :  { %v4621_v26 = vsel %vm668_vm5, %v9634_v25, %v4558_v36  ;;  %v4626_v20 = vsel %vm2131_vm7, %v4620_v58, %v4580_v14  ;;  %v7392_v25 = vpack.c.bf16 %v2850_v1, %v2849_v19  ;;  %v2860_v19 = vld [vmem:[%s10447_s10 + $0x30] sm:$0xff] }
0x19f8   :  { %v7416_v1 = vpack.c.bf16 %v2861_v48, %v2860_v19  ;;  %v9983_v48 = vld [vmem:[%s10449_s0] ss:$0 sm:$0xff] }
0x19f9   :  { %v8024_v33 = vpop.eup %8023  ;;  %7394 = vmatprep.subr.msk.bf16.mxu1 %vm8477_vm4, %v7392_v25 }
0x19fa   :  { %v4560_v55 = vpop.permute.xlu1 %4559  ;;  %v4398_v54 = vsel %vm176_vm0, %v8024_v33, 0.0  ;;  %7397 = vmatpush3.bf16.xpose.msk.msra.mxu1 %vm8477_vm4, %v7392_v25  ;;  %v2862_v25 = vld [vmem:[%s10447_s10 + $0x40] sm:$0xff] }
0x19fb   :  { %v4622_v32 = vsel %vm668_vm5, %v9632_v7, %v4560_v55  ;;  %4399 = vadd.xlane.f32.xlu0 %v4398_v54  ;;  %v4582_v7 = vpop.permute.xlu0 %4581  ;;  %v2856_v55 = vld [vmem:[%s10447_s10 + $0x10] sm:$0xff] }
0x19fc   :  { %v4627_v21 = vsel %vm2131_vm7, %v4621_v26, %v4582_v7  ;;  %v2863_v7 = vld [vmem:[%s10447_s10 + $0x48] sm:$0xff] }
0x19fd   :  { %v8026_v63 = vpop.eup %8025 }
0x19fe   :  { %v4401_v0 = vsel %vm176_vm0, %v8026_v63, 0.0  ;;  %v4584_v12 = vpop.permute.xlu1 %4583 }
0x19ff   :  { %4402 = vadd.xlane.f32.xlu1 %v4401_v0  ;;  %v4628_v24 = vsel %vm2131_vm7, %v4622_v32, %v4584_v12  ;;  %v2857_v32 = vld [vmem:[%s10447_s10 + $0x18] sm:$0xff]  ;;  %v2858_v0 = vld [vmem:[%s10447_s10 + $0x20] sm:$0xff]  ;;  %v7422_v12 = vpack.c.bf16 %v2863_v7, %v2862_v25 }
0x1a00   :  { %v7410_v37 = vpack.c.bf16 %v2859_v56, %v2858_v0 }
0x1a88   :  { %v4400_v35 = vpop.xlane.xlu0 %4399 }
0x1a89   :  { %8027 = vrcp.f32 %v4400_v35  ;;  %v2864_v35 = vld [vmem:[%s10447_s10 + $0x50] sm:$0xff] }
0x1a8c   :  { %v4403_v40 = vpop.xlane.xlu1 %4402 }
0x1a8d   :  { %8029 = vrcp.f32 %v4403_v40  ;;  %v2865_v40 = vld [vmem:[%s10447_s10 + $0x58] sm:$0xff] }
0x1a93   :  { %v8028_v11 = vpop.eup %8027 }
0x1a94   :  { %v4414_v39 = vmul.f32 %v8028_v11, %v8024_v33  ;;  %v2855_v33 = vld [vmem:[%s10447_s10 + $0x8] sm:$0xff]  ;;  %v7428_v11 = vpack.c.bf16 %v2865_v40, %v2864_v35 }
0x1a96   :  { %6881 = vmatprep.mubr.msk.f32.mxu1 %vm176_vm0, %v4414_v39 }
0x1a97   :  { %v8030_v3 = vpop.eup %8029 }
0x1a98   :  { %v4415_v8 = vmul.f32 %v8030_v3, %v8026_v63  ;;  %v7404_v63 = vpack.c.bf16 %v2857_v32, %v2856_v55  ;;  %v9978_v32 = vld [vmem:[%s10448_s11] ss:$0 sm:$0xff] }
0x1a9a   :  { %6882 = vmatmul.mubr.msk.f32.gmra.mrb[46].mxu1 %vm176_vm0, %v4415_v8 }
0x1a9d   :  { %v6877_v10 = vpop.f32.mrb[42].mxu1 }
0x1a9e   :  { %v4518_v17 = vpop.f32.mrb[43].mxu1  ;;  %4603 = vrot.lane.b32.xlu1 %v6877_v10, %s8234_s24 }
0x1a9f   :  { %4601 = vrot.lane.b32.xlu0 %v4518_v17, %s8234_s24 }
0x1aa1   :  { %v6880_v62 = vpop.f32.mrb[44].mxu1 }
0x1aa2   :  { %v4528_v52 = vpop.f32.mrb[45].mxu1  ;;  %4607 = vrot.lane.b32.xlu1 %v6880_v62, %s8234_s24 }
0x1aa3   :  { %4605 = vrot.lane.b32.xlu0 %v4528_v52, %s8234_s24 }
0x1b10   :  { %v4604_v15 = vpop.permute.xlu1 %4603 }
0x1b11   :  { %v4602_v13 = vpop.permute.xlu0 %4601  ;;  %v4632_v38 = vsel %vm2138_vm8, %v4626_v20, %v4604_v15 }
0x1b12   :  { %v4631_v46 = vsel %vm2138_vm8, %v4625_v9, %v4602_v13 }
0x1b13   :  { %6892 = vmatprep.mubr.msk.f32.mxu1 %vm379_vm3, %v4631_v46 }
0x1b14   :  { %6893 = vmatmul.mubr.msk.f32.vlgmr.msra.gmra.mrb[48].mxu1 %vm379_vm3, %v4632_v38  ;;  %v4608_v50 = vpop.permute.xlu1 %4607 }
0x1b15   :  { %v4606_v22 = vpop.permute.xlu0 %4605  ;;  %v4634_v4 = vsel %vm2138_vm8, %v4628_v24, %v4608_v50 }
0x1b16   :  { %v4633_v44 = vsel %vm2138_vm8, %v4627_v21, %v4606_v22 }
0x1b17   :  { %6895 = vmatprep.mubr.msk.f32.mxu1 %vm379_vm3, %v4633_v44 }
0x1b18   :  { %6896 = vmatmul.mubr.msk.f32.gmra.mrb[50].mxu1 %vm379_vm3, %v4634_v4 }
0x1b6d   :  { %v9878_v30 = vpop.f32.mrb[46].mxu1 }
0x1b6e   :  { %v9880_v28 = vpop.f32.mrb[47].mxu1 }
0x1be7   :  { %v6894_v61 = vpop.f32.mrb[48].mxu1 }
0x1be8   :  { %v4763_v47 = vadd.f32 %v6894_v61, %v9363_v34  ;;  %v4733_v5 = vpop.f32.mrb[49].mxu1 }
0x1be9   :  { %v4762_v58 = vadd.f32 %v4733_v5, %v9365_v16 }
0x1bea   :  { %v4775_v41 = vadd.f32 %v9883_v2, %v4763_v47 }
0x1beb   :  { %v9889_v59 = vadd.f32 %v9883_v2, %v4762_v58  ;;  %v6897_v60 = vpop.f32.mrb[50].mxu1  ;;  %v2866_v58 = vld [vmem:[%s10447_s10 + $0x60] sm:$0xff] }
0x1bec   :  { %v4743_v57 = vpop.f32.mrb[51].mxu1  ;;  %v4783_v9 = vsel %vm379_vm3, %v4775_v41, 0.0  ;;  %v4765_v36 = vadd.f32 %v6897_v60, %v9373_v42 }
0x1bed   :  { %v4764_v34 = vadd.f32 %v4743_v57, %v9375_v29  ;;  %4784 = vadd.xlane.f32.xlu1 %v4783_v9  ;;  %v4780_v16 = vsel %vm379_vm3, %v9889_v59, 0.0  ;;  %v2854_v29 = vld [vmem:[%s10447_s10] sm:$0xff]  ;;  %v2868_v57 = vld [vmem:[%s10447_s10 + $0x70] sm:$0xff]  ;;  %v2869_v9 = vld [vmem:[%s10447_s10 + $0x78] sm:$0xff] }
0x1bee   :  { %4781 = vadd.xlane.f32.xlu0 %v4780_v16  ;;  %v9898_v26 = vadd.f32 %v9883_v2, %v4765_v36  ;;  %v7398_v54 = vpack.c.bf16 %v2855_v33, %v2854_v29  ;;  %v7440_v36 = vpack.c.bf16 %v2869_v9, %v2868_v57 }
0x1bef   :  { %v4776_v14 = vadd.f32 %v9883_v2, %v4764_v34 }
0x1bf0   :  { %v4789_v42 = vsel %vm379_vm3, %v9898_v26, 0.0  ;;  %7400 = vmatprep.subr.msk.bf16.mxu0 %vm8477_vm4, %v7398_v54 }
0x1bf1   :  { %v4786_v20 = vsel %vm379_vm3, %v4776_v14, 0.0  ;;  %7403 = vmatpush3.bf16.xpose.msk.msra.mxu0 %vm8477_vm4, %v7398_v54 }
0x1bf2   :  { %4787 = vadd.xlane.f32.xlu0 %v4786_v20  ;;  %7406 = vmatprep.subr.msk.bf16.mxu0 %vm8477_vm4, %v7404_v63 }
0x1bf6   :  { %4790 = vadd.xlane.f32.xlu0 %v4789_v42 }
0x1bf9   :  { %7409 = vmatpush3.bf16.xpose.msk.msra.mxu0 %vm8477_vm4, %v7404_v63 }
0x1bfa   :  { %7412 = vmatprep.subr.msk.bf16.mxu0 %vm8477_vm4, %v7410_v37 }
0x1c01   :  { %7415 = vmatpush3.bf16.xpose.msk.msra.mxu0 %vm8477_vm4, %v7410_v37 }
0x1c02   :  { %7418 = vmatprep.subr.msk.bf16.mxu0 %vm8477_vm4, %v7416_v1 }
0x1c09   :  { %7421 = vmatpush3.bf16.xpose.msk.msra.mxu0 %vm8477_vm4, %v7416_v1 }
0x1c0a   :  { %7424 = vmatprep.subr.msk.bf16.mxu0 %vm8477_vm4, %v7422_v12 }
0x1c11   :  { %7427 = vmatpush3.bf16.xpose.msk.msra.mxu0 %vm8477_vm4, %v7422_v12 }
0x1c12   :  { %7430 = vmatprep.subr.msk.bf16.mxu0 %vm8477_vm4, %v7428_v11 }
0x1c19   :  { %7433 = vmatpush3.bf16.xpose.msk.msra.mxu0 %vm8477_vm4, %v7428_v11 }
0x1c7a   :  { %v4785_v39 = vpop.xlane.xlu1 %4784 }
0x1c7b   :  { %v4799_v3 = vmul.f32 0.03125, %v4785_v39  ;;  %v4782_v8 = vpop.xlane.xlu0 %4781 }
0x1c7c   :  { %v4798_v10 = vmul.f32 0.03125, %v4782_v8 }
0x1c7d   :  { %v4805_v17 = vsub.f32 %v4775_v41, %v4799_v3  ;;  %v2867_v41 = vld [vmem:[%s10447_s10 + $0x68] sm:$0xff] }
0x1c7e   :  { %v4804_v62 = vsub.f32 %v9889_v59, %v4798_v10  ;;  %v7434_v60 = vpack.c.bf16 %v2867_v41, %v2866_v58 }
0x1c7f   :  { %v4788_v52 = vpop.xlane.xlu0 %4787  ;;  %v4811_v15 = vmul.f32 %v4805_v17, %v4805_v17 }
0x1c80   :  { %v4800_v13 = vmul.f32 0.03125, %v4788_v52  ;;  %v4810_v46 = vmul.f32 %v4804_v62, %v4804_v62  ;;  %7436 = vmatprep.subr.msk.bf16.mxu0 %vm8477_vm4, %v7434_v60 }
0x1c81   :  { %v4819_v38 = vsel %vm379_vm3, %v4811_v15, 0.0  ;;  %7439 = vmatpush3.bf16.xpose.msk.msra.mxu0 %vm8477_vm4, %v7434_v60 }
0x1c82   :  { %v9941_v50 = vsub.f32 %v4776_v14, %v4800_v13  ;;  %4820 = vadd.xlane.f32.xlu1 %v4819_v38  ;;  %v4816_v21 = vsel %vm379_vm3, %v4810_v46, 0.0  ;;  %7442 = vmatprep.subr.msk.bf16.mxu0 %vm8477_vm4, %v7440_v36 }
0x1c83   :  { %4817 = vadd.xlane.f32.xlu0 %v4816_v21  ;;  %v4791_v22 = vpop.xlane.xlu0 %4790  ;;  %v2872_v21 = vld [vmem:[%s10450_s5 + $0x8] sm:$0xff] }
0x1c84   :  { %v4801_v24 = vmul.f32 0.03125, %v4791_v22  ;;  %v4812_v44 = vmul.f32 %v9941_v50, %v9941_v50 }
0x1c86   :  { %v9947_v4 = vsub.f32 %v9898_v26, %v4801_v24  ;;  %v4822_v61 = vsel %vm379_vm3, %v4812_v44, 0.0  ;;  %v2873_v24 = vld [vmem:[%s10450_s5 + $0x10] sm:$0xff]  ;;  %v2874_v44 = vld [vmem:[%s10450_s5 + $0x18] sm:$0xff] }
0x1c87   :  { %4823 = vadd.xlane.f32.xlu0 %v4822_v61  ;;  %v10012_v61 = vld [vmem:[%s10451_s9] ss:$0 sm:$0xff] }
0x1c88   :  { %v4813_v47 = vmul.f32 %v9947_v4, %v9947_v4 }
0x1c89   :  { %7445 = vmatpush3.bf16.xpose.msk.msra.mxu0 %vm8477_vm4, %v7440_v36 }
0x1c8a   :  { %v4825_v5 = vsel %vm379_vm3, %v4813_v47, 0.0 }
0x1c8b   :  { %4826 = vadd.xlane.f32.xlu1 %v4825_v5 }
0x1c9c   :  { %4563 = vrot.lane.b32.xlu1 %v9714_v27, %s8232_s16 }
0x1c9d   :  { %4561 = vrot.lane.b32.xlu0 %v9716_v18, %s8232_s16 }
0x1ca0   :  { %4585 = vrot.lane.b32.xlu1 %v9794_v6, %s8233_s18 }
0x1ca1   :  { %4609 = vrot.lane.b32.xlu0 %v9880_v28, %s8234_s24 }
0x1ca4   :  { %4587 = vrot.lane.b32.xlu1 %v9792_v23, %s8233_s18 }
0x1ca8   :  { %4611 = vrot.lane.b32.xlu1 %v9878_v30, %s8234_s24 }
0x1d0f   :  { %v4821_v27 = vpop.xlane.xlu1 %4820 }
0x1d10   :  { %v4835_v18 = vmul.f32 0.03125, %v4821_v27  ;;  %v4818_v6 = vpop.xlane.xlu0 %4817 }
0x1d11   :  { %v4834_v34 = vmul.f32 0.03125, %v4818_v6 }
0x1d12   :  { %v4841_v16 = vadd.f32 1e-06, %v4835_v18 }
0x1d13   :  { %v4840_v28 = vadd.f32 1e-06, %v4834_v34 }
0x1d14   :  { %8031 = vrsqrt.f32 %v4841_v16  ;;  %v4824_v14 = vpop.xlane.xlu0 %4823 }
0x1d15   :  { %8033 = vrsqrt.f32 %v4840_v28  ;;  %v4836_v20 = vmul.f32 0.03125, %v4824_v14 }
0x1d17   :  { %v4842_v42 = vadd.f32 1e-06, %v4836_v20 }
0x1d18   :  { %v4827_v23 = vpop.xlane.xlu1 %4826  ;;  %v4562_v33 = vpop.permute.xlu0 %4561 }
0x1d19   :  { %8035 = vrsqrt.f32 %v4842_v42  ;;  %v4837_v29 = vmul.f32 0.03125, %v4827_v23  ;;  %v4623_v56 = vsel %vm668_vm5, %v9638_v49, %v4562_v33 }
0x1d1b   :  { %v4843_v55 = vadd.f32 1e-06, %v4837_v29 }
0x1d1c   :  { %v4564_v54 = vpop.permute.xlu1 %4563  ;;  %v4610_v25 = vpop.permute.xlu0 %4609 }
0x1d1d   :  { %8037 = vrsqrt.f32 %v4843_v55 }
0x1d1e   :  { %v8032_v30 = vpop.eup %8031 }
0x1d1f   :  { %v8034_v63 = vpop.eup %8033  ;;  %v4853_v0 = vmul.f32 %v8032_v30, %v4805_v17  ;;  %v4624_v17 = vsel %vm668_vm5, %v9636_v45, %v4564_v54 }
0x1d20   :  { %v4586_v37 = vpop.permute.xlu1 %4585  ;;  %v4852_v19 = vmul.f32 %v8034_v63, %v4804_v62 }
0x1d21   :  { %v4865_v1 = vmul.f32 %v9978_v32, %v4853_v0  ;;  %v4629_v7 = vsel %vm2131_vm7, %v4623_v56, %v4586_v37 }
0x1d22   :  { %v4635_v12 = vsel %vm2138_vm8, %v4629_v7, %v4610_v25  ;;  %v4864_v35 = vmul.f32 %v9978_v32, %v4852_v19 }
0x1d23   :  { %v8036_v40 = vpop.eup %8035  ;;  %6898 = vmatprep.mubr.msk.f32.mxu1 %vm379_vm3, %v4635_v12  ;;  %v4877_v3 = vadd.f32 %v9983_v48, %v4865_v1 }
0x1d24   :  { %v4588_v11 = vpop.permute.xlu1 %4587  ;;  %v4876_v39 = vadd.f32 %v9983_v48, %v4864_v35  ;;  %v4854_v49 = vmul.f32 %v8036_v40, %v9941_v50  ;;  %v2871_v50 = vld [vmem:[%s10450_s5] sm:$0xff] }
0x1d25   :  { %v4630_v62 = vsel %vm2131_vm7, %v4624_v17, %v4588_v11  ;;  %v7446_v22 = vpack.c.bf16 %v2872_v21, %v2871_v50 }
0x1d26   :  { %6933 = vmatprep.mubr.msk.f32.mxu0 %vm379_vm3, %v4876_v39  ;;  %v4866_v8 = vmul.f32 %v9978_v32, %v4854_v49 }
0x1d27   :  { %v8038_v10 = vpop.eup %8037  ;;  %6934 = vmatmul.mubr.msk.f32.vlgmr.msra.gmra.mrb[82].mxu0 %vm379_vm3, %v4877_v3  ;;  %7447 = vmatprep.subr.bf16.mxu1 %v7446_v22 }
0x1d28   :  { %v4612_v52 = vpop.permute.xlu1 %4611  ;;  %v4878_v15 = vadd.f32 %v9983_v48, %v4866_v8  ;;  %v4855_v13 = vmul.f32 %v8038_v10, %v9947_v4  ;;  %7449 = vmatpush3.bf16.xpose.msra.mxu1 %v7446_v22  ;;  %v7450_v4 = vpack.c.bf16 %v2874_v44, %v2873_v24 }
0x1d29   :  { %v4636_v46 = vsel %vm2138_vm8, %v4630_v62, %v4612_v52 }
0x1d2a   :  { %6899 = vmatmul.mubr.msk.f32.gmra.mrb[52].mxu1 %vm379_vm3, %v4636_v46  ;;  %6936 = vmatprep.mubr.msk.f32.mxu0 %vm379_vm3, %v4878_v15  ;;  %v4867_v45 = vmul.f32 %v9978_v32, %v4855_v13 }
0x1d2b   :  { %7451 = vmatprep.subr.bf16.mxu1 %v7450_v4 }
0x1d2c   :  { %v4879_v38 = vadd.f32 %v9983_v48, %v4867_v45 }
0x1d2e   :  { %6937 = vmatmul.mubr.msk.f32.gmra.mrb[84].mxu0 %vm379_vm3, %v4879_v38 }
0x1d30   :  { %7453 = vmatpush3.bf16.xpose.msra.mxu1 %v7450_v4 }
0x1dfa   :  { %v6935_v47 = vpop.f32.mrb[82].mxu0 }
0x1dfb   :  { %v10015_v5 = vadd.f32 %v6935_v47, %v10012_v61  ;;  %v5020_v58 = vpop.f32.mrb[83].mxu0 }
0x1dfc   :  { %v10018_v41 = vadd.f32 %v10012_v61, %v5020_v58 }
0x1dfd   :  { %v10021_v60 = vmul.f32 0.70710677, %v10015_v5  ;;  %v6900_v57 = vpop.f32.mrb[52].mxu1 }
0x1dfe   :  { %v10024_v9 = vmul.f32 0.70710677, %v10018_v41  ;;  %v4767_v36 = vadd.f32 %v6900_v57, %v9383_v51  ;;  %v4753_v27 = vpop.f32.mrb[53].mxu1 }
0x1dff   :  { %v5074_v18 = vand.u32 2147483647, %v10021_v60  ;;  %v4766_v6 = vadd.f32 %v4753_v27, %v9385_v31  ;;  %vm5062_vm15 = vcmp.lt.f32.partialorder %v10021_v60, 0.0 }
0x1e00   :  { %v5073_v34 = vand.u32 2147483647, %v10024_v9  ;;  %v10031_v16 = vadd.f32 %v9883_v2, %v4767_v36  ;;  %vm5061_vm0 = vcmp.lt.f32.partialorder %v10024_v9, 0.0  ;;  %v5049_v9 = vmul.f32 0.5, %v10018_v41 }
0x1e01   :  { %v5080_v28 = vmul.f32 0.3275911, %v5074_v18  ;;  %v10034_v14 = vadd.f32 %v9883_v2, %v4766_v6  ;;  %v6938_v20 = vpop.f32.mrb[84].mxu0  ;;  %v5158_v1 = vsub.f32 0.0, %v5074_v18 }
0x1e02   :  { %v5079_v42 = vmul.f32 0.3275911, %v5073_v34  ;;  %v10037_v23 = vadd.f32 %v6938_v20, %v10012_v61  ;;  %v5030_v51 = vpop.f32.mrb[85].mxu0  ;;  %v4795_v29 = vsel %vm379_vm3, %v10031_v16, 0.0  ;;  %v5157_v7 = vsub.f32 0.0, %v5073_v34 }
0x1e03   :  { %v5086_v33 = vadd.f32 1.0, %v5080_v28  ;;  %v10042_v31 = vadd.f32 %v10012_v61, %v5030_v51  ;;  %4796 = vadd.xlane.f32.xlu1 %v4795_v29  ;;  %v4792_v55 = vsel %vm379_vm3, %v10034_v14, 0.0  ;;  %v5164_v35 = vmul.f32 %v5158_v1, %v5074_v18 }
0x1e04   :  { %v5085_v54 = vadd.f32 1.0, %v5079_v42  ;;  %v10047_v2 = vmul.f32 0.70710677, %v10037_v23  ;;  %4793 = vadd.xlane.f32.xlu0 %v4792_v55  ;;  %v5163_v39 = vmul.f32 %v5157_v7, %v5073_v34 }
0x1e05   :  { %8039 = vrcp.f32 %v5086_v33  ;;  %v10050_v30 = vmul.f32 0.70710677, %v10042_v31  ;;  %v5171_v10 = vmul.f32 1.442695, %v5164_v35 }
0x1e06   :  { %8041 = vrcp.f32 %v5085_v54  ;;  %v5076_v63 = vand.u32 2147483647, %v10047_v2  ;;  %v5169_v15 = vmul.f32 1.442695, %v5163_v39  ;;  %vm5064_vm1 = vcmp.lt.f32.partialorder %v10047_v2, 0.0 }
0x1e07   :  { %v5075_v0 = vand.u32 2147483647, %v10050_v30  ;;  %vm5063_vm5 = vcmp.lt.f32.partialorder %v10050_v30, 0.0 }
0x1e08   :  { %v5082_v56 = vmul.f32 0.3275911, %v5076_v63  ;;  %v5160_v8 = vsub.f32 0.0, %v5076_v63 }
0x1e09   :  { %v5081_v37 = vmul.f32 0.3275911, %v5075_v0  ;;  %v5159_v17 = vsub.f32 0.0, %v5075_v0 }
0x1e0a   :  { %v5088_v19 = vadd.f32 1.0, %v5082_v56  ;;  %v5166_v38 = vmul.f32 %v5160_v8, %v5076_v63 }
0x1e0b   :  { %v5087_v25 = vadd.f32 1.0, %v5081_v37  ;;  %v5165_v21 = vmul.f32 %v5159_v17, %v5075_v0  ;;  %v5067_v17 = vsel %vm5061_vm0, -1.0, %v8235_v43 }
0x1e0c   :  { %8043 = vrcp.f32 %v5088_v19  ;;  %v5175_v36 = vmul.f32 1.442695, %v5166_v38 }
0x1e0d   :  { %8045 = vrcp.f32 %v5087_v25  ;;  %v5173_v18 = vmul.f32 1.442695, %v5165_v21 }
0x1e0e   :  { %8047 = vpow2.f32 %v5171_v10 }
0x1e0f   :  { %v8040_v12 = vpop.eup %8039  ;;  %8049 = vpow2.f32 %v5169_v15 }
0x1e10   :  { %v8042_v40 = vpop.eup %8041  ;;  %v5104_v11 = vmul.f32 1.0614054, %v8040_v12  ;;  %8051 = vpow2.f32 %v5175_v36  ;;  %v5051_v36 = vmul.f32 0.5, %v10042_v31 }
0x1e11   :  { %v5103_v49 = vmul.f32 1.0614054, %v8042_v40  ;;  %8053 = vpow2.f32 %v5173_v18 }
0x1e12   :  { %v5110_v3 = vadd.f32 -1.4531521, %v5104_v11 }
0x1e13   :  { %v5109_v62 = vadd.f32 -1.4531521, %v5103_v49 }
0x1e14   :  { %v5116_v52 = vmul.f32 %v8040_v12, %v5110_v3  ;;  %v5068_v3 = vsel %vm5062_vm15, -1.0, %v8235_v43 }
0x1e15   :  { %v5115_v13 = vmul.f32 %v8042_v40, %v5109_v62 }
0x1e16   :  { %v8044_v46 = vpop.eup %8043  ;;  %v5122_v45 = vadd.f32 1.4214138, %v5116_v52 }
0x1e17   :  { %v8046_v50 = vpop.eup %8045  ;;  %v5121_v22 = vadd.f32 1.4214138, %v5115_v13  ;;  %v5106_v24 = vmul.f32 1.0614054, %v8044_v46 }
0x1e18   :  { %v5128_v44 = vmul.f32 %v8040_v12, %v5122_v45  ;;  %v5105_v4 = vmul.f32 1.0614054, %v8046_v50  ;;  %v8048_v56 = vpop.eup %8047 }
0x1e19   :  { %v5127_v47 = vmul.f32 %v8042_v40, %v5121_v22  ;;  %v5112_v58 = vadd.f32 -1.4531521, %v5106_v24  ;;  %v8050_v1 = vpop.eup %8049  ;;  %v5050_v22 = vmul.f32 0.5, %v10015_v5  ;;  %v5052_v5 = vmul.f32 0.5, %v10037_v23 }
0x1e1a   :  { %v5134_v57 = vadd.f32 -0.28449672, %v5128_v44  ;;  %v5111_v27 = vadd.f32 -1.4531521, %v5105_v4  ;;  %v8052_v15 = vpop.eup %8051 }
0x1e1b   :  { %v5133_v6 = vadd.f32 -0.28449672, %v5127_v47  ;;  %v5118_v34 = vmul.f32 %v8044_v46, %v5112_v58  ;;  %v8054_v45 = vpop.eup %8053 }
0x1e1c   :  { %v5140_v28 = vmul.f32 %v8040_v12, %v5134_v57  ;;  %v5117_v20 = vmul.f32 %v8046_v50, %v5111_v27 }
0x1e1d   :  { %v5139_v42 = vmul.f32 %v8042_v40, %v5133_v6  ;;  %v5124_v51 = vadd.f32 1.4214138, %v5118_v34 }
0x1e1e   :  { %v5146_v29 = vadd.f32 0.2548296, %v5140_v28  ;;  %v5123_v33 = vadd.f32 1.4214138, %v5117_v20 }
0x1e1f   :  { %v5145_v55 = vadd.f32 0.2548296, %v5139_v42  ;;  %v5130_v54 = vmul.f32 %v8044_v46, %v5124_v51 }
0x1e20   :  { %v5152_v63 = vmul.f32 %v8040_v12, %v5146_v29  ;;  %v5129_v0 = vmul.f32 %v8046_v50, %v5123_v33 }
0x1e21   :  { %v5151_v37 = vmul.f32 %v8042_v40, %v5145_v55  ;;  %v5136_v19 = vadd.f32 -0.28449672, %v5130_v54  ;;  %v6036_v54 = vld [vmem:[%s10452_s13] ss:$0 sm:$0xff] }
0x1e22   :  { %v5182_v25 = vmul.f32 %v8048_v56, %v5152_v63  ;;  %v5135_v7 = vadd.f32 -0.28449672, %v5129_v0 }
0x1e23   :  { %v5181_v35 = vmul.f32 %v8050_v1, %v5151_v37  ;;  %v5142_v11 = vmul.f32 %v8044_v46, %v5136_v19 }
0x1e24   :  { %v5188_v39 = vsub.f32 1.0, %v5182_v25  ;;  %v5141_v49 = vmul.f32 %v8046_v50, %v5135_v7 }
0x1e25   :  { %v5187_v8 = vsub.f32 1.0, %v5181_v35  ;;  %v5148_v10 = vadd.f32 0.2548296, %v5142_v11 }
0x1e26   :  { %v5194_v12 = vmul.f32 %v5188_v39, %v5068_v3  ;;  %v5147_v40 = vadd.f32 0.2548296, %v5141_v49 }
0x1e27   :  { %v5193_v62 = vmul.f32 %v5187_v8, %v5067_v17  ;;  %v5154_v52 = vmul.f32 %v8044_v46, %v5148_v10  ;;  %v5070_v46 = vsel %vm5064_vm1, -1.0, %v8235_v43 }
0x1e28   :  { %v5200_v60 = vadd.f32 1.0, %v5194_v12  ;;  %v5153_v13 = vmul.f32 %v8046_v50, %v5147_v40  ;;  %v5069_v50 = vsel %vm5063_vm5, -1.0, %v8235_v43  ;;  %vm5359_vm5 = vcmask 254976  }
0x1e29   :  { %v5199_v38 = vadd.f32 1.0, %v5193_v62  ;;  %v5184_v21 = vmul.f32 %v8052_v15, %v5154_v52 }
0x1e2a   :  { %v5183_v24 = vmul.f32 %v8054_v45, %v5153_v13  ;;  %v5206_v47 = vmul.f32 %v5200_v60, %v5050_v22  ;;  %v10082_v60 = vld [vmem:[%s8413_s4 + $0x8] sm:$0xff]  ;;  %v10095_v22 = vld [vmem:[%s8413_s4] sm:$0xff] }
0x1e2b   :  { %v5205_v44 = vmul.f32 %v5199_v38, %v5049_v9  ;;  %v5190_v4 = vsub.f32 1.0, %v5184_v21  ;;  %v5372_v9 = vmul.f32 %v10082_v60, %v10082_v60 }
0x1e2c   :  { %v5189_v58 = vsub.f32 1.0, %v5183_v24 }
0x1e2d   :  { %6950 = vmatprep.mubr.f32.mxu1 %v5205_v44  ;;  %v5196_v57 = vmul.f32 %v5190_v4, %v5070_v46  ;;  %v5390_v44 = vsel %vm379_vm3, %v5372_v9, 0.0 }
0x1e2e   :  { %6951 = vmatmul.mubr.f32.vlgmr.msra.gmra.mrb[54].mxu1 %v5206_v47  ;;  %v5195_v41 = vmul.f32 %v5189_v58, %v5069_v50  ;;  %v10103_v47 = vld [vmem:[%s8413_s4 + $0x28] sm:$0xff]  ;;  %v5371_v58 = vmul.f32 %v10095_v22, %v10095_v22  ;;  %v10110_v50 = vld [vmem:[%s8413_s4 + $0x10] sm:$0xff] }
0x1e2f   :  { %v5202_v2 = vadd.f32 1.0, %v5196_v57 }
0x1e30   :  { %v5201_v27 = vadd.f32 1.0, %v5195_v41 }
0x1e31   :  { %v5208_v18 = vmul.f32 %v5202_v2, %v5052_v5  ;;  %v5376_v2 = vmul.f32 %v10103_v47, %v10103_v47  ;;  %v5373_v5 = vmul.f32 %v10110_v50, %v10110_v50 }
0x1e32   :  { %v5207_v30 = vmul.f32 %v5201_v27, %v5051_v36  ;;  %v10117_v36 = vld [vmem:[%s8413_s4 + $0x38] sm:$0xff]  ;;  %v5387_v27 = vsel %vm379_vm3, %v5371_v58, 0.0 }
0x1e34   :  { %6953 = vmatprep.mubr.f32.mxu1 %v5207_v30  ;;  %v10123_v30 = vld [vmem:[%s8413_s4 + $0x20] sm:$0xff] }
0x1e35   :  { %6954 = vmatmul.mubr.f32.gmra.mrb[56].mxu1 %v5208_v18  ;;  %v5402_v18 = vsel %vm379_vm3, %v5376_v2, 0.0 }
0x1e90   :  { %v4797_v6 = vpop.xlane.xlu1 %4796 }
0x1e91   :  { %v4803_v34 = vmul.f32 0.03125, %v4797_v6  ;;  %v4794_v28 = vpop.xlane.xlu0 %4793  ;;  %v5378_v6 = vmul.f32 %v10117_v36, %v10117_v36 }
0x1e92   :  { %v4802_v20 = vmul.f32 0.03125, %v4794_v28  ;;  %v5393_v28 = vsel %vm379_vm3, %v5373_v5, 0.0 }
0x1e93   :  { %v4809_v42 = vsub.f32 %v10031_v16, %v4803_v34  ;;  %v10129_v34 = vld [vmem:[%s8413_s4 + $0x48] sm:$0xff] }
0x1e94   :  { %v4808_v51 = vsub.f32 %v10034_v14, %v4802_v20  ;;  %v5375_v20 = vmul.f32 %v10123_v30, %v10123_v30 }
0x1e95   :  { %v4815_v31 = vmul.f32 %v4809_v42, %v4809_v42 }
0x1e96   :  { %v4814_v29 = vmul.f32 %v4808_v51, %v4808_v51 }
0x1e97   :  { %v4831_v23 = vsel %vm379_vm3, %v4815_v31, 0.0  ;;  %v5399_v31 = vsel %vm379_vm3, %v5375_v20, 0.0 }
0x1e98   :  { %v4828_v33 = vsel %vm379_vm3, %v4814_v29, 0.0  ;;  %v5380_v29 = vmul.f32 %v10129_v34, %v10129_v34 }
0x1e99   :  { %4829 = vadd.xlane.f32.xlu0 %v4828_v33  ;;  %v10141_v33 = vld [vmem:[%s8413_s4 + $0x58] sm:$0xff] }
0x1e9d   :  { %4832 = vadd.xlane.f32.xlu0 %v4831_v23 }
0x1f01   :  { %v6952_v55 = vpop.f32.mrb[54].mxu1 }
0x1f02   :  { %v5277_v63 = vpop.f32.mrb[55].mxu1  ;;  %v10147_v55 = vld [vmem:[%s8413_s4 + $0x40] sm:$0xff] }
0x1f03   :  { %v5302_v0 = vadd.f32 %v5277_v63, %v9889_v59  ;;  %v5382_v63 = vmul.f32 %v10141_v33, %v10141_v33 }
0x1f05   :  { %v5310_v56 = vadd.f32 %v6036_v54, %v5302_v0  ;;  %v10153_v0 = vld [vmem:[%s8413_s4 + $0x68] sm:$0xff] }
0x1f07   :  { %v5312_v37 = vsel %vm379_vm3, %v5310_v56, 0.0 }
0x1f08   :  { %5313 = vadd.xlane.f32.xlu1 %v5312_v37  ;;  %v6955_v16 = vpop.f32.mrb[56].mxu1  ;;  %v5379_v37 = vmul.f32 %v10147_v55, %v10147_v55 }
0x1f09   :  { %v5303_v14 = vadd.f32 %v6955_v16, %v9898_v26  ;;  %v5286_v19 = vpop.f32.mrb[57].mxu1  ;;  %v10159_v16 = vld [vmem:[%s8413_s4 + $0x50] sm:$0xff] }
0x1f0a   :  { %v5384_v19 = vmul.f32 %v10153_v0, %v10153_v0 }
0x1f0b   :  { %v5311_v1 = vadd.f32 %v6036_v54, %v5303_v14  ;;  %v5414_v54 = vsel %vm379_vm3, %v5380_v29, 0.0  ;;  %v5420_v14 = vsel %vm379_vm3, %v5382_v63, 0.0 }
0x1f0d   :  { %v5315_v25 = vsel %vm379_vm3, %v5311_v1, 0.0 }
0x1f0e   :  { %5316 = vadd.xlane.f32.xlu0 %v5315_v25  ;;  %v5381_v25 = vmul.f32 %v10159_v16, %v10159_v16 }
0x1f26   :  { %v4830_v7 = vpop.xlane.xlu0 %4829 }
0x1f27   :  { %v4838_v35 = vmul.f32 0.03125, %v4830_v7  ;;  %v10168_v7 = vld [vmem:[%s8413_s4 + $0x60] sm:$0xff] }
0x1f29   :  { %v4844_v11 = vadd.f32 1e-06, %v4838_v35  ;;  %v5426_v35 = vsel %vm379_vm3, %v5384_v19, 0.0 }
0x1f2a   :  { %v4833_v39 = vpop.xlane.xlu0 %4832 }
0x1f2b   :  { %8055 = vrsqrt.f32 %v4844_v11  ;;  %v4839_v49 = vmul.f32 0.03125, %v4833_v39  ;;  %v10172_v11 = vld [vmem:[%s8413_s4 + $0x78] sm:$0xff] }
0x1f2c   :  { %v5386_v39 = vmul.f32 %v10172_v11, %v10172_v11 }
0x1f2d   :  { %v4845_v59 = vadd.f32 1e-06, %v4839_v49  ;;  %v5417_v49 = vsel %vm379_vm3, %v5381_v25, 0.0 }
0x1f2f   :  { %8057 = vrsqrt.f32 %v4845_v59  ;;  %v5383_v59 = vmul.f32 %v10168_v7, %v10168_v7 }
0x1f35   :  { %v8056_v3 = vpop.eup %8055 }
0x1f36   :  { %v4856_v8 = vmul.f32 %v8056_v3, %v4808_v51  ;;  %v5408_v51 = vsel %vm379_vm3, %v5378_v6, 0.0  ;;  %v10180_v3 = vld [vmem:[%s8413_s4 + $0x70] sm:$0xff] }
0x1f38   :  { %v4868_v10 = vmul.f32 %v9978_v32, %v4856_v8  ;;  %v5432_v8 = vsel %vm379_vm3, %v5386_v39, 0.0 }
0x1f39   :  { %v8058_v26 = vpop.eup %8057 }
0x1f3a   :  { %v4880_v12 = vadd.f32 %v9983_v48, %v4868_v10  ;;  %v4857_v17 = vmul.f32 %v8058_v26, %v4809_v42  ;;  %v10135_v42 = vld [vmem:[%s8413_s4 + $0x30] sm:$0xff]  ;;  %v5423_v10 = vsel %vm379_vm3, %v5383_v59, 0.0  ;;  %v5385_v26 = vmul.f32 %v10180_v3, %v10180_v3 }
0x1f3b   :  { %v5377_v23 = vmul.f32 %v10135_v42, %v10135_v42 }
0x1f3c   :  { %6939 = vmatprep.mubr.msk.f32.mxu0 %vm379_vm3, %v4880_v12  ;;  %v4869_v40 = vmul.f32 %v9978_v32, %v4857_v17  ;;  %v10091_v32 = vld [vmem:[%s8413_s4 + $0x18] sm:$0xff]  ;;  %v5429_v12 = vsel %vm379_vm3, %v5385_v26, 0.0  ;;  %v8236_v17 = vmov 0.0|0.0  }
0x1f3d   :  { %v5374_v4 = vmul.f32 %v10091_v32, %v10091_v32  ;;  %7454 = vmatprep.subr.bf16.mxu1 %v8236_v17 }
0x1f3e   :  { %v4881_v62 = vadd.f32 %v9983_v48, %v4869_v40 }
0x1f3f   :  { %v5396_v41 = vsel %vm379_vm3, %v5374_v4, 0.0 }
0x1f40   :  { %6940 = vmatmul.mubr.msk.f32.gmra.mrb[86].mxu0 %vm379_vm3, %v4881_v62 }
0x1f95   :  { %v5314_v52 = vpop.xlane.xlu1 %5313 }
0x1f96   :  { %v5318_v15 = vmul.f32 0.03125, %v5314_v52 }
0x1f98   :  { %v10084_v13 = vsub.f32 %v5310_v56, %v5318_v15  ;;  %v5405_v56 = vsel %vm379_vm3, %v5377_v23, 0.0 }
0x1f9a   :  { %v5322_v45 = vmul.f32 %v10084_v13, %v10084_v13 }
0x1f9b   :  { %v5317_v38 = vpop.xlane.xlu0 %5316 }
0x1f9c   :  { %v5319_v48 = vmul.f32 0.03125, %v5317_v38  ;;  %v5324_v21 = vsel %vm379_vm3, %v5322_v45, 0.0 }
0x1f9d   :  { %5325 = vadd.xlane.f32.xlu1 %v5324_v21 }
0x1f9e   :  { %v10097_v24 = vsub.f32 %v5311_v1, %v5319_v48  ;;  %v5411_v1 = vsel %vm379_vm3, %v5379_v37, 0.0 }
0x1fa0   :  { %v5323_v46 = vmul.f32 %v10097_v24, %v10097_v24 }
0x1fa1   :  { %5391 = vadd.xlane.f32.xlu1 %v5390_v44 }
0x1fa2   :  { %v5327_v57 = vsel %vm379_vm3, %v5323_v46, 0.0 }
0x1fa3   :  { %5328 = vadd.xlane.f32.xlu0 %v5327_v57 }
0x1fa5   :  { %5397 = vadd.xlane.f32.xlu1 %v5396_v41 }
0x1fa7   :  { %5388 = vadd.xlane.f32.xlu0 %v5387_v27 }
0x1fa9   :  { %5403 = vadd.xlane.f32.xlu1 %v5402_v18 }
0x1fab   :  { %5394 = vadd.xlane.f32.xlu0 %v5393_v28 }
0x1fad   :  { %5409 = vadd.xlane.f32.xlu1 %v5408_v51 }
0x1faf   :  { %5400 = vadd.xlane.f32.xlu0 %v5399_v31 }
0x1fb1   :  { %5415 = vadd.xlane.f32.xlu1 %v5414_v54 }
0x1fb3   :  { %5406 = vadd.xlane.f32.xlu0 %v5405_v56 }
0x1fb5   :  { %5421 = vadd.xlane.f32.xlu1 %v5420_v14 }
0x1fb7   :  { %5412 = vadd.xlane.f32.xlu0 %v5411_v1 }
0x1fb9   :  { %5427 = vadd.xlane.f32.xlu1 %v5426_v35 }
0x1fbb   :  { %5418 = vadd.xlane.f32.xlu0 %v5417_v49 }
0x1fbd   :  { %5433 = vadd.xlane.f32.xlu1 %v5432_v8 }
0x1fbf   :  { %5424 = vadd.xlane.f32.xlu0 %v5423_v10 }
0x1fc3   :  { %5430 = vadd.xlane.f32.xlu0 %v5429_v12 }
0x2013   :  { %v6941_v40 = vpop.f32.mrb[86].mxu0 }
0x2014   :  { %v5046_v62 = vadd.f32 %v6941_v40, %v10012_v61  ;;  %v5040_v52 = vpop.f32.mrb[87].mxu0 }
0x2015   :  { %v5041_v15 = vadd.f32 %v10012_v61, %v5040_v52 }
0x2016   :  { %v5060_v45 = vmul.f32 0.70710677, %v5046_v62  ;;  %v10201_v52 = vmul.f32 0.5, %v5046_v62 }
0x2017   :  { %v5059_v9 = vmul.f32 0.70710677, %v5041_v15 }
0x2018   :  { %v5078_v38 = vand.u32 2147483647, %v5060_v45  ;;  %vm5066_vm6 = vcmp.lt.f32.partialorder %v5060_v45, 0.0 }
0x2019   :  { %v5077_v48 = vand.u32 2147483647, %v5059_v9  ;;  %vm5065_vm7 = vcmp.lt.f32.partialorder %v5059_v9, 0.0 }
0x201a   :  { %v5084_v21 = vmul.f32 0.3275911, %v5078_v38  ;;  %v5162_v58 = vsub.f32 0.0, %v5078_v38  ;;  %v5071_v45 = vsel %vm5065_vm7, -1.0, %v8235_v43 }
0x201b   :  { %v5083_v44 = vmul.f32 0.3275911, %v5077_v48  ;;  %v5161_v57 = vsub.f32 0.0, %v5077_v48 }
0x201c   :  { %v5090_v4 = vadd.f32 1.0, %v5084_v21  ;;  %v5168_v41 = vmul.f32 %v5162_v58, %v5078_v38  ;;  %v10203_v38 = vmul.f32 0.5, %v5041_v15 }
0x201d   :  { %v5089_v46 = vadd.f32 1.0, %v5083_v44  ;;  %v5167_v5 = vmul.f32 %v5161_v57, %v5077_v48  ;;  %v5072_v44 = vsel %vm5066_vm6, -1.0, %v8235_v43 }
0x201e   :  { %8059 = vrcp.f32 %v5090_v4  ;;  %v5179_v6 = vmul.f32 1.442695, %v5168_v41 }
0x201f   :  { %8061 = vrcp.f32 %v5089_v46  ;;  %v5177_v31 = vmul.f32 1.442695, %v5167_v5 }
0x2020   :  { %8063 = vpow2.f32 %v5179_v6 }
0x2028   :  { %v8060_v2 = vpop.eup %8059 }
0x2029   :  { %v8062_v27 = vpop.eup %8061  ;;  %v5108_v18 = vmul.f32 1.0614054, %v8060_v2 }
0x202a   :  { %v5326_v28 = vpop.xlane.xlu1 %5325  ;;  %v5107_v61 = vmul.f32 1.0614054, %v8062_v27  ;;  %v8064_v21 = vpop.eup %8063 }
0x202b   :  { %v5330_v20 = vmul.f32 0.03125, %v5326_v28  ;;  %v5114_v51 = vadd.f32 -1.4531521, %v5108_v18 }
0x202c   :  { %v5113_v29 = vadd.f32 -1.4531521, %v5107_v61 }
0x202d   :  { %v5332_v23 = vadd.f32 1e-06, %v5330_v20  ;;  %v5120_v54 = vmul.f32 %v8060_v2, %v5114_v51 }
0x202e   :  { %v5119_v63 = vmul.f32 %v8062_v27, %v5113_v29  ;;  %v10190_v56 = vpop.xlane.xlu1 %5391  ;;  %v6037_v29 = vld [vmem:[%s8403_s6] ss:$0 sm:$0xff]  ;;  %s8239_s6 = smov [#allocation2]  }
0x202f   :  { %8065 = vrsqrt.f32 %v5332_v23  ;;  %v5126_v37 = vadd.f32 1.4214138, %v5120_v54  ;;  %vm5444_vm8 = vcmp.eq.f32.partialorder %v10190_v56, inf  ;;  %vm5446_vm9 = vcmp.eq.f32.partialorder %v10190_v56, 0.0 }
0x2030   :  { %v5329_v14 = vpop.xlane.xlu0 %5328  ;;  %v5125_v19 = vadd.f32 1.4214138, %v5119_v63  ;;  %8067 = vrsqrt.f32 %v10190_v56  ;;  %v5447_v62 = vand.u32 2147483648, %v10190_v56 }
0x2031   :  { %8069 = vpow2.f32 %v5177_v31  ;;  %v5331_v1 = vmul.f32 0.03125, %v5329_v14  ;;  %v5132_v25 = vmul.f32 %v8060_v2, %v5126_v37 }
0x2032   :  { %v5131_v35 = vmul.f32 %v8062_v27, %v5125_v19  ;;  %v10193_v39 = vpop.xlane.xlu1 %5397 }
0x2033   :  { %v5333_v49 = vadd.f32 1e-06, %v5331_v1  ;;  %v5138_v59 = vadd.f32 -0.28449672, %v5132_v25  ;;  %8071 = vrsqrt.f32 %v10193_v39  ;;  %vm5458_vm10 = vcmp.eq.f32.partialorder %v10193_v39, inf }
0x2034   :  { %v5137_v8 = vadd.f32 -0.28449672, %v5131_v35  ;;  %v10196_v10 = vpop.xlane.xlu0 %5388  ;;  %vm5460_vm11 = vcmp.eq.f32.partialorder %v10193_v39, 0.0  ;;  %v5461_v43 = vand.u32 2147483648, %v10193_v39 }
0x2035   :  { %8073 = vrsqrt.f32 %v5333_v49  ;;  %v5144_v26 = vmul.f32 %v8060_v2, %v5138_v59  ;;  %vm5437_vm12 = vcmp.eq.f32.partialorder %v10196_v10, inf  ;;  %vm5439_vm13 = vcmp.eq.f32.partialorder %v10196_v10, 0.0 }
0x2036   :  { %v5143_v12 = vmul.f32 %v8062_v27, %v5137_v8  ;;  %8075 = vrsqrt.f32 %v10196_v10  ;;  %v10199_v40 = vpop.xlane.xlu1 %5403  ;;  %v5440_v28 = vand.u32 2147483648, %v10196_v10 }
0x2037   :  { %v5150_v48 = vadd.f32 0.2548296, %v5144_v26  ;;  %8077 = vrsqrt.f32 %v10199_v40  ;;  %vm5472_vm14 = vcmp.eq.f32.partialorder %v10199_v40, inf  ;;  %vm5474_vm15 = vcmp.eq.f32.partialorder %v10199_v40, 0.0 }
0x2038   :  { %v5149_v9 = vadd.f32 0.2548296, %v5143_v12  ;;  %v10209_v4 = vpop.xlane.xlu0 %5394  ;;  %v5475_v1 = vand.u32 2147483648, %v10199_v40 }
0x2039   :  { %v8066_v46 = vpop.eup %8065  ;;  %v5156_v58 = vmul.f32 %v8060_v2, %v5150_v48  ;;  %8079 = vrsqrt.f32 %v10209_v4  ;;  %vm5451_vm0 = vcmp.eq.f32.partialorder %v10209_v4, inf  ;;  %vm5453_vm1 = vcmp.eq.f32.partialorder %v10209_v4, 0.0 }
0x203a   :  { %v8068_v15 = vpop.eup %8067  ;;  %v5155_v57 = vmul.f32 %v8062_v27, %v5149_v9  ;;  %v10217_v41 = vpop.xlane.xlu1 %5409  ;;  %v5336_v6 = vmul.f32 %v8066_v46, %v10084_v13  ;;  %v6038_v46 = vld [vmem:[%s8408_s27] ss:$0 sm:$0xff]  ;;  %s5726_s27 = sshll.u32 %s8239_s6, 4  ;;  %s5727_s27 = int_to_ptr.vmem [resolvable:$true] %s5726_s27 }
0x203b   :  { %v8070_v5 = vpop.eup %8069  ;;  %v5186_v18 = vmul.f32 %v8064_v21, %v5156_v58  ;;  %v5443_v2 = vmul.f32 %v8068_v15, %v10190_v56  ;;  %8081 = vrsqrt.f32 %v10217_v41  ;;  %s8163_s4 = scalar_lea.vmem %s5727_s27, 32  ;;  %p8168_p1 = scmp.lt.s32.totalorder %s5727_s27, %s5727_s27 }
0x203c   :  { %v5185_v27 = vmul.f32 %v8070_v5, %v5155_v57  ;;  %v10224_v61 = vpop.xlane.xlu0 %5400  ;;  %p8164_p0 = scmp.ne.s32.totalorder %s5727_s27, %s8163_s4  ;;  %p8169_p2 = scmp.lt.s32.totalorder %s8163_s4, %s8163_s4 }
0x203d   :  { %v8072_v20 = vpop.eup %8071  ;;  %v5192_v51 = vsub.f32 1.0, %v5186_v18  ;;  %v5445_v31 = vsel %vm5444_vm8, %v10190_v56, %v5443_v2  ;;  %8083 = vrsqrt.f32 %v10224_v61  ;;  %v5344_v56 = vmul.f32 %v6037_v29, %v5336_v6 }
0x203e   :  { %v5191_v23 = vsub.f32 1.0, %v5185_v27  ;;  %v5448_v13 = vsel %vm5446_vm9, %v5447_v62, %v5445_v31  ;;  %v5457_v54 = vmul.f32 %v8072_v20, %v10193_v39  ;;  %v10237_v63 = vpop.xlane.xlu1 %5415  ;;  %v5454_v62 = vand.u32 2147483648, %v10209_v4  ;;  %p8170_p3 = por %p8169_p2, %p8168_p1 }
0x203f   :  { %v8074_v37 = vpop.eup %8073  ;;  %v5198_v14 = vmul.f32 %v5192_v51, %v5072_v44  ;;  %v5548_v19 = vmax.f32 %v5448_v13, 1e-12  ;;  %8085 = vrsqrt.f32 %v10237_v63  ;;  %v5352_v20 = vadd.f32 %v6038_v46, %v5344_v56 }
0x2040   :  { %v8076_v25 = vpop.eup %8075  ;;  %v5337_v35 = vmul.f32 %v8074_v37, %v10097_v24  ;;  %v5197_v49 = vmul.f32 %v5191_v23, %v5071_v45  ;;  %v5459_v59 = vsel %vm5458_vm10, %v10193_v39, %v5457_v54  ;;  %v10245_v8 = vpop.xlane.xlu0 %5406  ;;  %vm5465_vm6 = vcmp.eq.f32.partialorder %v10224_v61, inf  ;;  %p8171_p4 = pnand %p8170_p3, %p8164_p0 }
0x2041   :  { %v8078_v26 = vpop.eup %8077  ;;  %v5204_v12 = vadd.f32 1.0, %v5198_v14  ;;  %v5436_v48 = vmul.f32 %v8076_v25, %v10196_v10  ;;  %v5462_v21 = vsel %vm5460_vm11, %v5461_v43, %v5459_v59  ;;  %8087 = vrcp.f32 %v5548_v19 }
0x2042   :  { %v5203_v44 = vadd.f32 1.0, %v5197_v49  ;;  %v5345_v9 = vmul.f32 %v6037_v29, %v5337_v35  ;;  %v5471_v24 = vmul.f32 %v8078_v26, %v10199_v40  ;;  %8089 = vrsqrt.f32 %v10245_v8  ;;  %v10292_v49 = vpop.xlane.xlu1 %5421 }
0x2043   :  { %v8080_v45 = vpop.eup %8079  ;;  %v5438_v58 = vsel %vm5437_vm12, %v10196_v10, %v5436_v48  ;;  %v5550_v43 = vmax.f32 %v5462_v21, 1e-12  ;;  %v5210_v5 = vmul.f32 %v5204_v12, %v10201_v52  ;;  %vm5467_vm7 = vcmp.eq.f32.partialorder %v10224_v61, 0.0 }
0x2044   :  { %v5209_v39 = vmul.f32 %v5203_v44, %v10203_v38  ;;  %v5353_v15 = vadd.f32 %v6038_v46, %v5345_v9  ;;  %v5441_v57 = vsel %vm5439_vm13, %v5440_v28, %v5438_v58  ;;  %v5450_v2 = vmul.f32 %v8080_v45, %v10209_v4  ;;  %v10283_v37 = vpop.xlane.xlu0 %5412 }
0x2045   :  { %v5547_v18 = vmax.f32 %v5441_v57, 1e-12  ;;  %v5473_v6 = vsel %vm5472_vm14, %v10199_v40, %v5471_v24  ;;  %v8082_v27 = vpop.eup %8081  ;;  %v5468_v28 = vand.u32 2147483648, %v10224_v61  ;;  %vm5488_vm8 = vcmp.eq.f32.partialorder %v10217_v41, 0.0 }
0x2046   :  { %6956 = vmatprep.mubr.f32.mxu1 %v5209_v39  ;;  %v5355_v51 = vrot.slane %v5353_v15, 7  ;;  %v5452_v10 = vsel %vm5451_vm0, %v10209_v4, %v5450_v2  ;;  %v5476_v52 = vsel %vm5474_vm15, %v5475_v1, %v5473_v6  ;;  %v5485_v19 = vmul.f32 %v8082_v27, %v10217_v41  ;;  %v10311_v39 = vpop.xlane.xlu1 %5427 }
0x2047   :  { %v8084_v38 = vpop.eup %8083  ;;  %6957 = vmatmul.mubr.f32.gmra.mrb[58].mxu1 %v5210_v5  ;;  %8091 = vrcp.f32 %v5547_v18  ;;  %v5455_v31 = vsel %vm5453_vm1, %v5454_v62, %v5452_v10  ;;  %v5552_v40 = vmax.f32 %v5476_v52, 1e-12  ;;  %v5489_v26 = vand.u32 2147483648, %v10217_v41 }
0x2048   :  { %v10275_v29 = vsel %vm292_vm2, %v5352_v20, %v5355_v51  ;;  %v5464_v23 = vmul.f32 %v8084_v38, %v10224_v61  ;;  %8093 = vrcp.f32 %v5550_v43  ;;  %v5549_v54 = vmax.f32 %v5455_v31, 1e-12 }
0x2049   :  { %v5358_v13 = vmul.f32 %v10275_v29, %v10275_v29  ;;  %v8086_v4 = vpop.eup %8085  ;;  %vm5486_vm2 = vcmp.eq.f32.partialorder %v10217_v41, inf  ;;  %vm5479_vm9 = vcmp.eq.f32.partialorder %v10245_v8, inf  ;;  %v5482_v21 = vand.u32 2147483648, %v10245_v8 }
0x204a   :  { %v5466_v14 = vsel %vm5465_vm6, %v10224_v61, %v5464_v23  ;;  %8095 = vrcp.f32 %v5549_v54  ;;  %v10297_v61 = vpop.xlane.xlu0 %5418  ;;  %v5487_v12 = vsel %vm5486_vm2, %v10217_v41, %v5485_v19  ;;  %vm5481_vm10 = vcmp.eq.f32.partialorder %v10245_v8, 0.0  ;;  %v10334_v31 = vpop.xlane.xlu1 %5433 }
0x204b   :  { %v5360_v1 = vsel %vm5359_vm5, %v5358_v13, 0.0  ;;  %v5469_v25 = vsel %vm5467_vm7, %v5468_v28, %v5466_v14  ;;  %v8088_v35 = vpop.eup %8087  ;;  %8097 = vrsqrt.f32 %v10283_v37  ;;  %v5490_v45 = vsel %vm5488_vm8, %v5489_v26, %v5487_v12 }
0x204c   :  { %5361 = vadd.xlane.f32.xlu0 %v5360_v1  ;;  %v8090_v56 = vpop.eup %8089  ;;  %v5551_v59 = vmax.f32 %v5469_v25, 1e-12  ;;  %8099 = vrcp.f32 %v5552_v40  ;;  %v5568_v9 = vmul.f32 %v8088_v35, %v10082_v60  ;;  %v5499_v58 = vmul.f32 %v8086_v4, %v10237_v63 }
0x204d   :  { %v5478_v48 = vmul.f32 %v8090_v56, %v10245_v8  ;;  %8101 = vrsqrt.f32 %v10292_v49  ;;  %vm5500_vm11 = vcmp.eq.f32.partialorder %v10237_v63, inf  ;;  %v5554_v60 = vmax.f32 %v5490_v45, 1e-12 }
0x204e   :  { %8103 = vrsqrt.f32 %v10297_v61  ;;  %vm5502_vm12 = vcmp.eq.f32.partialorder %v10237_v63, 0.0  ;;  %v5503_v41 = vand.u32 2147483648, %v10237_v63  ;;  %v5501_v18 = vsel %vm5500_vm11, %v10237_v63, %v5499_v58 }
0x204f   :  { %v5480_v44 = vsel %vm5479_vm9, %v10245_v8, %v5478_v48  ;;  %8105 = vrcp.f32 %v5551_v59  ;;  %v10314_v8 = vpop.xlane.xlu0 %5424  ;;  %vm5493_vm13 = vcmp.eq.f32.partialorder %v10283_v37, inf  ;;  %v5496_v27 = vand.u32 2147483648, %v10283_v37 }
0x2050   :  { %v5483_v46 = vsel %vm5481_vm10, %v5482_v21, %v5480_v44  ;;  %8107 = vrsqrt.f32 %v10311_v39  ;;  %vm5495_vm14 = vcmp.eq.f32.partialorder %v10283_v37, 0.0  ;;  %vm5514_vm15 = vcmp.eq.f32.partialorder %v10292_v49, inf }
0x2051   :  { %v8092_v24 = vpop.eup %8091  ;;  %v5553_v5 = vmax.f32 %v5483_v46, 1e-12  ;;  %8109 = vrsqrt.f32 %v10314_v8  ;;  %vm5516_vm0 = vcmp.eq.f32.partialorder %v10292_v49, 0.0  ;;  %vm5507_vm1 = vcmp.eq.f32.partialorder %v10297_v61, inf }
0x2052   :  { %v5566_v62 = vmul.f32 %v8092_v24, %v10095_v22  ;;  %v8094_v15 = vpop.eup %8093  ;;  %8111 = vrcp.f32 %v5554_v60  ;;  %v5510_v19 = vand.u32 2147483648, %v10297_v61  ;;  %vm5509_vm5 = vcmp.eq.f32.partialorder %v10297_v61, 0.0 }
0x2053   :  { %v5572_v2 = vmul.f32 %v8094_v15, %v10091_v32  ;;  %8113 = vrcp.f32 %v5553_v5  ;;  %v5504_v32 = vsel %vm5502_vm12, %v5503_v41, %v5501_v18  ;;  %v10338_v40 = vpop.xlane.xlu0 %5430  ;;  %vm5528_vm6 = vcmp.eq.f32.partialorder %v10311_v39, inf }
0x2054   :  { %v7455_v57 = vpack.c.bf16 %v5568_v9, %v5566_v62  ;;  %v8096_v43 = vpop.eup %8095  ;;  %v5556_v14 = vmax.f32 %v5504_v32, 1e-12  ;;  %8115 = vrsqrt.f32 %v10334_v31  ;;  %vm5521_vm7 = vcmp.eq.f32.partialorder %v10314_v8, inf }
0x2055   :  { %v5570_v22 = vmul.f32 %v8096_v43, %v10110_v50  ;;  %v8098_v6 = vpop.eup %8097  ;;  %8117 = vrsqrt.f32 %v10338_v40  ;;  %vm5530_vm2 = vcmp.eq.f32.partialorder %v10311_v39, 0.0  ;;  %v5531_v24 = vand.u32 2147483648, %v10311_v39 }
0x2056   :  { %7457 = vmatpush3.bf16.xpose.msk.msra.mxu1 %vm8477_vm4, %v7455_v57  ;;  %v8100_v20 = vpop.eup %8099  ;;  %v5492_v51 = vmul.f32 %v8098_v6, %v10283_v37  ;;  %8119 = vrcp.f32 %v5556_v14  ;;  %v5524_v45 = vand.u32 2147483648, %v10314_v8  ;;  %vm5523_vm8 = vcmp.eq.f32.partialorder %v10314_v8, 0.0 }
0x2057   :  { %7458 = vmatprep.subr.bf16.mxu1 %v8236_v17  ;;  %v8102_v38 = vpop.eup %8101  ;;  %v7459_v28 = vpack.c.bf16 %v5572_v2, %v5570_v22  ;;  %v5576_v25 = vmul.f32 %v8100_v20, %v10103_v47  ;;  %vm5542_vm9 = vcmp.eq.f32.partialorder %v10334_v31, inf  ;;  %vm5535_vm10 = vcmp.eq.f32.partialorder %v10338_v40, inf }
0x2058   :  { %v8104_v50 = vpop.eup %8103  ;;  %v5494_v10 = vsel %vm5493_vm13, %v10283_v37, %v5492_v51  ;;  %v5513_v52 = vmul.f32 %v8102_v38, %v10292_v49  ;;  %v5517_v37 = vand.u32 2147483648, %v10292_v49  ;;  %vm8237_vm11 = vmmov 0  }
0x2059   :  { %v8106_v23 = vpop.eup %8105  ;;  %v5497_v13 = vsel %vm5495_vm14, %v5496_v27, %v5494_v10  ;;  %v5506_v54 = vmul.f32 %v8104_v50, %v10297_v61  ;;  %vm5544_vm12 = vcmp.eq.f32.partialorder %v10334_v31, 0.0  ;;  %v5545_v2 = vand.u32 2147483648, %v10334_v31 }
0x205a   :  { %v5555_v63 = vmax.f32 %v5497_v13, 1e-12  ;;  %v5515_v4 = vsel %vm5514_vm15, %v10292_v49, %v5513_v52  ;;  %v5574_v1 = vmul.f32 %v8106_v23, %v10123_v30  ;;  %v8108_v35 = vpop.eup %8107  ;;  %v5538_v27 = vand.u32 2147483648, %v10338_v40 }
0x205b   :  { %v5508_v56 = vsel %vm5507_vm1, %v10297_v61, %v5506_v54  ;;  %v8110_v59 = vpop.eup %8109  ;;  %v5518_v26 = vsel %vm5516_vm0, %v5517_v37, %v5515_v4  ;;  %v5527_v30 = vmul.f32 %v8108_v35, %v10311_v39  ;;  %vm5537_vm13 = vcmp.eq.f32.partialorder %v10338_v40, 0.0 }
0x205c   :  { %8121 = vrcp.f32 %v5555_v63  ;;  %v8112_v12 = vpop.eup %8111  ;;  %v5511_v48 = vsel %vm5509_vm5, %v5510_v19, %v5508_v56  ;;  %v7463_v47 = vpack.c.bf16 %v5576_v25, %v5574_v1  ;;  %v5520_v44 = vmul.f32 %v8110_v59, %v10314_v8 }
0x205d   :  { %v8114_v21 = vpop.eup %8113  ;;  %v5558_v9 = vmax.f32 %v5518_v26, 1e-12  ;;  %v5557_v61 = vmax.f32 %v5511_v48, 1e-12  ;;  %v5529_v49 = vsel %vm5528_vm6, %v10311_v39, %v5527_v30  ;;  %v5580_v58 = vmul.f32 %v8112_v12, %v10117_v36 }
0x205e   :  { %7461 = vmatpush3.bf16.xpose.msk.msra.mxu1 %vm8477_vm4, %v7459_v28  ;;  %v5578_v46 = vmul.f32 %v8114_v21, %v10135_v42  ;;  %v8116_v62 = vpop.eup %8115  ;;  %v5522_v15 = vsel %vm5521_vm7, %v10314_v8, %v5520_v44  ;;  %v5532_v39 = vsel %vm5530_vm2, %v5531_v24, %v5529_v49  ;;  %v8238_v8 = vmov 0.0  }
0x205f   :  { %7462 = vmatprep.subr.bf16.mxu1 %v8236_v17  ;;  %v8118_v60 = vpop.eup %8117  ;;  %8123 = vrcp.f32 %v5558_v9  ;;  %v5525_v43 = vsel %vm5523_vm8, %v5524_v45, %v5522_v15  ;;  %v5541_v5 = vmul.f32 %v8116_v62, %v10334_v31  ;;  %v5560_v42 = vmax.f32 %v5532_v39, 1e-12  ;;  %6991 = vmatprep.mubr.msk.f32.mxu1 %vm8237_vm11, %v8238_v8 }
0x2060   :  { %8125 = vrcp.f32 %v5557_v61  ;;  %v8120_v57 = vpop.eup %8119  ;;  %v7467_v41 = vpack.c.bf16 %v5580_v58, %v5578_v46  ;;  %v5534_v36 = vmul.f32 %v8118_v60, %v10338_v40  ;;  %v5559_v22 = vmax.f32 %v5525_v43, 1e-12 }
0x2061   :  { %v5543_v6 = vsel %vm5542_vm9, %v10334_v31, %v5541_v5  ;;  %v5584_v51 = vmul.f32 %v8120_v57, %v10129_v34  ;;  %8127 = vrcp.f32 %v5560_v42 }
0x2062   :  { %v5536_v38 = vsel %vm5535_vm10, %v10338_v40, %v5534_v36  ;;  %8129 = vrcp.f32 %v5559_v22  ;;  %v5546_v32 = vsel %vm5544_vm12, %v5545_v2, %v5543_v6 }
0x2063   :  { %v5539_v10 = vsel %vm5537_vm13, %v5538_v27, %v5536_v38  ;;  %v5562_v31 = vmax.f32 %v5546_v32, 1e-12 }
0x2064   :  { %v5561_v23 = vmax.f32 %v5539_v10, 1e-12 }
0x2065   :  { %8131 = vrcp.f32 %v5562_v31 }
0x2066   :  { %7465 = vmatpush3.bf16.xpose.msk.msra.mxu1 %vm8477_vm4, %v7463_v47  ;;  %v8122_v18 = vpop.eup %8121  ;;  %8133 = vrcp.f32 %v5561_v23 }
0x2067   :  { %7466 = vmatprep.subr.bf16.mxu1 %v8236_v17  ;;  %v5582_v20 = vmul.f32 %v8122_v18, %v10147_v55 }
0x2069   :  { %v8124_v50 = vpop.eup %8123  ;;  %v7471_v52 = vpack.c.bf16 %v5584_v51, %v5582_v20 }
0x206a   :  { %v8126_v28 = vpop.eup %8125  ;;  %v5588_v55 = vmul.f32 %v8124_v50, %v10141_v33 }
0x206b   :  { %v5586_v34 = vmul.f32 %v8126_v28, %v10159_v16  ;;  %v8128_v13 = vpop.eup %8127 }
0x206c   :  { %v8130_v40 = vpop.eup %8129  ;;  %v5592_v63 = vmul.f32 %v8128_v13, %v10153_v0 }
0x206d   :  { %v7475_v54 = vpack.c.bf16 %v5588_v55, %v5586_v34  ;;  %v5590_v14 = vmul.f32 %v8130_v40, %v10168_v7 }
0x206e   :  { %7469 = vmatpush3.bf16.xpose.msk.msra.mxu1 %vm8477_vm4, %v7467_v41 }
0x206f   :  { %7470 = vmatprep.subr.bf16.mxu1 %v8236_v17  ;;  %v8132_v37 = vpop.eup %8131  ;;  %v7479_v16 = vpack.c.bf16 %v5592_v63, %v5590_v14 }
0x2070   :  { %v8134_v19 = vpop.eup %8133  ;;  %v5596_v4 = vmul.f32 %v8132_v37, %v10172_v11 }
0x2071   :  { %v5594_v33 = vmul.f32 %v8134_v19, %v10180_v3 }
0x2073   :  { %v7483_v1 = vpack.c.bf16 %v5596_v4, %v5594_v33 }
0x2076   :  { %7473 = vmatpush3.bf16.xpose.msk.msra.mxu1 %vm8477_vm4, %v7471_v52 }
0x2077   :  { %7474 = vmatprep.subr.bf16.mxu1 %v8236_v17 }
0x207e   :  { %7477 = vmatpush3.bf16.xpose.msk.msra.mxu1 %vm8477_vm4, %v7475_v54 }
0x207f   :  { %7478 = vmatprep.subr.bf16.mxu1 %v8236_v17 }
0x2086   :  { %7481 = vmatpush3.bf16.xpose.msk.msra.mxu1 %vm8477_vm4, %v7479_v16 }
0x2087   :  { %7482 = vmatprep.subr.bf16.mxu1 %v8236_v17 }
0x208e   :  { %7485 = vmatpush3.bf16.xpose.msk.msra.mxu1 %vm8477_vm4, %v7483_v1 }
0x20d9   :  { %v5362_v7 = vpop.xlane.xlu0 %5361 }
0x20da   :  { %8135 = vrsqrt.f32 %v5362_v7  ;;  %vm5365_vm14 = vcmp.eq.f32.partialorder %v5362_v7, inf  ;;  %v5368_v35 = vand.u32 2147483648, %v5362_v7  ;;  %vm5367_vm15 = vcmp.eq.f32.partialorder %v5362_v7, 0.0 }
0x20e4   :  { %v8136_v0 = vpop.eup %8135 }
0x20e5   :  { %v5364_v25 = vmul.f32 %v8136_v0, %v5362_v7 }
0x20e7   :  { %v5366_v56 = vsel %vm5365_vm14, %v5362_v7, %v5364_v25 }
0x20e8   :  { %v5369_v59 = vsel %vm5367_vm15, %v5368_v35, %v5366_v56 }
0x20e9   :  { %v5370_v26 = vmax.f32 %v5369_v59, 1e-12 }
0x20eb   :  { %8137 = vrcp.f32 %v5370_v26 }
0x20f5   :  { %v8138_v3 = vpop.eup %8137 }
0x20f6   :  { %v5564_v11 = vmul.f32 %v8138_v3, %v10275_v29 }
0x20f8   :  { %6992 = vmatmul.mubr.msk.f32.vlgmr.msra.gmra.mrb[60].mxu1 %vm379_vm3, %v5564_v11 }
0x211a   :  { %v6958_v17 = vpop.f32.mrb[58].mxu1 }
0x211b   :  { %v5295_v12 = vpop.f32.mrb[59].mxu1 }
0x21cb   :  { %v5714_v53 = vpop.f32.mrb[60].mxu1 }
0x21cc   :  { %v5718_v48 = vmul.f32 16.0, %v5714_v53  ;;  %v6993_v30 = vpop.f32.mrb[61].mxu1 }
0x21ce   :  { %5719 = vst [vmem:[#allocation2] sm:$0x3] %v5718_v48 }
0x21cf   :  { %8174 = shalt.err (!%p8171_p4)
}
0x21d0   :  { %s8175_s17 = scalar_lea.hbm %s8418_s12, 32 }
0x21d1   :  { %p8176_p5 = scmp.ne.s32.totalorder %s8418_s12, %s8175_s17  ;;  %p8179_p6 = scmp.lt.u32.totalorder %s8175_s17, %s8418_s12 }
0x21d3   :  { %p8181_p7 = pnand %p8179_p6, %p8176_p5 }
0x21d5   :  { %8184 = shalt.err (!%p8181_p7)
}
0x21d6   :  { %5729 = dma.vmem_to_hbm [thread:$0]  %s5727_s27, 32, %s8418_s12, [#allocation3]  }
0x21d7   :  { %8185 = dma.done.wait [#allocation3], 32  }
0x21d8   :  { %8186 = vsyncadd [#allocation3], 4294967264 }
0x21d9   :  { %5733 = vsyncpa [#allocation3], 1 }

</bundles_post_ra>
